<compile_context>
chip_gen: v7x
topology: tpu7x:2x2x1
jax: 0.10.0
libtpu: 0.0.40
codegen_flags: <defaults>
</compile_context>

<pallas_src>
import functools
import math

import jax
import jax.numpy as jnp
from jax import lax
from jax.experimental import pallas as pl
from jax.experimental.pallas import tpu as pltpu

# ---- small DistilBERT-like config (synthetic, scaled down) -------------------
VOCAB = 100
MAX_POS = 16
HIDDEN = 32          # bert.config.hidden_size (scaled down from 768)
N_HEADS = 4
HEAD_DIM = HIDDEN // N_HEADS
FFN_DIM = 64
N_LAYERS = 2
NUM_EMOTIONS = 5     # num_emotions
HEAD_HIDDEN = 256    # nn.Linear(hidden_size, 256)

# ---- packed parameter layout --------------------------------------------------
# emb_tab rows: [0:MAX_POS) = position embeddings, [MAX_POS:MAX_POS+VOCAB) = word embeddings.
EMB_ROWS = MAX_POS + VOCAB
# w_a per layer, lane-concatenated: [ W_qkv (H,3H) | W_o (H,H) | W_in (H,FFN) ]
WA_QKV, WA_O, WA_IN = 0, 3 * HIDDEN, 4 * HIDDEN
WA_W = 4 * HIDDEN + FFN_DIM
# vecs: every bias / LayerNorm vector, one per row, left-aligned, zero padded to VEC_W lanes.
VEC_W = HEAD_HIDDEN
R_EMB_G, R_EMB_B, R_HB1, R_HB2 = 0, 1, 2, 3
R_LAYER0, VROWS = 4, 8
# per-layer rows: +0 b_qkv, +1 b_o, +2 ln1_g, +3 ln1_b, +4 b_in, +5 b_out, +6 ln2_g, +7 ln2_b
N_VEC_ROWS = R_LAYER0 + N_LAYERS * VROWS


# ---- shared math helpers (used both inside the kernel and in the pure-JAX ref) --
def _layernorm(x, g, b, eps=1e-12):
    mu = jnp.mean(x, axis=-1, keepdims=True)
    var = jnp.mean((x - mu) ** 2, axis=-1, keepdims=True)
    return (x - mu) * jax.lax.rsqrt(var + eps) * g + b


def _gelu(x):
    # tanh approximation of GELU
    # TODO(synk): HF DistilBERT uses exact erf-GELU; tanh approx kept (matches the ref here).
    return 0.5 * x * (1.0 + jnp.tanh(0.7978845608028654 * (x + 0.044715 * x * x * x)))


def _softmax_last(s):
    s = s - jnp.max(s, axis=-1, keepdims=True)
    p = jnp.exp(s)
    return p / jnp.sum(p, axis=-1, keepdims=True)


def _vrow(vecs_ref, row, width):
    # one packed vector, returned as a (1, width) broadcastable slab (static slice).
    return vecs_ref[row:row + 1, 0:width]


# ---- the single fused Pallas kernel -------------------------------------------
def _fused_forward_kernel(ids_ref, mask_ref, emb_ref, w_a_ref, w_out_ref,
                          w_head_ref, vecs_ref, o_ref, x_scr, *, batch, seq):
    bs = batch * seq
    neg = jnp.float32(-1e30)

    # ---- embedding gather (word + position), table resident in VMEM -----------
    for r in range(bs):                                  # static unroll, B*S rows
        tok = ids_ref[r] + MAX_POS                       # word rows follow the pos rows
        x_scr[r:r + 1, :] = emb_ref[pl.ds(tok, 1), :]
    pos = jnp.concatenate([emb_ref[0:seq, :]] * batch, axis=0)        # (BS, H)
    x = _layernorm(x_scr[...] + pos,
                   _vrow(vecs_ref, R_EMB_G, HIDDEN),
                   _vrow(vecs_ref, R_EMB_B, HIDDEN))     # embeddings.LayerNorm

    # ---- additive attention bias built in-kernel from the SMEM mask -----------
    # 0 where (same batch element AND key not padded), -1e30 otherwise.
    row_i = lax.broadcasted_iota(jnp.int32, (bs, bs), 0)
    col_i = lax.broadcasted_iota(jnp.int32, (bs, bs), 1)
    same = None
    for b in range(batch):                               # block-diagonal structure, no int-div
        in_r = (row_i >= b * seq) & (row_i < (b + 1) * seq)
        in_c = (col_i >= b * seq) & (col_i < (b + 1) * seq)
        blk = in_r & in_c
        same = blk if same is None else (same | blk)
    colv = lax.broadcasted_iota(jnp.int32, (1, bs), 1)
    keep = jnp.zeros((1, bs), jnp.float32)
    for j in range(bs):                                  # scatter SMEM mask scalars to lanes
        keep = jnp.where(colv == j, mask_ref[j].astype(jnp.float32), keep)
    bias = jnp.where(same & (keep > 0.0), 0.0, neg)      # (BS, BS)
    # NOTE: a fully-masked row degenerates to a uniform softmax (no NaN) — acceptable here.

    scale = 1.0 / math.sqrt(HEAD_DIM)
    for l in range(N_LAYERS):                            # static unroll
        base = R_LAYER0 + l * VROWS
        wqkv = w_a_ref[l, :, WA_QKV:WA_QKV + 3 * HIDDEN]             # (H, 3H)
        wo = w_a_ref[l, :, WA_O:WA_O + HIDDEN]                       # (H, H)
        w_in = w_a_ref[l, :, WA_IN:WA_IN + FFN_DIM]                  # (H, FFN)

        # fused QKV projection: one (BS,H) x (H,3H) MXU matmul
        qkv = jnp.dot(x, wqkv, preferred_element_type=jnp.float32) \
            + _vrow(vecs_ref, base + 0, 3 * HIDDEN)
        qs = qkv[:, 0:HIDDEN] * scale                                # pre-scaled Q
        kt = qkv[:, HIDDEN:2 * HIDDEN].T                             # K^T hoisted once/layer

        ctx_parts = []
        for h in range(N_HEADS):                                     # static unroll
            lo = h * HEAD_DIM
            s = jnp.dot(qs[:, lo:lo + HEAD_DIM], kt[lo:lo + HEAD_DIM, :],
                        preferred_element_type=jnp.float32) + bias   # (BS, BS)
            s = s - jnp.max(s, axis=-1, keepdims=True)
            p = jnp.exp(s)
            p = p * pl.reciprocal(jnp.sum(p, axis=-1, keepdims=True), approx=True)
            ctx_parts.append(
                jnp.dot(p, qkv[:, 2 * HIDDEN + lo:2 * HIDDEN + lo + HEAD_DIM],
                        preferred_element_type=jnp.float32))         # (BS, hd)
        ctx = jnp.concatenate(ctx_parts, axis=1)                     # (BS, H)
        # single output projection with K=H (replaces 4 K=8 partial matmuls)
        attn = jnp.dot(ctx, wo, preferred_element_type=jnp.float32) \
            + _vrow(vecs_ref, base + 1, HIDDEN)

        h1 = _layernorm(attn + x, _vrow(vecs_ref, base + 2, HIDDEN),
                        _vrow(vecs_ref, base + 3, HIDDEN))           # sa_layer_norm
        ff = _gelu(jnp.dot(h1, w_in, preferred_element_type=jnp.float32)
                   + _vrow(vecs_ref, base + 4, FFN_DIM))
        ff = jnp.dot(ff, w_out_ref[l], preferred_element_type=jnp.float32) \
            + _vrow(vecs_ref, base + 5, HIDDEN)
        x = _layernorm(ff + h1, _vrow(vecs_ref, base + 6, HIDDEN),
                       _vrow(vecs_ref, base + 7, HIDDEN))            # output_layer_norm

    # ---- pooled = last_hidden_state[:, 0] + regressor head ---------------------
    cls = x.reshape(batch, seq, HIDDEN)[:, 0, :]                     # (B, H) strided row select
    w1 = w_head_ref[0:HIDDEN, :]                                     # (H, 256)
    w2t = w_head_ref[HIDDEN:HIDDEN + NUM_EMOTIONS, :]                # (E, 256) == W2^T
    hcls = jnp.maximum(jnp.dot(cls, w1, preferred_element_type=jnp.float32)
                       + _vrow(vecs_ref, R_HB1, HEAD_HIDDEN), 0.0)   # Linear + ReLU (+Dropout=id)
    o_ref[...] = lax.dot_general(hcls, w2t, (((1,), (1,)), ((), ())),
                                 preferred_element_type=jnp.float32) \
        + _vrow(vecs_ref, R_HB2, NUM_EMOTIONS)


# ---- full forward (single grid-less pallas_call) -------------------------------
@jax.jit
def emotion_regressor_forward(params, input_ids, attention_mask):
    B, S = input_ids.shape
    BS = B * S
    kernel = functools.partial(_fused_forward_kernel, batch=B, seq=S)
    smem = pl.BlockSpec(memory_space=pltpu.MemorySpace.SMEM)
    vmem = pl.BlockSpec(memory_space=pltpu.MemorySpace.VMEM)
    return pl.pallas_call(
        kernel,
        out_shape=jax.ShapeDtypeStruct((B, NUM_EMOTIONS), jnp.float32),
        in_specs=[smem, smem, vmem, vmem, vmem, vmem, vmem],
        out_specs=vmem,
        scratch_shapes=[pltpu.VMEM((BS, HIDDEN), jnp.float32)],      # gathered embeddings
    )(input_ids.reshape(BS).astype(jnp.int32),
      attention_mask.reshape(BS).astype(jnp.int32),
      params["emb_tab"], params["w_a"], params["w_out"],
      params["w_head"], params["vecs"])


# ---- pure-JAX reference (same math, for sanity check) -------------------------
def forward_ref(params, input_ids, attention_mask):
    B, S = input_ids.shape
    pos_emb = params["emb_tab"][:MAX_POS]
    word_emb = params["emb_tab"][MAX_POS:]
    vecs = params["vecs"]
    x = word_emb[input_ids] + pos_emb[None, :S, :]
    x = _layernorm(x, vecs[R_EMB_G, :HIDDEN], vecs[R_EMB_B, :HIDDEN])
    mask = attention_mask.astype(jnp.float32)[:, None, :]            # (B, 1, S)
    for l in range(N_LAYERS):
        base = R_LAYER0 + l * VROWS
        w_a = params["w_a"][l]
        wqkv = w_a[:, WA_QKV:WA_QKV + 3 * HIDDEN]
        wo = w_a[:, WA_O:WA_O + HIDDEN]
        w_in = w_a[:, WA_IN:WA_IN + FFN_DIM]
        qkv = x @ wqkv + vecs[base + 0, :3 * HIDDEN]
        q, k, v = (qkv[..., :HIDDEN], qkv[..., HIDDEN:2 * HIDDEN], qkv[..., 2 * HIDDEN:3 * HIDDEN])
        ctx_parts = []
        for h in range(N_HEADS):
            sl = slice(h * HEAD_DIM, (h + 1) * HEAD_DIM)
            s = jnp.einsum('bqd,bkd->bqk', q[..., sl], k[..., sl]) / math.sqrt(HEAD_DIM)
            s = jnp.where(mask > 0, s, -1e30)
            pa = _softmax_last(s)
            ctx_parts.append(jnp.einsum('bqk,bkd->bqd', pa, v[..., sl]))
        ctx = jnp.concatenate(ctx_parts, axis=-1)
        attn = ctx @ wo + vecs[base + 1, :HIDDEN]
        h1 = _layernorm(attn + x, vecs[base + 2, :HIDDEN], vecs[base + 3, :HIDDEN])
        ff = _gelu(h1 @ w_in + vecs[base + 4, :FFN_DIM]) @ params["w_out"][l] + vecs[base + 5, :HIDDEN]
        x = _layernorm(ff + h1, vecs[base + 6, :HIDDEN], vecs[base + 7, :HIDDEN])
    cls = x[:, 0, :]
    hw1 = params["w_head"][:HIDDEN]
    hw2 = params["w_head"][HIDDEN:HIDDEN + NUM_EMOTIONS].T
    hcls = jnp.maximum(cls @ hw1 + vecs[R_HB1, :HEAD_HIDDEN], 0.0)
    return hcls @ hw2 + vecs[R_HB2, :NUM_EMOTIONS]


# ---- deterministic synthetic parameters (packed layout) -----------------------
def init_params(key):
    keys = jax.random.split(key, 3 + N_LAYERS)

    def dense(k, fi, fo):
        k1, k2 = jax.random.split(k)
        w = jax.random.normal(k1, (fi, fo), jnp.float32) / math.sqrt(fi)
        b = jax.random.normal(k2, (fo,), jnp.float32) * 0.02
        return w, b

    word_emb = jax.random.normal(keys[0], (VOCAB, HIDDEN), jnp.float32) * 0.02
    pos_emb = jax.random.normal(keys[1], (MAX_POS, HIDDEN), jnp.float32) * 0.02

    vecs = jnp.zeros((N_VEC_ROWS, VEC_W), jnp.float32)

    def put(v, row, vec):
        return v.at[row, :vec.shape[0]].set(vec)

    ones_h = jnp.ones((HIDDEN,), jnp.float32)
    vecs = put(vecs, R_EMB_G, ones_h)                    # embeddings LN gamma (beta stays 0)

    w_a_layers, w_out_layers = [], []
    for l in range(N_LAYERS):
        lk = jax.random.split(keys[2 + l], 6)
        wq, bq = dense(lk[0], HIDDEN, HIDDEN)
        wk, bk = dense(lk[1], HIDDEN, HIDDEN)
        wv, bv = dense(lk[2], HIDDEN, HIDDEN)
        wo, bo = dense(lk[3], HIDDEN, HIDDEN)
        w_in, b_in = dense(lk[4], HIDDEN, FFN_DIM)
        w_out, b_out = dense(lk[5], FFN_DIM, HIDDEN)
        w_a_layers.append(jnp.concatenate(
            [jnp.concatenate([wq, wk, wv], axis=1), wo, w_in], axis=1))   # (H, 3H+H+FFN)
        w_out_layers.append(w_out)
        base = R_LAYER0 + l * VROWS
        vecs = put(vecs, base + 0, jnp.concatenate([bq, bk, bv]))
        vecs = put(vecs, base + 1, bo)
        vecs = put(vecs, base + 2, ones_h)               # sa_layer_norm gamma
        vecs = put(vecs, base + 4, b_in)
        vecs = put(vecs, base + 5, b_out)
        vecs = put(vecs, base + 6, ones_h)               # output_layer_norm gamma

    hk = jax.random.split(keys[2 + N_LAYERS], 2)
    hw1, hb1 = dense(hk[0], HIDDEN, HEAD_HIDDEN)
    hw2, hb2 = dense(hk[1], HEAD_HIDDEN, NUM_EMOTIONS)
    vecs = put(vecs, R_HB1, hb1)
    vecs = put(vecs, R_HB2, hb2)

    return {
        "emb_tab": jnp.concatenate([pos_emb, word_emb], axis=0),   # (MAX_POS+VOCAB, H)
        "w_a": jnp.stack(w_a_layers),                              # (L, H, 3H+H+FFN)
        "w_out": jnp.stack(w_out_layers),                          # (L, FFN, H)
        "w_head": jnp.concatenate([hw1, hw2.T], axis=0),           # (H+E, 256)
        "vecs": vecs,                                              # (N_VEC_ROWS, 256)
    }
    # TODO(synk): pretrained 'distilbert-base-uncased' weights are replaced by deterministic
    # synthetic weights at a scaled-down config (no checkpoint load).


if __name__ == "__main__":
    key = jax.random.PRNGKey(0)
    pkey, dkey = jax.random.split(key)
    params = init_params(pkey)

    B, S = 2, 8
    input_ids = jax.random.randint(dkey, (B, S), 0, VOCAB, dtype=jnp.int32)
    attention_mask = jnp.ones((B, S), dtype=jnp.int32).at[1, 6:].set(0)  # ragged padding

    out = emotion_regressor_forward(params, input_ids, attention_mask)
    out = jax.block_until_ready(out)

    ref = forward_ref(params, input_ids, attention_mask)
    assert out.shape == (B, NUM_EMOTIONS)
    assert jnp.allclose(out, ref, atol=5e-2, rtol=5e-2), (out, ref)
    print("KERNEL_OK")
</pallas_src>

<mosaic_0001>
module attributes {stable_mosaic.version = 11 : i64} {
  func.func @_fused_forward_kernel(%arg0: memref<16xi32, #tpu.memory_space<smem>>, %arg1: memref<16xi32, #tpu.memory_space<smem>>, %arg2: memref<116x32xf32, #tpu.memory_space<vmem>>, %arg3: memref<2x32x192xf32, #tpu.memory_space<vmem>>, %arg4: memref<2x64x32xf32, #tpu.memory_space<vmem>>, %arg5: memref<37x256xf32, #tpu.memory_space<vmem>>, %arg6: memref<20x256xf32, #tpu.memory_space<vmem>>, %arg7: memref<2x5xf32, #tpu.memory_space<vmem>>, %arg8: memref<16x32xf32, #tpu.memory_space<vmem>>) attributes {dimension_semantics = [], scalar_prefetch = 0 : i64, scratch_operands = 1 : i64, tpu.core_type = #tpu.core_type<tc>} {
    %c0 = arith.constant 0 : index
    %0 = memref.load %arg0[%c0] : memref<16xi32, #tpu.memory_space<smem>>
    %c16_i32 = arith.constant 16 : i32
    %1 = arith.addi %0, %c16_i32 : i32
    %2 = arith.index_cast %1 : i32 to index
    %c0_0 = arith.constant 0 : index
    %3 = vector.load %arg2[%2, %c0_0] : memref<116x32xf32, #tpu.memory_space<vmem>>, vector<1x32xf32>
    %c0_1 = arith.constant 0 : index
    %c0_2 = arith.constant 0 : index
    %4 = vector.load %arg8[%c0_1, %c0_2] : memref<16x32xf32, #tpu.memory_space<vmem>>, vector<1x32xf32>
    tpu.vector_store %arg8[%c0_1, %c0_2], %3 {strides = array<i32>} : memref<16x32xf32, #tpu.memory_space<vmem>>, vector<1x32xf32>,
    %c1 = arith.constant 1 : index
    %5 = memref.load %arg0[%c1] : memref<16xi32, #tpu.memory_space<smem>>
    %c16_i32_3 = arith.constant 16 : i32
    %6 = arith.addi %5, %c16_i32_3 : i32
    %7 = arith.index_cast %6 : i32 to index
    %c0_4 = arith.constant 0 : index
    %8 = vector.load %arg2[%7, %c0_4] : memref<116x32xf32, #tpu.memory_space<vmem>>, vector<1x32xf32>
    %c1_5 = arith.constant 1 : index
    %c0_6 = arith.constant 0 : index
    %9 = vector.load %arg8[%c1_5, %c0_6] : memref<16x32xf32, #tpu.memory_space<vmem>>, vector<1x32xf32>
    tpu.vector_store %arg8[%c1_5, %c0_6], %8 {strides = array<i32>} : memref<16x32xf32, #tpu.memory_space<vmem>>, vector<1x32xf32>,
    %c2 = arith.constant 2 : index
    %10 = memref.load %arg0[%c2] : memref<16xi32, #tpu.memory_space<smem>>
    %c16_i32_7 = arith.constant 16 : i32
    %11 = arith.addi %10, %c16_i32_7 : i32
    %12 = arith.index_cast %11 : i32 to index
    %c0_8 = arith.constant 0 : index
    %13 = vector.load %arg2[%12, %c0_8] : memref<116x32xf32, #tpu.memory_space<vmem>>, vector<1x32xf32>
    %c2_9 = arith.constant 2 : index
    %c0_10 = arith.constant 0 : index
    %14 = vector.load %arg8[%c2_9, %c0_10] : memref<16x32xf32, #tpu.memory_space<vmem>>, vector<1x32xf32>
    tpu.vector_store %arg8[%c2_9, %c0_10], %13 {strides = array<i32>} : memref<16x32xf32, #tpu.memory_space<vmem>>, vector<1x32xf32>,
    %c3 = arith.constant 3 : index
    %15 = memref.load %arg0[%c3] : memref<16xi32, #tpu.memory_space<smem>>
    %c16_i32_11 = arith.constant 16 : i32
    %16 = arith.addi %15, %c16_i32_11 : i32
    %17 = arith.index_cast %16 : i32 to index
    %c0_12 = arith.constant 0 : index
    %18 = vector.load %arg2[%17, %c0_12] : memref<116x32xf32, #tpu.memory_space<vmem>>, vector<1x32xf32>
    %c3_13 = arith.constant 3 : index
    %c0_14 = arith.constant 0 : index
    %19 = vector.load %arg8[%c3_13, %c0_14] : memref<16x32xf32, #tpu.memory_space<vmem>>, vector<1x32xf32>
    tpu.vector_store %arg8[%c3_13, %c0_14], %18 {strides = array<i32>} : memref<16x32xf32, #tpu.memory_space<vmem>>, vector<1x32xf32>,
    %c4 = arith.constant 4 : index
    %20 = memref.load %arg0[%c4] : memref<16xi32, #tpu.memory_space<smem>>
    %c16_i32_15 = arith.constant 16 : i32
    %21 = arith.addi %20, %c16_i32_15 : i32
    %22 = arith.index_cast %21 : i32 to index
    %c0_16 = arith.constant 0 : index
    %23 = vector.load %arg2[%22, %c0_16] : memref<116x32xf32, #tpu.memory_space<vmem>>, vector<1x32xf32>
    %c4_17 = arith.constant 4 : index
    %c0_18 = arith.constant 0 : index
    %24 = vector.load %arg8[%c4_17, %c0_18] : memref<16x32xf32, #tpu.memory_space<vmem>>, vector<1x32xf32>
    tpu.vector_store %arg8[%c4_17, %c0_18], %23 {strides = array<i32>} : memref<16x32xf32, #tpu.memory_space<vmem>>, vector<1x32xf32>,
    %c5 = arith.constant 5 : index
    %25 = memref.load %arg0[%c5] : memref<16xi32, #tpu.memory_space<smem>>
    %c16_i32_19 = arith.constant 16 : i32
    %26 = arith.addi %25, %c16_i32_19 : i32
    %27 = arith.index_cast %26 : i32 to index
    %c0_20 = arith.constant 0 : index
    %28 = vector.load %arg2[%27, %c0_20] : memref<116x32xf32, #tpu.memory_space<vmem>>, vector<1x32xf32>
    %c5_21 = arith.constant 5 : index
    %c0_22 = arith.constant 0 : index
    %29 = vector.load %arg8[%c5_21, %c0_22] : memref<16x32xf32, #tpu.memory_space<vmem>>, vector<1x32xf32>
    tpu.vector_store %arg8[%c5_21, %c0_22], %28 {strides = array<i32>} : memref<16x32xf32, #tpu.memory_space<vmem>>, vector<1x32xf32>,
    %c6 = arith.constant 6 : index
    %30 = memref.load %arg0[%c6] : memref<16xi32, #tpu.memory_space<smem>>
    %c16_i32_23 = arith.constant 16 : i32
    %31 = arith.addi %30, %c16_i32_23 : i32
    %32 = arith.index_cast %31 : i32 to index
    %c0_24 = arith.constant 0 : index
    %33 = vector.load %arg2[%32, %c0_24] : memref<116x32xf32, #tpu.memory_space<vmem>>, vector<1x32xf32>
    %c6_25 = arith.constant 6 : index
    %c0_26 = arith.constant 0 : index
    %34 = vector.load %arg8[%c6_25, %c0_26] : memref<16x32xf32, #tpu.memory_space<vmem>>, vector<1x32xf32>
    tpu.vector_store %arg8[%c6_25, %c0_26], %33 {strides = array<i32>} : memref<16x32xf32, #tpu.memory_space<vmem>>, vector<1x32xf32>,
    %c7 = arith.constant 7 : index
    %35 = memref.load %arg0[%c7] : memref<16xi32, #tpu.memory_space<smem>>
    %c16_i32_27 = arith.constant 16 : i32
    %36 = arith.addi %35, %c16_i32_27 : i32
    %37 = arith.index_cast %36 : i32 to index
    %c0_28 = arith.constant 0 : index
    %38 = vector.load %arg2[%37, %c0_28] : memref<116x32xf32, #tpu.memory_space<vmem>>, vector<1x32xf32>
    %c7_29 = arith.constant 7 : index
    %c0_30 = arith.constant 0 : index
    %39 = vector.load %arg8[%c7_29, %c0_30] : memref<16x32xf32, #tpu.memory_space<vmem>>, vector<1x32xf32>
    tpu.vector_store %arg8[%c7_29, %c0_30], %38 {strides = array<i32>} : memref<16x32xf32, #tpu.memory_space<vmem>>, vector<1x32xf32>,
    %c8 = arith.constant 8 : index
    %40 = memref.load %arg0[%c8] : memref<16xi32, #tpu.memory_space<smem>>
    %c16_i32_31 = arith.constant 16 : i32
    %41 = arith.addi %40, %c16_i32_31 : i32
    %42 = arith.index_cast %41 : i32 to index
    %c0_32 = arith.constant 0 : index
    %43 = vector.load %arg2[%42, %c0_32] : memref<116x32xf32, #tpu.memory_space<vmem>>, vector<1x32xf32>
    %c8_33 = arith.constant 8 : index
    %c0_34 = arith.constant 0 : index
    %44 = vector.load %arg8[%c8_33, %c0_34] : memref<16x32xf32, #tpu.memory_space<vmem>>, vector<1x32xf32>
    tpu.vector_store %arg8[%c8_33, %c0_34], %43 {strides = array<i32>} : memref<16x32xf32, #tpu.memory_space<vmem>>, vector<1x32xf32>,
    %c9 = arith.constant 9 : index
    %45 = memref.load %arg0[%c9] : memref<16xi32, #tpu.memory_space<smem>>
    %c16_i32_35 = arith.constant 16 : i32
    %46 = arith.addi %45, %c16_i32_35 : i32
    %47 = arith.index_cast %46 : i32 to index
    %c0_36 = arith.constant 0 : index
    %48 = vector.load %arg2[%47, %c0_36] : memref<116x32xf32, #tpu.memory_space<vmem>>, vector<1x32xf32>
    %c9_37 = arith.constant 9 : index
    %c0_38 = arith.constant 0 : index
    %49 = vector.load %arg8[%c9_37, %c0_38] : memref<16x32xf32, #tpu.memory_space<vmem>>, vector<1x32xf32>
    tpu.vector_store %arg8[%c9_37, %c0_38], %48 {strides = array<i32>} : memref<16x32xf32, #tpu.memory_space<vmem>>, vector<1x32xf32>,
    %c10 = arith.constant 10 : index
    %50 = memref.load %arg0[%c10] : memref<16xi32, #tpu.memory_space<smem>>
    %c16_i32_39 = arith.constant 16 : i32
    %51 = arith.addi %50, %c16_i32_39 : i32
    %52 = arith.index_cast %51 : i32 to index
    %c0_40 = arith.constant 0 : index
    %53 = vector.load %arg2[%52, %c0_40] : memref<116x32xf32, #tpu.memory_space<vmem>>, vector<1x32xf32>
    %c10_41 = arith.constant 10 : index
    %c0_42 = arith.constant 0 : index
    %54 = vector.load %arg8[%c10_41, %c0_42] : memref<16x32xf32, #tpu.memory_space<vmem>>, vector<1x32xf32>
    tpu.vector_store %arg8[%c10_41, %c0_42], %53 {strides = array<i32>} : memref<16x32xf32, #tpu.memory_space<vmem>>, vector<1x32xf32>,
    %c11 = arith.constant 11 : index
    %55 = memref.load %arg0[%c11] : memref<16xi32, #tpu.memory_space<smem>>
    %c16_i32_43 = arith.constant 16 : i32
    %56 = arith.addi %55, %c16_i32_43 : i32
    %57 = arith.index_cast %56 : i32 to index
    %c0_44 = arith.constant 0 : index
    %58 = vector.load %arg2[%57, %c0_44] : memref<116x32xf32, #tpu.memory_space<vmem>>, vector<1x32xf32>
    %c11_45 = arith.constant 11 : index
    %c0_46 = arith.constant 0 : index
    %59 = vector.load %arg8[%c11_45, %c0_46] : memref<16x32xf32, #tpu.memory_space<vmem>>, vector<1x32xf32>
    tpu.vector_store %arg8[%c11_45, %c0_46], %58 {strides = array<i32>} : memref<16x32xf32, #tpu.memory_space<vmem>>, vector<1x32xf32>,
    %c12 = arith.constant 12 : index
    %60 = memref.load %arg0[%c12] : memref<16xi32, #tpu.memory_space<smem>>
    %c16_i32_47 = arith.constant 16 : i32
    %61 = arith.addi %60, %c16_i32_47 : i32
    %62 = arith.index_cast %61 : i32 to index
    %c0_48 = arith.constant 0 : index
    %63 = vector.load %arg2[%62, %c0_48] : memref<116x32xf32, #tpu.memory_space<vmem>>, vector<1x32xf32>
    %c12_49 = arith.constant 12 : index
    %c0_50 = arith.constant 0 : index
    %64 = vector.load %arg8[%c12_49, %c0_50] : memref<16x32xf32, #tpu.memory_space<vmem>>, vector<1x32xf32>
    tpu.vector_store %arg8[%c12_49, %c0_50], %63 {strides = array<i32>} : memref<16x32xf32, #tpu.memory_space<vmem>>, vector<1x32xf32>,
    %c13 = arith.constant 13 : index
    %65 = memref.load %arg0[%c13] : memref<16xi32, #tpu.memory_space<smem>>
    %c16_i32_51 = arith.constant 16 : i32
    %66 = arith.addi %65, %c16_i32_51 : i32
    %67 = arith.index_cast %66 : i32 to index
    %c0_52 = arith.constant 0 : index
    %68 = vector.load %arg2[%67, %c0_52] : memref<116x32xf32, #tpu.memory_space<vmem>>, vector<1x32xf32>
    %c13_53 = arith.constant 13 : index
    %c0_54 = arith.constant 0 : index
    %69 = vector.load %arg8[%c13_53, %c0_54] : memref<16x32xf32, #tpu.memory_space<vmem>>, vector<1x32xf32>
    tpu.vector_store %arg8[%c13_53, %c0_54], %68 {strides = array<i32>} : memref<16x32xf32, #tpu.memory_space<vmem>>, vector<1x32xf32>,
    %c14 = arith.constant 14 : index
    %70 = memref.load %arg0[%c14] : memref<16xi32, #tpu.memory_space<smem>>
    %c16_i32_55 = arith.constant 16 : i32
    %71 = arith.addi %70, %c16_i32_55 : i32
    %72 = arith.index_cast %71 : i32 to index
    %c0_56 = arith.constant 0 : index
    %73 = vector.load %arg2[%72, %c0_56] : memref<116x32xf32, #tpu.memory_space<vmem>>, vector<1x32xf32>
    %c14_57 = arith.constant 14 : index
    %c0_58 = arith.constant 0 : index
    %74 = vector.load %arg8[%c14_57, %c0_58] : memref<16x32xf32, #tpu.memory_space<vmem>>, vector<1x32xf32>
    tpu.vector_store %arg8[%c14_57, %c0_58], %73 {strides = array<i32>} : memref<16x32xf32, #tpu.memory_space<vmem>>, vector<1x32xf32>,
    %c15 = arith.constant 15 : index
    %75 = memref.load %arg0[%c15] : memref<16xi32, #tpu.memory_space<smem>>
    %c16_i32_59 = arith.constant 16 : i32
    %76 = arith.addi %75, %c16_i32_59 : i32
    %77 = arith.index_cast %76 : i32 to index
    %c0_60 = arith.constant 0 : index
    %78 = vector.load %arg2[%77, %c0_60] : memref<116x32xf32, #tpu.memory_space<vmem>>, vector<1x32xf32>
    %c15_61 = arith.constant 15 : index
    %c0_62 = arith.constant 0 : index
    %79 = vector.load %arg8[%c15_61, %c0_62] : memref<16x32xf32, #tpu.memory_space<vmem>>, vector<1x32xf32>
    tpu.vector_store %arg8[%c15_61, %c0_62], %78 {strides = array<i32>} : memref<16x32xf32, #tpu.memory_space<vmem>>, vector<1x32xf32>,
    %c0_63 = arith.constant 0 : index
    %c0_64 = arith.constant 0 : index
    %80 = vector.load %arg2[%c0_63, %c0_64] : memref<116x32xf32, #tpu.memory_space<vmem>>, vector<8x32xf32>
    %81 = tpu.concatenate %80, %80 in 0 : vector<8x32xf32>, vector<8x32xf32> -> vector<16x32xf32>
    %c0_65 = arith.constant 0 : index
    %c0_66 = arith.constant 0 : index
    %82 = vector.load %arg8[%c0_65, %c0_66] : memref<16x32xf32, #tpu.memory_space<vmem>>, vector<16x32xf32>
    %83 = arith.addf %82, %81 : vector<16x32xf32>
    %c0_67 = arith.constant 0 : index
    %c0_68 = arith.constant 0 : index
    %84 = vector.load %arg6[%c0_67, %c0_68] : memref<20x256xf32, #tpu.memory_space<vmem>>, vector<1x32xf32>
    %c1_69 = arith.constant 1 : index
    %c0_70 = arith.constant 0 : index
    %85 = vector.load %arg6[%c1_69, %c0_70] : memref<20x256xf32, #tpu.memory_space<vmem>>, vector<1x32xf32>
    %cst = arith.constant dense<0.000000e+00> : vector<16xf32>
    %86 = vector.multi_reduction <add>, %83, %cst [1] : vector<16x32xf32> to vector<16xf32>
    %87 = vector.shape_cast %86 : vector<16xf32> to vector<16x1xf32>
    %cst_71 = arith.constant 3.200000e+01 : f32
    %88 = vector.broadcast %cst_71 : f32 to vector<16x1xf32>
    %89 = arith.divf %87, %88 : vector<16x1xf32>
    %90 = vector.broadcast %89 : vector<16x1xf32> to vector<16x32xf32>
    %91 = arith.subf %83, %90 : vector<16x32xf32>
    %92 = arith.mulf %91, %91 : vector<16x32xf32>
    %cst_72 = arith.constant dense<0.000000e+00> : vector<16xf32>
    %93 = vector.multi_reduction <add>, %92, %cst_72 [1] : vector<16x32xf32> to vector<16xf32>
    %94 = vector.shape_cast %93 : vector<16xf32> to vector<16x1xf32>
    %cst_73 = arith.constant 3.200000e+01 : f32
    %95 = vector.broadcast %cst_73 : f32 to vector<16x1xf32>
    %96 = arith.divf %94, %95 : vector<16x1xf32>
    %97 = vector.broadcast %89 : vector<16x1xf32> to vector<16x32xf32>
    %98 = arith.subf %83, %97 : vector<16x32xf32>
    %cst_74 = arith.constant 9.99999996E-13 : f32
    %99 = vector.broadcast %cst_74 : f32 to vector<16x1xf32>
    %100 = arith.addf %96, %99 : vector<16x1xf32>
    %101 = math.rsqrt %100 : vector<16x1xf32>
    %102 = vector.broadcast %101 : vector<16x1xf32> to vector<16x32xf32>
    %103 = arith.mulf %98, %102 : vector<16x32xf32>
    %104 = vector.broadcast %84 : vector<1x32xf32> to vector<16x32xf32>
    %105 = arith.mulf %103, %104 : vector<16x32xf32>
    %106 = vector.broadcast %85 : vector<1x32xf32> to vector<16x32xf32>
    %107 = arith.addf %105, %106 : vector<16x32xf32>
    %108 = tpu.iota {dimensions = array<i32: 0>} : vector<16x16xi32>
    %109 = tpu.iota {dimensions = array<i32: 1>} : vector<16x16xi32>
    %c0_i32 = arith.constant 0 : i32
    %110 = vector.broadcast %c0_i32 : i32 to vector<16x16xi32>
    %111 = arith.cmpi sge, %108, %110 : vector<16x16xi32>
    %c8_i32 = arith.constant 8 : i32
    %112 = vector.broadcast %c8_i32 : i32 to vector<16x16xi32>
    %113 = arith.cmpi slt, %108, %112 : vector<16x16xi32>
    %114 = arith.andi %111, %113 : vector<16x16xi1>
    %c0_i32_75 = arith.constant 0 : i32
    %115 = vector.broadcast %c0_i32_75 : i32 to vector<16x16xi32>
    %116 = arith.cmpi sge, %109, %115 : vector<16x16xi32>
    %c8_i32_76 = arith.constant 8 : i32
    %117 = vector.broadcast %c8_i32_76 : i32 to vector<16x16xi32>
    %118 = arith.cmpi slt, %109, %117 : vector<16x16xi32>
    %119 = arith.andi %116, %118 : vector<16x16xi1>
    %120 = arith.andi %114, %119 : vector<16x16xi1>
    %c8_i32_77 = arith.constant 8 : i32
    %121 = vector.broadcast %c8_i32_77 : i32 to vector<16x16xi32>
    %122 = arith.cmpi sge, %108, %121 : vector<16x16xi32>
    %c16_i32_78 = arith.constant 16 : i32
    %123 = vector.broadcast %c16_i32_78 : i32 to vector<16x16xi32>
    %124 = arith.cmpi slt, %108, %123 : vector<16x16xi32>
    %125 = arith.andi %122, %124 : vector<16x16xi1>
    %c8_i32_79 = arith.constant 8 : i32
    %126 = vector.broadcast %c8_i32_79 : i32 to vector<16x16xi32>
    %127 = arith.cmpi sge, %109, %126 : vector<16x16xi32>
    %c16_i32_80 = arith.constant 16 : i32
    %128 = vector.broadcast %c16_i32_80 : i32 to vector<16x16xi32>
    %129 = arith.cmpi slt, %109, %128 : vector<16x16xi32>
    %130 = arith.andi %127, %129 : vector<16x16xi1>
    %131 = arith.andi %125, %130 : vector<16x16xi1>
    %132 = arith.ori %120, %131 : vector<16x16xi1>
    %133 = tpu.iota {dimensions = array<i32: 1>} : vector<1x16xi32>
    %cst_81 = arith.constant 0.000000e+00 : f32
    %134 = vector.broadcast %cst_81 : f32 to vector<1x16xf32>
    %c0_i32_82 = arith.constant 0 : i32
    %135 = vector.broadcast %c0_i32_82 : i32 to vector<1x16xi32>
    %136 = arith.cmpi eq, %133, %135 : vector<1x16xi32>
    %c0_83 = arith.constant 0 : index
    %137 = memref.load %arg1[%c0_83] : memref<16xi32, #tpu.memory_space<smem>>
    %138 = arith.sitofp %137 : i32 to f32
    %139 = vector.broadcast %138 : f32 to vector<1x16xf32>
    %140 = arith.select %136, %139, %134 : vector<1x16xi1>, vector<1x16xf32>
    %c1_i32 = arith.constant 1 : i32
    %141 = vector.broadcast %c1_i32 : i32 to vector<1x16xi32>
    %142 = arith.cmpi eq, %133, %141 : vector<1x16xi32>
    %c1_84 = arith.constant 1 : index
    %143 = memref.load %arg1[%c1_84] : memref<16xi32, #tpu.memory_space<smem>>
    %144 = arith.sitofp %143 : i32 to f32
    %145 = vector.broadcast %144 : f32 to vector<1x16xf32>
    %146 = arith.select %142, %145, %140 : vector<1x16xi1>, vector<1x16xf32>
    %c2_i32 = arith.constant 2 : i32
    %147 = vector.broadcast %c2_i32 : i32 to vector<1x16xi32>
    %148 = arith.cmpi eq, %133, %147 : vector<1x16xi32>
    %c2_85 = arith.constant 2 : index
    %149 = memref.load %arg1[%c2_85] : memref<16xi32, #tpu.memory_space<smem>>
    %150 = arith.sitofp %149 : i32 to f32
    %151 = vector.broadcast %150 : f32 to vector<1x16xf32>
    %152 = arith.select %148, %151, %146 : vector<1x16xi1>, vector<1x16xf32>
    %c3_i32 = arith.constant 3 : i32
    %153 = vector.broadcast %c3_i32 : i32 to vector<1x16xi32>
    %154 = arith.cmpi eq, %133, %153 : vector<1x16xi32>
    %c3_86 = arith.constant 3 : index
    %155 = memref.load %arg1[%c3_86] : memref<16xi32, #tpu.memory_space<smem>>
    %156 = arith.sitofp %155 : i32 to f32
    %157 = vector.broadcast %156 : f32 to vector<1x16xf32>
    %158 = arith.select %154, %157, %152 : vector<1x16xi1>, vector<1x16xf32>
    %c4_i32 = arith.constant 4 : i32
    %159 = vector.broadcast %c4_i32 : i32 to vector<1x16xi32>
    %160 = arith.cmpi eq, %133, %159 : vector<1x16xi32>
    %c4_87 = arith.constant 4 : index
    %161 = memref.load %arg1[%c4_87] : memref<16xi32, #tpu.memory_space<smem>>
    %162 = arith.sitofp %161 : i32 to f32
    %163 = vector.broadcast %162 : f32 to vector<1x16xf32>
    %164 = arith.select %160, %163, %158 : vector<1x16xi1>, vector<1x16xf32>
    %c5_i32 = arith.constant 5 : i32
    %165 = vector.broadcast %c5_i32 : i32 to vector<1x16xi32>
    %166 = arith.cmpi eq, %133, %165 : vector<1x16xi32>
    %c5_88 = arith.constant 5 : index
    %167 = memref.load %arg1[%c5_88] : memref<16xi32, #tpu.memory_space<smem>>
    %168 = arith.sitofp %167 : i32 to f32
    %169 = vector.broadcast %168 : f32 to vector<1x16xf32>
    %170 = arith.select %166, %169, %164 : vector<1x16xi1>, vector<1x16xf32>
    %c6_i32 = arith.constant 6 : i32
    %171 = vector.broadcast %c6_i32 : i32 to vector<1x16xi32>
    %172 = arith.cmpi eq, %133, %171 : vector<1x16xi32>
    %c6_89 = arith.constant 6 : index
    %173 = memref.load %arg1[%c6_89] : memref<16xi32, #tpu.memory_space<smem>>
    %174 = arith.sitofp %173 : i32 to f32
    %175 = vector.broadcast %174 : f32 to vector<1x16xf32>
    %176 = arith.select %172, %175, %170 : vector<1x16xi1>, vector<1x16xf32>
    %c7_i32 = arith.constant 7 : i32
    %177 = vector.broadcast %c7_i32 : i32 to vector<1x16xi32>
    %178 = arith.cmpi eq, %133, %177 : vector<1x16xi32>
    %c7_90 = arith.constant 7 : index
    %179 = memref.load %arg1[%c7_90] : memref<16xi32, #tpu.memory_space<smem>>
    %180 = arith.sitofp %179 : i32 to f32
    %181 = vector.broadcast %180 : f32 to vector<1x16xf32>
    %182 = arith.select %178, %181, %176 : vector<1x16xi1>, vector<1x16xf32>
    %c8_i32_91 = arith.constant 8 : i32
    %183 = vector.broadcast %c8_i32_91 : i32 to vector<1x16xi32>
    %184 = arith.cmpi eq, %133, %183 : vector<1x16xi32>
    %c8_92 = arith.constant 8 : index
    %185 = memref.load %arg1[%c8_92] : memref<16xi32, #tpu.memory_space<smem>>
    %186 = arith.sitofp %185 : i32 to f32
    %187 = vector.broadcast %186 : f32 to vector<1x16xf32>
    %188 = arith.select %184, %187, %182 : vector<1x16xi1>, vector<1x16xf32>
    %c9_i32 = arith.constant 9 : i32
    %189 = vector.broadcast %c9_i32 : i32 to vector<1x16xi32>
    %190 = arith.cmpi eq, %133, %189 : vector<1x16xi32>
    %c9_93 = arith.constant 9 : index
    %191 = memref.load %arg1[%c9_93] : memref<16xi32, #tpu.memory_space<smem>>
    %192 = arith.sitofp %191 : i32 to f32
    %193 = vector.broadcast %192 : f32 to vector<1x16xf32>
    %194 = arith.select %190, %193, %188 : vector<1x16xi1>, vector<1x16xf32>
    %c10_i32 = arith.constant 10 : i32
    %195 = vector.broadcast %c10_i32 : i32 to vector<1x16xi32>
    %196 = arith.cmpi eq, %133, %195 : vector<1x16xi32>
    %c10_94 = arith.constant 10 : index
    %197 = memref.load %arg1[%c10_94] : memref<16xi32, #tpu.memory_space<smem>>
    %198 = arith.sitofp %197 : i32 to f32
    %199 = vector.broadcast %198 : f32 to vector<1x16xf32>
    %200 = arith.select %196, %199, %194 : vector<1x16xi1>, vector<1x16xf32>
    %c11_i32 = arith.constant 11 : i32
    %201 = vector.broadcast %c11_i32 : i32 to vector<1x16xi32>
    %202 = arith.cmpi eq, %133, %201 : vector<1x16xi32>
    %c11_95 = arith.constant 11 : index
    %203 = memref.load %arg1[%c11_95] : memref<16xi32, #tpu.memory_space<smem>>
    %204 = arith.sitofp %203 : i32 to f32
    %205 = vector.broadcast %204 : f32 to vector<1x16xf32>
    %206 = arith.select %202, %205, %200 : vector<1x16xi1>, vector<1x16xf32>
    %c12_i32 = arith.constant 12 : i32
    %207 = vector.broadcast %c12_i32 : i32 to vector<1x16xi32>
    %208 = arith.cmpi eq, %133, %207 : vector<1x16xi32>
    %c12_96 = arith.constant 12 : index
    %209 = memref.load %arg1[%c12_96] : memref<16xi32, #tpu.memory_space<smem>>
    %210 = arith.sitofp %209 : i32 to f32
    %211 = vector.broadcast %210 : f32 to vector<1x16xf32>
    %212 = arith.select %208, %211, %206 : vector<1x16xi1>, vector<1x16xf32>
    %c13_i32 = arith.constant 13 : i32
    %213 = vector.broadcast %c13_i32 : i32 to vector<1x16xi32>
    %214 = arith.cmpi eq, %133, %213 : vector<1x16xi32>
    %c13_97 = arith.constant 13 : index
    %215 = memref.load %arg1[%c13_97] : memref<16xi32, #tpu.memory_space<smem>>
    %216 = arith.sitofp %215 : i32 to f32
    %217 = vector.broadcast %216 : f32 to vector<1x16xf32>
    %218 = arith.select %214, %217, %212 : vector<1x16xi1>, vector<1x16xf32>
    %c14_i32 = arith.constant 14 : i32
    %219 = vector.broadcast %c14_i32 : i32 to vector<1x16xi32>
    %220 = arith.cmpi eq, %133, %219 : vector<1x16xi32>
    %c14_98 = arith.constant 14 : index
    %221 = memref.load %arg1[%c14_98] : memref<16xi32, #tpu.memory_space<smem>>
    %222 = arith.sitofp %221 : i32 to f32
    %223 = vector.broadcast %222 : f32 to vector<1x16xf32>
    %224 = arith.select %220, %223, %218 : vector<1x16xi1>, vector<1x16xf32>
    %c15_i32 = arith.constant 15 : i32
    %225 = vector.broadcast %c15_i32 : i32 to vector<1x16xi32>
    %226 = arith.cmpi eq, %133, %225 : vector<1x16xi32>
    %c15_99 = arith.constant 15 : index
    %227 = memref.load %arg1[%c15_99] : memref<16xi32, #tpu.memory_space<smem>>
    %228 = arith.sitofp %227 : i32 to f32
    %229 = vector.broadcast %228 : f32 to vector<1x16xf32>
    %230 = arith.select %226, %229, %224 : vector<1x16xi1>, vector<1x16xf32>
    %cst_100 = arith.constant 0.000000e+00 : f32
    %231 = vector.broadcast %cst_100 : f32 to vector<1x16xf32>
    %232 = arith.cmpf ogt, %230, %231 : vector<1x16xf32>
    %233 = vector.broadcast %232 : vector<1x16xi1> to vector<16x16xi1>
    %234 = arith.andi %132, %233 : vector<16x16xi1>
    %cst_101 = arith.constant 0.000000e+00 : f32
    %cst_102 = arith.constant -1.000000e+30 : f32
    %235 = vector.broadcast %cst_101 : f32 to vector<16x16xf32>
    %236 = vector.broadcast %cst_102 : f32 to vector<16x16xf32>
    %237 = arith.select %234, %235, %236 : vector<16x16xi1>, vector<16x16xf32>
    %c0_103 = arith.constant 0 : index
    %c0_104 = arith.constant 0 : index
    %c0_105 = arith.constant 0 : index
    %238 = vector.load %arg3[%c0_103, %c0_104, %c0_105] : memref<2x32x192xf32, #tpu.memory_space<vmem>>, vector<1x32x96xf32>
    %239 = vector.shape_cast %238 : vector<1x32x96xf32> to vector<32x96xf32>
    %c0_106 = arith.constant 0 : index
    %c0_107 = arith.constant 0 : index
    %c96 = arith.constant 96 : index
    %240 = vector.load %arg3[%c0_106, %c0_107, %c96] : memref<2x32x192xf32, #tpu.memory_space<vmem>>, vector<1x32x32xf32>
    %241 = vector.shape_cast %240 : vector<1x32x32xf32> to vector<32x32xf32>
    %c0_108 = arith.constant 0 : index
    %c0_109 = arith.constant 0 : index
    %c128 = arith.constant 128 : index
    %242 = vector.load %arg3[%c0_108, %c0_109, %c128] : memref<2x32x192xf32, #tpu.memory_space<vmem>>, vector<1x32x64xf32>
    %243 = vector.shape_cast %242 : vector<1x32x64xf32> to vector<32x64xf32>
    %cst_110 = arith.constant dense<0.000000e+00> : vector<16x96xf32>
    %244 = tpu.matmul %107, %239, %cst_110 {dimension_numbers = #tpu.dot_dimension_numbers<[1], [0], [0], [1], [0, 0, 1, 1], [], []>} : vector<16x32xf32>, vector<32x96xf32>, vector<16x96xf32> -> vector<16x96xf32>
    %c4_111 = arith.constant 4 : index
    %c0_112 = arith.constant 0 : index
    %245 = vector.load %arg6[%c4_111, %c0_112] : memref<20x256xf32, #tpu.memory_space<vmem>>, vector<1x96xf32>
    %246 = vector.broadcast %245 : vector<1x96xf32> to vector<16x96xf32>
    %247 = arith.addf %244, %246 : vector<16x96xf32>
    %248 = vector.extract_strided_slice %247 {offsets = [0, 0], sizes = [16, 32], strides = [1, 1]} : vector<16x96xf32> to vector<16x32xf32>
    %cst_113 = arith.constant 0.353553385 : f32
    %249 = vector.broadcast %cst_113 : f32 to vector<16x32xf32>
    %250 = arith.mulf %248, %249 : vector<16x32xf32>
    %251 = vector.extract_strided_slice %247 {offsets = [0, 32], sizes = [16, 32], strides = [1, 1]} : vector<16x96xf32> to vector<16x32xf32>
    %252 = tpu.transpose %251, [1, 0] : vector<16x32xf32> -> vector<32x16xf32>
    %253 = vector.extract_strided_slice %250 {offsets = [0, 0], sizes = [16, 8], strides = [1, 1]} : vector<16x32xf32> to vector<16x8xf32>
    %254 = vector.extract_strided_slice %252 {offsets = [0, 0], sizes = [8, 16], strides = [1, 1]} : vector<32x16xf32> to vector<8x16xf32>
    %cst_114 = arith.constant dense<0.000000e+00> : vector<16x16xf32>
    %255 = tpu.matmul %253, %254, %cst_114 {dimension_numbers = #tpu.dot_dimension_numbers<[1], [0], [0], [1], [0, 0, 1, 1], [], []>} : vector<16x8xf32>, vector<8x16xf32>, vector<16x16xf32> -> vector<16x16xf32>
    %256 = arith.addf %255, %237 : vector<16x16xf32>
    %cst_115 = arith.constant dense<0xFF800000> : vector<16xf32>
    %257 = vector.multi_reduction <maximumf>, %256, %cst_115 [1] : vector<16x16xf32> to vector<16xf32>
    %258 = vector.shape_cast %257 : vector<16xf32> to vector<16x1xf32>
    %259 = vector.broadcast %258 : vector<16x1xf32> to vector<16x16xf32>
    %260 = arith.subf %256, %259 : vector<16x16xf32>
    %261 = math.exp %260 : vector<16x16xf32>
    %cst_116 = arith.constant dense<0.000000e+00> : vector<16xf32>
    %262 = vector.multi_reduction <add>, %261, %cst_116 [1] : vector<16x16xf32> to vector<16xf32>
    %263 = vector.shape_cast %262 : vector<16xf32> to vector<16x1xf32>
    %264 = tpu.reciprocal %263 {approx = true} : vector<16x1xf32> -> vector<16x1xf32>
    %265 = vector.broadcast %264 : vector<16x1xf32> to vector<16x16xf32>
    %266 = arith.mulf %261, %265 : vector<16x16xf32>
    %267 = vector.extract_strided_slice %247 {offsets = [0, 64], sizes = [16, 8], strides = [1, 1]} : vector<16x96xf32> to vector<16x8xf32>
    %cst_117 = arith.constant dense<0.000000e+00> : vector<16x8xf32>
    %268 = tpu.matmul %266, %267, %cst_117 {dimension_numbers = #tpu.dot_dimension_numbers<[1], [0], [0], [1], [0, 0, 1, 1], [], []>} : vector<16x16xf32>, vector<16x8xf32>, vector<16x8xf32> -> vector<16x8xf32>
    %269 = vector.extract_strided_slice %250 {offsets = [0, 8], sizes = [16, 8], strides = [1, 1]} : vector<16x32xf32> to vector<16x8xf32>
    %270 = vector.extract_strided_slice %252 {offsets = [8, 0], sizes = [8, 16], strides = [1, 1]} : vector<32x16xf32> to vector<8x16xf32>
    %cst_118 = arith.constant dense<0.000000e+00> : vector<16x16xf32>
    %271 = tpu.matmul %269, %270, %cst_118 {dimension_numbers = #tpu.dot_dimension_numbers<[1], [0], [0], [1], [0, 0, 1, 1], [], []>} : vector<16x8xf32>, vector<8x16xf32>, vector<16x16xf32> -> vector<16x16xf32>
    %272 = arith.addf %271, %237 : vector<16x16xf32>
    %cst_119 = arith.constant dense<0xFF800000> : vector<16xf32>
    %273 = vector.multi_reduction <maximumf>, %272, %cst_119 [1] : vector<16x16xf32> to vector<16xf32>
    %274 = vector.shape_cast %273 : vector<16xf32> to vector<16x1xf32>
    %275 = vector.broadcast %274 : vector<16x1xf32> to vector<16x16xf32>
    %276 = arith.subf %272, %275 : vector<16x16xf32>
    %277 = math.exp %276 : vector<16x16xf32>
    %cst_120 = arith.constant dense<0.000000e+00> : vector<16xf32>
    %278 = vector.multi_reduction <add>, %277, %cst_120 [1] : vector<16x16xf32> to vector<16xf32>
    %279 = vector.shape_cast %278 : vector<16xf32> to vector<16x1xf32>
    %280 = tpu.reciprocal %279 {approx = true} : vector<16x1xf32> -> vector<16x1xf32>
    %281 = vector.broadcast %280 : vector<16x1xf32> to vector<16x16xf32>
    %282 = arith.mulf %277, %281 : vector<16x16xf32>
    %283 = vector.extract_strided_slice %247 {offsets = [0, 72], sizes = [16, 8], strides = [1, 1]} : vector<16x96xf32> to vector<16x8xf32>
    %cst_121 = arith.constant dense<0.000000e+00> : vector<16x8xf32>
    %284 = tpu.matmul %282, %283, %cst_121 {dimension_numbers = #tpu.dot_dimension_numbers<[1], [0], [0], [1], [0, 0, 1, 1], [], []>} : vector<16x16xf32>, vector<16x8xf32>, vector<16x8xf32> -> vector<16x8xf32>
    %285 = vector.extract_strided_slice %250 {offsets = [0, 16], sizes = [16, 8], strides = [1, 1]} : vector<16x32xf32> to vector<16x8xf32>
    %286 = vector.extract_strided_slice %252 {offsets = [16, 0], sizes = [8, 16], strides = [1, 1]} : vector<32x16xf32> to vector<8x16xf32>
    %cst_122 = arith.constant dense<0.000000e+00> : vector<16x16xf32>
    %287 = tpu.matmul %285, %286, %cst_122 {dimension_numbers = #tpu.dot_dimension_numbers<[1], [0], [0], [1], [0, 0, 1, 1], [], []>} : vector<16x8xf32>, vector<8x16xf32>, vector<16x16xf32> -> vector<16x16xf32>
    %288 = arith.addf %287, %237 : vector<16x16xf32>
    %cst_123 = arith.constant dense<0xFF800000> : vector<16xf32>
    %289 = vector.multi_reduction <maximumf>, %288, %cst_123 [1] : vector<16x16xf32> to vector<16xf32>
    %290 = vector.shape_cast %289 : vector<16xf32> to vector<16x1xf32>
    %291 = vector.broadcast %290 : vector<16x1xf32> to vector<16x16xf32>
    %292 = arith.subf %288, %291 : vector<16x16xf32>
    %293 = math.exp %292 : vector<16x16xf32>
    %cst_124 = arith.constant dense<0.000000e+00> : vector<16xf32>
    %294 = vector.multi_reduction <add>, %293, %cst_124 [1] : vector<16x16xf32> to vector<16xf32>
    %295 = vector.shape_cast %294 : vector<16xf32> to vector<16x1xf32>
    %296 = tpu.reciprocal %295 {approx = true} : vector<16x1xf32> -> vector<16x1xf32>
    %297 = vector.broadcast %296 : vector<16x1xf32> to vector<16x16xf32>
    %298 = arith.mulf %293, %297 : vector<16x16xf32>
    %299 = vector.extract_strided_slice %247 {offsets = [0, 80], sizes = [16, 8], strides = [1, 1]} : vector<16x96xf32> to vector<16x8xf32>
    %cst_125 = arith.constant dense<0.000000e+00> : vector<16x8xf32>
    %300 = tpu.matmul %298, %299, %cst_125 {dimension_numbers = #tpu.dot_dimension_numbers<[1], [0], [0], [1], [0, 0, 1, 1], [], []>} : vector<16x16xf32>, vector<16x8xf32>, vector<16x8xf32> -> vector<16x8xf32>
    %301 = vector.extract_strided_slice %250 {offsets = [0, 24], sizes = [16, 8], strides = [1, 1]} : vector<16x32xf32> to vector<16x8xf32>
    %302 = vector.extract_strided_slice %252 {offsets = [24, 0], sizes = [8, 16], strides = [1, 1]} : vector<32x16xf32> to vector<8x16xf32>
    %cst_126 = arith.constant dense<0.000000e+00> : vector<16x16xf32>
    %303 = tpu.matmul %301, %302, %cst_126 {dimension_numbers = #tpu.dot_dimension_numbers<[1], [0], [0], [1], [0, 0, 1, 1], [], []>} : vector<16x8xf32>, vector<8x16xf32>, vector<16x16xf32> -> vector<16x16xf32>
    %304 = arith.addf %303, %237 : vector<16x16xf32>
    %cst_127 = arith.constant dense<0xFF800000> : vector<16xf32>
    %305 = vector.multi_reduction <maximumf>, %304, %cst_127 [1] : vector<16x16xf32> to vector<16xf32>
    %306 = vector.shape_cast %305 : vector<16xf32> to vector<16x1xf32>
    %307 = vector.broadcast %306 : vector<16x1xf32> to vector<16x16xf32>
    %308 = arith.subf %304, %307 : vector<16x16xf32>
    %309 = math.exp %308 : vector<16x16xf32>
    %cst_128 = arith.constant dense<0.000000e+00> : vector<16xf32>
    %310 = vector.multi_reduction <add>, %309, %cst_128 [1] : vector<16x16xf32> to vector<16xf32>
    %311 = vector.shape_cast %310 : vector<16xf32> to vector<16x1xf32>
    %312 = tpu.reciprocal %311 {approx = true} : vector<16x1xf32> -> vector<16x1xf32>
    %313 = vector.broadcast %312 : vector<16x1xf32> to vector<16x16xf32>
    %314 = arith.mulf %309, %313 : vector<16x16xf32>
    %315 = vector.extract_strided_slice %247 {offsets = [0, 88], sizes = [16, 8], strides = [1, 1]} : vector<16x96xf32> to vector<16x8xf32>
    %cst_129 = arith.constant dense<0.000000e+00> : vector<16x8xf32>
    %316 = tpu.matmul %314, %315, %cst_129 {dimension_numbers = #tpu.dot_dimension_numbers<[1], [0], [0], [1], [0, 0, 1, 1], [], []>} : vector<16x16xf32>, vector<16x8xf32>, vector<16x8xf32> -> vector<16x8xf32>
    %317 = tpu.concatenate %268, %284, %300, %316 in 1 : vector<16x8xf32>, vector<16x8xf32>, vector<16x8xf32>, vector<16x8xf32> -> vector<16x32xf32>
    %cst_130 = arith.constant dense<0.000000e+00> : vector<16x32xf32>
    %318 = tpu.matmul %317, %241, %cst_130 {dimension_numbers = #tpu.dot_dimension_numbers<[1], [0], [0], [1], [0, 0, 1, 1], [], []>} : vector<16x32xf32>, vector<32x32xf32>, vector<16x32xf32> -> vector<16x32xf32>
    %c5_131 = arith.constant 5 : index
    %c0_132 = arith.constant 0 : index
    %319 = vector.load %arg6[%c5_131, %c0_132] : memref<20x256xf32, #tpu.memory_space<vmem>>, vector<1x32xf32>
    %320 = vector.broadcast %319 : vector<1x32xf32> to vector<16x32xf32>
    %321 = arith.addf %318, %320 : vector<16x32xf32>
    %322 = arith.addf %321, %107 : vector<16x32xf32>
    %c6_133 = arith.constant 6 : index
    %c0_134 = arith.constant 0 : index
    %323 = vector.load %arg6[%c6_133, %c0_134] : memref<20x256xf32, #tpu.memory_space<vmem>>, vector<1x32xf32>
    %c7_135 = arith.constant 7 : index
    %c0_136 = arith.constant 0 : index
    %324 = vector.load %arg6[%c7_135, %c0_136] : memref<20x256xf32, #tpu.memory_space<vmem>>, vector<1x32xf32>
    %cst_137 = arith.constant dense<0.000000e+00> : vector<16xf32>
    %325 = vector.multi_reduction <add>, %322, %cst_137 [1] : vector<16x32xf32> to vector<16xf32>
    %326 = vector.shape_cast %325 : vector<16xf32> to vector<16x1xf32>
    %cst_138 = arith.constant 3.200000e+01 : f32
    %327 = vector.broadcast %cst_138 : f32 to vector<16x1xf32>
    %328 = arith.divf %326, %327 : vector<16x1xf32>
    %329 = vector.broadcast %328 : vector<16x1xf32> to vector<16x32xf32>
    %330 = arith.subf %322, %329 : vector<16x32xf32>
    %331 = arith.mulf %330, %330 : vector<16x32xf32>
    %cst_139 = arith.constant dense<0.000000e+00> : vector<16xf32>
    %332 = vector.multi_reduction <add>, %331, %cst_139 [1] : vector<16x32xf32> to vector<16xf32>
    %333 = vector.shape_cast %332 : vector<16xf32> to vector<16x1xf32>
    %cst_140 = arith.constant 3.200000e+01 : f32
    %334 = vector.broadcast %cst_140 : f32 to vector<16x1xf32>
    %335 = arith.divf %333, %334 : vector<16x1xf32>
    %336 = vector.broadcast %328 : vector<16x1xf32> to vector<16x32xf32>
    %337 = arith.subf %322, %336 : vector<16x32xf32>
    %cst_141 = arith.constant 9.99999996E-13 : f32
    %338 = vector.broadcast %cst_141 : f32 to vector<16x1xf32>
    %339 = arith.addf %335, %338 : vector<16x1xf32>
    %340 = math.rsqrt %339 : vector<16x1xf32>
    %341 = vector.broadcast %340 : vector<16x1xf32> to vector<16x32xf32>
    %342 = arith.mulf %337, %341 : vector<16x32xf32>
    %343 = vector.broadcast %323 : vector<1x32xf32> to vector<16x32xf32>
    %344 = arith.mulf %342, %343 : vector<16x32xf32>
    %345 = vector.broadcast %324 : vector<1x32xf32> to vector<16x32xf32>
    %346 = arith.addf %344, %345 : vector<16x32xf32>
    %cst_142 = arith.constant dense<0.000000e+00> : vector<16x64xf32>
    %347 = tpu.matmul %346, %243, %cst_142 {dimension_numbers = #tpu.dot_dimension_numbers<[1], [0], [0], [1], [0, 0, 1, 1], [], []>} : vector<16x32xf32>, vector<32x64xf32>, vector<16x64xf32> -> vector<16x64xf32>
    %c8_143 = arith.constant 8 : index
    %c0_144 = arith.constant 0 : index
    %348 = vector.load %arg6[%c8_143, %c0_144] : memref<20x256xf32, #tpu.memory_space<vmem>>, vector<1x64xf32>
    %349 = vector.broadcast %348 : vector<1x64xf32> to vector<16x64xf32>
    %350 = arith.addf %347, %349 : vector<16x64xf32>
    %cst_145 = arith.constant 5.000000e-01 : f32
    %351 = vector.broadcast %cst_145 : f32 to vector<16x64xf32>
    %352 = arith.mulf %351, %350 : vector<16x64xf32>
    %cst_146 = arith.constant 4.471500e-02 : f32
    %353 = vector.broadcast %cst_146 : f32 to vector<16x64xf32>
    %354 = arith.mulf %353, %350 : vector<16x64xf32>
    %355 = arith.mulf %354, %350 : vector<16x64xf32>
    %356 = arith.mulf %355, %350 : vector<16x64xf32>
    %357 = arith.addf %350, %356 : vector<16x64xf32>
    %cst_147 = arith.constant 0.797884583 : f32
    %358 = vector.broadcast %cst_147 : f32 to vector<16x64xf32>
    %359 = arith.mulf %358, %357 : vector<16x64xf32>
    %360 = math.tanh %359 : vector<16x64xf32>
    %cst_148 = arith.constant 1.000000e+00 : f32
    %361 = vector.broadcast %cst_148 : f32 to vector<16x64xf32>
    %362 = arith.addf %361, %360 : vector<16x64xf32>
    %363 = arith.mulf %352, %362 : vector<16x64xf32>
    %c0_149 = arith.constant 0 : index
    %c0_150 = arith.constant 0 : index
    %c0_151 = arith.constant 0 : index
    %364 = vector.load %arg4[%c0_149, %c0_150, %c0_151] : memref<2x64x32xf32, #tpu.memory_space<vmem>>, vector<1x64x32xf32>
    %365 = vector.shape_cast %364 : vector<1x64x32xf32> to vector<64x32xf32>
    %cst_152 = arith.constant dense<0.000000e+00> : vector<16x32xf32>
    %366 = tpu.matmul %363, %365, %cst_152 {dimension_numbers = #tpu.dot_dimension_numbers<[1], [0], [0], [1], [0, 0, 1, 1], [], []>} : vector<16x64xf32>, vector<64x32xf32>, vector<16x32xf32> -> vector<16x32xf32>
    %c9_153 = arith.constant 9 : index
    %c0_154 = arith.constant 0 : index
    %367 = vector.load %arg6[%c9_153, %c0_154] : memref<20x256xf32, #tpu.memory_space<vmem>>, vector<1x32xf32>
    %368 = vector.broadcast %367 : vector<1x32xf32> to vector<16x32xf32>
    %369 = arith.addf %366, %368 : vector<16x32xf32>
    %370 = arith.addf %369, %346 : vector<16x32xf32>
    %c10_155 = arith.constant 10 : index
    %c0_156 = arith.constant 0 : index
    %371 = vector.load %arg6[%c10_155, %c0_156] : memref<20x256xf32, #tpu.memory_space<vmem>>, vector<1x32xf32>
    %c11_157 = arith.constant 11 : index
    %c0_158 = arith.constant 0 : index
    %372 = vector.load %arg6[%c11_157, %c0_158] : memref<20x256xf32, #tpu.memory_space<vmem>>, vector<1x32xf32>
    %cst_159 = arith.constant dense<0.000000e+00> : vector<16xf32>
    %373 = vector.multi_reduction <add>, %370, %cst_159 [1] : vector<16x32xf32> to vector<16xf32>
    %374 = vector.shape_cast %373 : vector<16xf32> to vector<16x1xf32>
    %cst_160 = arith.constant 3.200000e+01 : f32
    %375 = vector.broadcast %cst_160 : f32 to vector<16x1xf32>
    %376 = arith.divf %374, %375 : vector<16x1xf32>
    %377 = vector.broadcast %376 : vector<16x1xf32> to vector<16x32xf32>
    %378 = arith.subf %370, %377 : vector<16x32xf32>
    %379 = arith.mulf %378, %378 : vector<16x32xf32>
    %cst_161 = arith.constant dense<0.000000e+00> : vector<16xf32>
    %380 = vector.multi_reduction <add>, %379, %cst_161 [1] : vector<16x32xf32> to vector<16xf32>
    %381 = vector.shape_cast %380 : vector<16xf32> to vector<16x1xf32>
    %cst_162 = arith.constant 3.200000e+01 : f32
    %382 = vector.broadcast %cst_162 : f32 to vector<16x1xf32>
    %383 = arith.divf %381, %382 : vector<16x1xf32>
    %384 = vector.broadcast %376 : vector<16x1xf32> to vector<16x32xf32>
    %385 = arith.subf %370, %384 : vector<16x32xf32>
    %cst_163 = arith.constant 9.99999996E-13 : f32
    %386 = vector.broadcast %cst_163 : f32 to vector<16x1xf32>
    %387 = arith.addf %383, %386 : vector<16x1xf32>
    %388 = math.rsqrt %387 : vector<16x1xf32>
    %389 = vector.broadcast %388 : vector<16x1xf32> to vector<16x32xf32>
    %390 = arith.mulf %385, %389 : vector<16x32xf32>
    %391 = vector.broadcast %371 : vector<1x32xf32> to vector<16x32xf32>
    %392 = arith.mulf %390, %391 : vector<16x32xf32>
    %393 = vector.broadcast %372 : vector<1x32xf32> to vector<16x32xf32>
    %394 = arith.addf %392, %393 : vector<16x32xf32>
    %c1_164 = arith.constant 1 : index
    %c0_165 = arith.constant 0 : index
    %c0_166 = arith.constant 0 : index
    %395 = vector.load %arg3[%c1_164, %c0_165, %c0_166] : memref<2x32x192xf32, #tpu.memory_space<vmem>>, vector<1x32x96xf32>
    %396 = vector.shape_cast %395 : vector<1x32x96xf32> to vector<32x96xf32>
    %c1_167 = arith.constant 1 : index
    %c0_168 = arith.constant 0 : index
    %c96_169 = arith.constant 96 : index
    %397 = vector.load %arg3[%c1_167, %c0_168, %c96_169] : memref<2x32x192xf32, #tpu.memory_space<vmem>>, vector<1x32x32xf32>
    %398 = vector.shape_cast %397 : vector<1x32x32xf32> to vector<32x32xf32>
    %c1_170 = arith.constant 1 : index
    %c0_171 = arith.constant 0 : index
    %c128_172 = arith.constant 128 : index
    %399 = vector.load %arg3[%c1_170, %c0_171, %c128_172] : memref<2x32x192xf32, #tpu.memory_space<vmem>>, vector<1x32x64xf32>
    %400 = vector.shape_cast %399 : vector<1x32x64xf32> to vector<32x64xf32>
    %cst_173 = arith.constant dense<0.000000e+00> : vector<16x96xf32>
    %401 = tpu.matmul %394, %396, %cst_173 {dimension_numbers = #tpu.dot_dimension_numbers<[1], [0], [0], [1], [0, 0, 1, 1], [], []>} : vector<16x32xf32>, vector<32x96xf32>, vector<16x96xf32> -> vector<16x96xf32>
    %c12_174 = arith.constant 12 : index
    %c0_175 = arith.constant 0 : index
    %402 = vector.load %arg6[%c12_174, %c0_175] : memref<20x256xf32, #tpu.memory_space<vmem>>, vector<1x96xf32>
    %403 = vector.broadcast %402 : vector<1x96xf32> to vector<16x96xf32>
    %404 = arith.addf %401, %403 : vector<16x96xf32>
    %405 = vector.extract_strided_slice %404 {offsets = [0, 0], sizes = [16, 32], strides = [1, 1]} : vector<16x96xf32> to vector<16x32xf32>
    %cst_176 = arith.constant 0.353553385 : f32
    %406 = vector.broadcast %cst_176 : f32 to vector<16x32xf32>
    %407 = arith.mulf %405, %406 : vector<16x32xf32>
    %408 = vector.extract_strided_slice %404 {offsets = [0, 32], sizes = [16, 32], strides = [1, 1]} : vector<16x96xf32> to vector<16x32xf32>
    %409 = tpu.transpose %408, [1, 0] : vector<16x32xf32> -> vector<32x16xf32>
    %410 = vector.extract_strided_slice %407 {offsets = [0, 0], sizes = [16, 8], strides = [1, 1]} : vector<16x32xf32> to vector<16x8xf32>
    %411 = vector.extract_strided_slice %409 {offsets = [0, 0], sizes = [8, 16], strides = [1, 1]} : vector<32x16xf32> to vector<8x16xf32>
    %cst_177 = arith.constant dense<0.000000e+00> : vector<16x16xf32>
    %412 = tpu.matmul %410, %411, %cst_177 {dimension_numbers = #tpu.dot_dimension_numbers<[1], [0], [0], [1], [0, 0, 1, 1], [], []>} : vector<16x8xf32>, vector<8x16xf32>, vector<16x16xf32> -> vector<16x16xf32>
    %413 = arith.addf %412, %237 : vector<16x16xf32>
    %cst_178 = arith.constant dense<0xFF800000> : vector<16xf32>
    %414 = vector.multi_reduction <maximumf>, %413, %cst_178 [1] : vector<16x16xf32> to vector<16xf32>
    %415 = vector.shape_cast %414 : vector<16xf32> to vector<16x1xf32>
    %416 = vector.broadcast %415 : vector<16x1xf32> to vector<16x16xf32>
    %417 = arith.subf %413, %416 : vector<16x16xf32>
    %418 = math.exp %417 : vector<16x16xf32>
    %cst_179 = arith.constant dense<0.000000e+00> : vector<16xf32>
    %419 = vector.multi_reduction <add>, %418, %cst_179 [1] : vector<16x16xf32> to vector<16xf32>
    %420 = vector.shape_cast %419 : vector<16xf32> to vector<16x1xf32>
    %421 = tpu.reciprocal %420 {approx = true} : vector<16x1xf32> -> vector<16x1xf32>
    %422 = vector.broadcast %421 : vector<16x1xf32> to vector<16x16xf32>
    %423 = arith.mulf %418, %422 : vector<16x16xf32>
    %424 = vector.extract_strided_slice %404 {offsets = [0, 64], sizes = [16, 8], strides = [1, 1]} : vector<16x96xf32> to vector<16x8xf32>
    %cst_180 = arith.constant dense<0.000000e+00> : vector<16x8xf32>
    %425 = tpu.matmul %423, %424, %cst_180 {dimension_numbers = #tpu.dot_dimension_numbers<[1], [0], [0], [1], [0, 0, 1, 1], [], []>} : vector<16x16xf32>, vector<16x8xf32>, vector<16x8xf32> -> vector<16x8xf32>
    %426 = vector.extract_strided_slice %407 {offsets = [0, 8], sizes = [16, 8], strides = [1, 1]} : vector<16x32xf32> to vector<16x8xf32>
    %427 = vector.extract_strided_slice %409 {offsets = [8, 0], sizes = [8, 16], strides = [1, 1]} : vector<32x16xf32> to vector<8x16xf32>
    %cst_181 = arith.constant dense<0.000000e+00> : vector<16x16xf32>
    %428 = tpu.matmul %426, %427, %cst_181 {dimension_numbers = #tpu.dot_dimension_numbers<[1], [0], [0], [1], [0, 0, 1, 1], [], []>} : vector<16x8xf32>, vector<8x16xf32>, vector<16x16xf32> -> vector<16x16xf32>
    %429 = arith.addf %428, %237 : vector<16x16xf32>
    %cst_182 = arith.constant dense<0xFF800000> : vector<16xf32>
    %430 = vector.multi_reduction <maximumf>, %429, %cst_182 [1] : vector<16x16xf32> to vector<16xf32>
    %431 = vector.shape_cast %430 : vector<16xf32> to vector<16x1xf32>
    %432 = vector.broadcast %431 : vector<16x1xf32> to vector<16x16xf32>
    %433 = arith.subf %429, %432 : vector<16x16xf32>
    %434 = math.exp %433 : vector<16x16xf32>
    %cst_183 = arith.constant dense<0.000000e+00> : vector<16xf32>
    %435 = vector.multi_reduction <add>, %434, %cst_183 [1] : vector<16x16xf32> to vector<16xf32>
    %436 = vector.shape_cast %435 : vector<16xf32> to vector<16x1xf32>
    %437 = tpu.reciprocal %436 {approx = true} : vector<16x1xf32> -> vector<16x1xf32>
    %438 = vector.broadcast %437 : vector<16x1xf32> to vector<16x16xf32>
    %439 = arith.mulf %434, %438 : vector<16x16xf32>
    %440 = vector.extract_strided_slice %404 {offsets = [0, 72], sizes = [16, 8], strides = [1, 1]} : vector<16x96xf32> to vector<16x8xf32>
    %cst_184 = arith.constant dense<0.000000e+00> : vector<16x8xf32>
    %441 = tpu.matmul %439, %440, %cst_184 {dimension_numbers = #tpu.dot_dimension_numbers<[1], [0], [0], [1], [0, 0, 1, 1], [], []>} : vector<16x16xf32>, vector<16x8xf32>, vector<16x8xf32> -> vector<16x8xf32>
    %442 = vector.extract_strided_slice %407 {offsets = [0, 16], sizes = [16, 8], strides = [1, 1]} : vector<16x32xf32> to vector<16x8xf32>
    %443 = vector.extract_strided_slice %409 {offsets = [16, 0], sizes = [8, 16], strides = [1, 1]} : vector<32x16xf32> to vector<8x16xf32>
    %cst_185 = arith.constant dense<0.000000e+00> : vector<16x16xf32>
    %444 = tpu.matmul %442, %443, %cst_185 {dimension_numbers = #tpu.dot_dimension_numbers<[1], [0], [0], [1], [0, 0, 1, 1], [], []>} : vector<16x8xf32>, vector<8x16xf32>, vector<16x16xf32> -> vector<16x16xf32>
    %445 = arith.addf %444, %237 : vector<16x16xf32>
    %cst_186 = arith.constant dense<0xFF800000> : vector<16xf32>
    %446 = vector.multi_reduction <maximumf>, %445, %cst_186 [1] : vector<16x16xf32> to vector<16xf32>
    %447 = vector.shape_cast %446 : vector<16xf32> to vector<16x1xf32>
    %448 = vector.broadcast %447 : vector<16x1xf32> to vector<16x16xf32>
    %449 = arith.subf %445, %448 : vector<16x16xf32>
    %450 = math.exp %449 : vector<16x16xf32>
    %cst_187 = arith.constant dense<0.000000e+00> : vector<16xf32>
    %451 = vector.multi_reduction <add>, %450, %cst_187 [1] : vector<16x16xf32> to vector<16xf32>
    %452 = vector.shape_cast %451 : vector<16xf32> to vector<16x1xf32>
    %453 = tpu.reciprocal %452 {approx = true} : vector<16x1xf32> -> vector<16x1xf32>
    %454 = vector.broadcast %453 : vector<16x1xf32> to vector<16x16xf32>
    %455 = arith.mulf %450, %454 : vector<16x16xf32>
    %456 = vector.extract_strided_slice %404 {offsets = [0, 80], sizes = [16, 8], strides = [1, 1]} : vector<16x96xf32> to vector<16x8xf32>
    %cst_188 = arith.constant dense<0.000000e+00> : vector<16x8xf32>
    %457 = tpu.matmul %455, %456, %cst_188 {dimension_numbers = #tpu.dot_dimension_numbers<[1], [0], [0], [1], [0, 0, 1, 1], [], []>} : vector<16x16xf32>, vector<16x8xf32>, vector<16x8xf32> -> vector<16x8xf32>
    %458 = vector.extract_strided_slice %407 {offsets = [0, 24], sizes = [16, 8], strides = [1, 1]} : vector<16x32xf32> to vector<16x8xf32>
    %459 = vector.extract_strided_slice %409 {offsets = [24, 0], sizes = [8, 16], strides = [1, 1]} : vector<32x16xf32> to vector<8x16xf32>
    %cst_189 = arith.constant dense<0.000000e+00> : vector<16x16xf32>
    %460 = tpu.matmul %458, %459, %cst_189 {dimension_numbers = #tpu.dot_dimension_numbers<[1], [0], [0], [1], [0, 0, 1, 1], [], []>} : vector<16x8xf32>, vector<8x16xf32>, vector<16x16xf32> -> vector<16x16xf32>
    %461 = arith.addf %460, %237 : vector<16x16xf32>
    %cst_190 = arith.constant dense<0xFF800000> : vector<16xf32>
    %462 = vector.multi_reduction <maximumf>, %461, %cst_190 [1] : vector<16x16xf32> to vector<16xf32>
    %463 = vector.shape_cast %462 : vector<16xf32> to vector<16x1xf32>
    %464 = vector.broadcast %463 : vector<16x1xf32> to vector<16x16xf32>
    %465 = arith.subf %461, %464 : vector<16x16xf32>
    %466 = math.exp %465 : vector<16x16xf32>
    %cst_191 = arith.constant dense<0.000000e+00> : vector<16xf32>
    %467 = vector.multi_reduction <add>, %466, %cst_191 [1] : vector<16x16xf32> to vector<16xf32>
    %468 = vector.shape_cast %467 : vector<16xf32> to vector<16x1xf32>
    %469 = tpu.reciprocal %468 {approx = true} : vector<16x1xf32> -> vector<16x1xf32>
    %470 = vector.broadcast %469 : vector<16x1xf32> to vector<16x16xf32>
    %471 = arith.mulf %466, %470 : vector<16x16xf32>
    %472 = vector.extract_strided_slice %404 {offsets = [0, 88], sizes = [16, 8], strides = [1, 1]} : vector<16x96xf32> to vector<16x8xf32>
    %cst_192 = arith.constant dense<0.000000e+00> : vector<16x8xf32>
    %473 = tpu.matmul %471, %472, %cst_192 {dimension_numbers = #tpu.dot_dimension_numbers<[1], [0], [0], [1], [0, 0, 1, 1], [], []>} : vector<16x16xf32>, vector<16x8xf32>, vector<16x8xf32> -> vector<16x8xf32>
    %474 = tpu.concatenate %425, %441, %457, %473 in 1 : vector<16x8xf32>, vector<16x8xf32>, vector<16x8xf32>, vector<16x8xf32> -> vector<16x32xf32>
    %cst_193 = arith.constant dense<0.000000e+00> : vector<16x32xf32>
    %475 = tpu.matmul %474, %398, %cst_193 {dimension_numbers = #tpu.dot_dimension_numbers<[1], [0], [0], [1], [0, 0, 1, 1], [], []>} : vector<16x32xf32>, vector<32x32xf32>, vector<16x32xf32> -> vector<16x32xf32>
    %c13_194 = arith.constant 13 : index
    %c0_195 = arith.constant 0 : index
    %476 = vector.load %arg6[%c13_194, %c0_195] : memref<20x256xf32, #tpu.memory_space<vmem>>, vector<1x32xf32>
    %477 = vector.broadcast %476 : vector<1x32xf32> to vector<16x32xf32>
    %478 = arith.addf %475, %477 : vector<16x32xf32>
    %479 = arith.addf %478, %394 : vector<16x32xf32>
    %c14_196 = arith.constant 14 : index
    %c0_197 = arith.constant 0 : index
    %480 = vector.load %arg6[%c14_196, %c0_197] : memref<20x256xf32, #tpu.memory_space<vmem>>, vector<1x32xf32>
    %c15_198 = arith.constant 15 : index
    %c0_199 = arith.constant 0 : index
    %481 = vector.load %arg6[%c15_198, %c0_199] : memref<20x256xf32, #tpu.memory_space<vmem>>, vector<1x32xf32>
    %cst_200 = arith.constant dense<0.000000e+00> : vector<16xf32>
    %482 = vector.multi_reduction <add>, %479, %cst_200 [1] : vector<16x32xf32> to vector<16xf32>
    %483 = vector.shape_cast %482 : vector<16xf32> to vector<16x1xf32>
    %cst_201 = arith.constant 3.200000e+01 : f32
    %484 = vector.broadcast %cst_201 : f32 to vector<16x1xf32>
    %485 = arith.divf %483, %484 : vector<16x1xf32>
    %486 = vector.broadcast %485 : vector<16x1xf32> to vector<16x32xf32>
    %487 = arith.subf %479, %486 : vector<16x32xf32>
    %488 = arith.mulf %487, %487 : vector<16x32xf32>
    %cst_202 = arith.constant dense<0.000000e+00> : vector<16xf32>
    %489 = vector.multi_reduction <add>, %488, %cst_202 [1] : vector<16x32xf32> to vector<16xf32>
    %490 = vector.shape_cast %489 : vector<16xf32> to vector<16x1xf32>
    %cst_203 = arith.constant 3.200000e+01 : f32
    %491 = vector.broadcast %cst_203 : f32 to vector<16x1xf32>
    %492 = arith.divf %490, %491 : vector<16x1xf32>
    %493 = vector.broadcast %485 : vector<16x1xf32> to vector<16x32xf32>
    %494 = arith.subf %479, %493 : vector<16x32xf32>
    %cst_204 = arith.constant 9.99999996E-13 : f32
    %495 = vector.broadcast %cst_204 : f32 to vector<16x1xf32>
    %496 = arith.addf %492, %495 : vector<16x1xf32>
    %497 = math.rsqrt %496 : vector<16x1xf32>
    %498 = vector.broadcast %497 : vector<16x1xf32> to vector<16x32xf32>
    %499 = arith.mulf %494, %498 : vector<16x32xf32>
    %500 = vector.broadcast %480 : vector<1x32xf32> to vector<16x32xf32>
    %501 = arith.mulf %499, %500 : vector<16x32xf32>
    %502 = vector.broadcast %481 : vector<1x32xf32> to vector<16x32xf32>
    %503 = arith.addf %501, %502 : vector<16x32xf32>
    %cst_205 = arith.constant dense<0.000000e+00> : vector<16x64xf32>
    %504 = tpu.matmul %503, %400, %cst_205 {dimension_numbers = #tpu.dot_dimension_numbers<[1], [0], [0], [1], [0, 0, 1, 1], [], []>} : vector<16x32xf32>, vector<32x64xf32>, vector<16x64xf32> -> vector<16x64xf32>
    %c16 = arith.constant 16 : index
    %c0_206 = arith.constant 0 : index
    %505 = vector.load %arg6[%c16, %c0_206] : memref<20x256xf32, #tpu.memory_space<vmem>>, vector<1x64xf32>
    %506 = vector.broadcast %505 : vector<1x64xf32> to vector<16x64xf32>
    %507 = arith.addf %504, %506 : vector<16x64xf32>
    %cst_207 = arith.constant 5.000000e-01 : f32
    %508 = vector.broadcast %cst_207 : f32 to vector<16x64xf32>
    %509 = arith.mulf %508, %507 : vector<16x64xf32>
    %cst_208 = arith.constant 4.471500e-02 : f32
    %510 = vector.broadcast %cst_208 : f32 to vector<16x64xf32>
    %511 = arith.mulf %510, %507 : vector<16x64xf32>
    %512 = arith.mulf %511, %507 : vector<16x64xf32>
    %513 = arith.mulf %512, %507 : vector<16x64xf32>
    %514 = arith.addf %507, %513 : vector<16x64xf32>
    %cst_209 = arith.constant 0.797884583 : f32
    %515 = vector.broadcast %cst_209 : f32 to vector<16x64xf32>
    %516 = arith.mulf %515, %514 : vector<16x64xf32>
    %517 = math.tanh %516 : vector<16x64xf32>
    %cst_210 = arith.constant 1.000000e+00 : f32
    %518 = vector.broadcast %cst_210 : f32 to vector<16x64xf32>
    %519 = arith.addf %518, %517 : vector<16x64xf32>
    %520 = arith.mulf %509, %519 : vector<16x64xf32>
    %c1_211 = arith.constant 1 : index
    %c0_212 = arith.constant 0 : index
    %c0_213 = arith.constant 0 : index
    %521 = vector.load %arg4[%c1_211, %c0_212, %c0_213] : memref<2x64x32xf32, #tpu.memory_space<vmem>>, vector<1x64x32xf32>
    %522 = vector.shape_cast %521 : vector<1x64x32xf32> to vector<64x32xf32>
    %cst_214 = arith.constant dense<0.000000e+00> : vector<16x32xf32>
    %523 = tpu.matmul %520, %522, %cst_214 {dimension_numbers = #tpu.dot_dimension_numbers<[1], [0], [0], [1], [0, 0, 1, 1], [], []>} : vector<16x64xf32>, vector<64x32xf32>, vector<16x32xf32> -> vector<16x32xf32>
    %c17 = arith.constant 17 : index
    %c0_215 = arith.constant 0 : index
    %524 = vector.load %arg6[%c17, %c0_215] : memref<20x256xf32, #tpu.memory_space<vmem>>, vector<1x32xf32>
    %525 = vector.broadcast %524 : vector<1x32xf32> to vector<16x32xf32>
    %526 = arith.addf %523, %525 : vector<16x32xf32>
    %527 = arith.addf %526, %503 : vector<16x32xf32>
    %c18 = arith.constant 18 : index
    %c0_216 = arith.constant 0 : index
    %528 = vector.load %arg6[%c18, %c0_216] : memref<20x256xf32, #tpu.memory_space<vmem>>, vector<1x32xf32>
    %c19 = arith.constant 19 : index
    %c0_217 = arith.constant 0 : index
    %529 = vector.load %arg6[%c19, %c0_217] : memref<20x256xf32, #tpu.memory_space<vmem>>, vector<1x32xf32>
    %cst_218 = arith.constant dense<0.000000e+00> : vector<16xf32>
    %530 = vector.multi_reduction <add>, %527, %cst_218 [1] : vector<16x32xf32> to vector<16xf32>
    %531 = vector.shape_cast %530 : vector<16xf32> to vector<16x1xf32>
    %cst_219 = arith.constant 3.200000e+01 : f32
    %532 = vector.broadcast %cst_219 : f32 to vector<16x1xf32>
    %533 = arith.divf %531, %532 : vector<16x1xf32>
    %534 = vector.broadcast %533 : vector<16x1xf32> to vector<16x32xf32>
    %535 = arith.subf %527, %534 : vector<16x32xf32>
    %536 = arith.mulf %535, %535 : vector<16x32xf32>
    %cst_220 = arith.constant dense<0.000000e+00> : vector<16xf32>
    %537 = vector.multi_reduction <add>, %536, %cst_220 [1] : vector<16x32xf32> to vector<16xf32>
    %538 = vector.shape_cast %537 : vector<16xf32> to vector<16x1xf32>
    %cst_221 = arith.constant 3.200000e+01 : f32
    %539 = vector.broadcast %cst_221 : f32 to vector<16x1xf32>
    %540 = arith.divf %538, %539 : vector<16x1xf32>
    %541 = vector.broadcast %533 : vector<16x1xf32> to vector<16x32xf32>
    %542 = arith.subf %527, %541 : vector<16x32xf32>
    %cst_222 = arith.constant 9.99999996E-13 : f32
    %543 = vector.broadcast %cst_222 : f32 to vector<16x1xf32>
    %544 = arith.addf %540, %543 : vector<16x1xf32>
    %545 = math.rsqrt %544 : vector<16x1xf32>
    %546 = vector.broadcast %545 : vector<16x1xf32> to vector<16x32xf32>
    %547 = arith.mulf %542, %546 : vector<16x32xf32>
    %548 = vector.broadcast %528 : vector<1x32xf32> to vector<16x32xf32>
    %549 = arith.mulf %547, %548 : vector<16x32xf32>
    %550 = vector.broadcast %529 : vector<1x32xf32> to vector<16x32xf32>
    %551 = arith.addf %549, %550 : vector<16x32xf32>
    %552 = vector.shape_cast %551 : vector<16x32xf32> to vector<2x8x32xf32>
    %553 = vector.extract_strided_slice %552 {offsets = [0, 0, 0], sizes = [2, 1, 32], strides = [1, 1, 1]} : vector<2x8x32xf32> to vector<2x1x32xf32>
    %554 = vector.shape_cast %553 : vector<2x1x32xf32> to vector<2x32xf32>
    %c0_223 = arith.constant 0 : index
    %c0_224 = arith.constant 0 : index
    %555 = vector.load %arg5[%c0_223, %c0_224] : memref<37x256xf32, #tpu.memory_space<vmem>>, vector<32x256xf32>
    %c32 = arith.constant 32 : index
    %c0_225 = arith.constant 0 : index
    %556 = vector.load %arg5[%c32, %c0_225] : memref<37x256xf32, #tpu.memory_space<vmem>>, vector<5x256xf32>
    %cst_226 = arith.constant dense<0.000000e+00> : vector<2x256xf32>
    %557 = tpu.matmul %554, %555, %cst_226 {dimension_numbers = #tpu.dot_dimension_numbers<[1], [0], [0], [1], [0, 0, 1, 1], [], []>} : vector<2x32xf32>, vector<32x256xf32>, vector<2x256xf32> -> vector<2x256xf32>
    %c2_227 = arith.constant 2 : index
    %c0_228 = arith.constant 0 : index
    %558 = vector.load %arg6[%c2_227, %c0_228] : memref<20x256xf32, #tpu.memory_space<vmem>>, vector<1x256xf32>
    %559 = vector.broadcast %558 : vector<1x256xf32> to vector<2x256xf32>
    %560 = arith.addf %557, %559 : vector<2x256xf32>
    %cst_229 = arith.constant 0.000000e+00 : f32
    %561 = vector.broadcast %cst_229 : f32 to vector<2x256xf32>
    %562 = arith.maximumf %560, %561 : vector<2x256xf32>
    %cst_230 = arith.constant dense<0.000000e+00> : vector<2x5xf32>
    %563 = tpu.matmul %562, %556, %cst_230 {dimension_numbers = #tpu.dot_dimension_numbers<[1], [1], [0], [0], [0, 0, 1, 0], [], []>} : vector<2x256xf32>, vector<5x256xf32>, vector<2x5xf32> -> vector<2x5xf32>
    %c3_231 = arith.constant 3 : index
    %c0_232 = arith.constant 0 : index
    %564 = vector.load %arg6[%c3_231, %c0_232] : memref<20x256xf32, #tpu.memory_space<vmem>>, vector<1x5xf32>
    %565 = vector.broadcast %564 : vector<1x5xf32> to vector<2x5xf32>
    %566 = arith.addf %563, %565 : vector<2x5xf32>
    %c0_233 = arith.constant 0 : index
    %c0_234 = arith.constant 0 : index
    %567 = vector.load %arg7[%c0_233, %c0_234] : memref<2x5xf32, #tpu.memory_space<vmem>>, vector<2x5xf32>
    tpu.vector_store %arg7[%c0_233, %c0_234], %566 {strides = array<i32>} : memref<2x5xf32, #tpu.memory_space<vmem>>, vector<2x5xf32>,
    return
  }
}

</mosaic_0001>

<bundles_post_ra>
// kernel: emotion_regressor_forward.1
= control target key start
LH: loop header
LB: loop body
LE: loop exit
PB: predicated region body
PF: predicated region fallthrough
CT: control target
= control target key end

     0   :  { %12 = vsyncpa [#allocation5], 0  ;;  %s4670_s0 = inlined_call_operand.vmem [shape: s32[16], index: 0, kind: input, shape index: {}]   ;;  %s4671_s1 = inlined_call_operand.vmem [shape: s32[16], index: 1, kind: input, shape index: {}]   ;;  %s4672_s2 = inlined_call_operand.vmem [shape: f32[116,32], index: 2, kind: input, shape index: {}]   ;;  %s4673_s3 = inlined_call_operand.vmem [shape: f32[2,32,192], index: 3, kind: input, shape index: {}]   ;;  %s4674_s4 = inlined_call_operand.vmem [shape: f32[2,64,32], index: 4, kind: input, shape index: {}]   ;;  %s4675_s5 = inlined_call_operand.vmem [shape: f32[37,256], index: 5, kind: input, shape index: {}]   ;;  %s4676_s6 = inlined_call_operand.vmem [shape: f32[20,256], index: 6, kind: input, shape index: {}]   ;;  %s4677_s7 = inlined_call_operand.hbm [shape: f32[2,5], index: 7, kind: output, shape index: {}]  }
   0x1   :  { %13 = vsyncpa [#allocation7], 0 }
   0x2   :  { %14 = vsyncpa [#allocation4], 0  ;;  %s21_s26 = sshll.u32 %s4670_s0, 4  ;;  %s31_s29 = sshll.u32 %s4671_s1, 4  ;;  %s22_s26 = int_to_ptr.vmem [resolvable:$true] %s21_s26  ;;  %s32_s29 = int_to_ptr.vmem [resolvable:$true] %s31_s29 }
   0x3   :  { %s3918_s30 = scalar_lea.vmem %s22_s26, 16  ;;  %p3923_p1 = scmp.lt.s32.totalorder %s22_s26, %s22_s26 }
   0x4   :  { %p3919_p0 = scmp.ne.s32.totalorder %s22_s26, %s3918_s30  ;;  %p3924_p2 = scmp.lt.s32.totalorder %s3918_s30, %s3918_s30 }
   0x6   :  { %p3925_p3 = por %p3924_p2, %p3923_p1 }
   0x8   :  { %p3926_p4 = pnand %p3925_p3, %p3919_p0 }
   0xa   :  { %3929 = shalt.err (!%p3926_p4)
}
   0xb   :  { %s3970_s8 = smov [#allocation3]   ;;  %s3930_s9 = scalar_lea.vmem %s32_s29, 16 }
   0xc   :  { %24 = dma.vmem_to_smem %s22_s26, 16, %s3970_s8, [#allocation5]  }
   0xd   :  { %p3931_p5 = scmp.ne.s32.totalorder %s32_s29, %s3930_s9  ;;  %p3935_p6 = scmp.lt.s32.totalorder %s32_s29, %s32_s29 }
   0xe   :  { %p3936_p7 = scmp.lt.s32.totalorder %s3930_s9, %s3930_s9 }
  0x10   :  { %p3937_p8 = por %p3936_p7, %p3935_p6 }
  0x12   :  { %p3938_p9 = pnand %p3937_p8, %p3931_p5 }
  0x14   :  { %3941 = shalt.err (!%p3938_p9)
}
  0x15   :  { %s3971_s0 = smov [#allocation6]  }
  0x16   :  { %34 = dma.vmem_to_smem %s32_s29, 16, %s3971_s0, [#allocation7]  }
  0x17   :  { %3964 = dma.done.wait [#allocation5], 16  }
  0x18   :  { %3965 = vsyncadd [#allocation5], 4294967280 }
  0x19   :  { %3966 = dma.done.wait [#allocation7], 16  }
  0x1a   :  { %3967 = vsyncadd [#allocation7], 4294967280 }
  0x1b   :  { %51 = sfence }
  0x1c   :  { %s52_s1 = sld [smem:[#allocation3]]  ;;  %s3075_s10 = sld [smem:[#allocation3 + $0x1]]  ;;  %vm56_vm0 = vcmask 253952   ;;  %v133_v12 = vld [vmem:[%s4672_s2] sm:$0xff]  ;;  %vm140_vm1 = vcmask 261120   ;;  %v4127_v34 = vld [vmem:[%s4673_s3 + $0x10] sm:$0xff] }
  0x1d   :  { %s3077_s11 = sld [smem:[#allocation3 + $0x2]]  ;;  %s3079_s12 = sld [smem:[#allocation3 + $0x3]]  ;;  %v4122_v33 = vld [vmem:[%s4673_s3] sm:$0xff]  ;;  %v4141_v38 = vld [vmem:[%s4673_s3 + $0x30] sm:$0xff]  ;;  %vm386_vm2 = vcmask 64512  }
  0x1e   :  { %s3081_s13 = sld [smem:[#allocation3 + $0x4]]  ;;  %s3083_s14 = sld [smem:[#allocation3 + $0x5]]  ;;  %v4132_v35 = vld [vmem:[%s4673_s3 + $0x20] sm:$0xff]  ;;  %v3766_v36 = vpack.i.bf16 %v4127_v34, %v4122_v33  ;;  %v3538_v37 = vpack.c.bf16 %v4127_v34, %v4122_v33  ;;  %vm4180_vm3 = vmpackc.low %vm386_vm2, %vm386_vm2 }
  0x1f   :  { %s3085_s15 = sld [smem:[#allocation3 + $0x6]]  ;;  %s3087_s16 = sld [smem:[#allocation3 + $0x7]]  ;;  %v3542_v39 = vpack.c.bf16 %v4141_v38, %v4132_v35  ;;  %v138_v47 = vld [vmem:[%s4676_s6] ss:$0 sm:$0xff]  ;;  %v139_v49 = vld [vmem:[%s4676_s6 + $0x1] ss:$0 sm:$0xff] }
  0x20   :  { %s4036_s17 = sld [smem:[#allocation3 + $0x8]]  ;;  %s4038_s18 = sld [smem:[#allocation3 + $0x9]]  ;;  %3539 = vmatprep.subr.bf16.mxu0 %v3538_v37  ;;  %v296_v56 = vld [vmem:[%s4676_s6 + $0x4] ss:$0 sm:$0xff] }
  0x21   :  { %s4040_s19 = sld [smem:[#allocation3 + $0xa]]  ;;  %s4042_s20 = sld [smem:[#allocation3 + $0xb]]  ;;  %3541 = vmatpush3.bf16.msra.mxu0 %v3538_v37 }
  0x22   :  { %s3042_s23 = scalar_lea.vmem %s4672_s2, %s52_s1  ;;  %s3044_s26 = scalar_lea.vmem %s4672_s2, %s3075_s10  ;;  %3543 = vmatprep.subr.bf16.mxu0 %v3542_v39 }
  0x23   :  { %v3074_v0 = vld [vmem:[%s3042_s23 + $0x10] sm:$0x1]  ;;  %s3046_s29 = scalar_lea.vmem %s4672_s2, %s3077_s11  ;;  %s3048_s9 = scalar_lea.vmem %s4672_s2, %s3079_s12 }
  0x24   :  { %v3076_v1 = vld [vmem:[%s3044_s26 + $0x10] sm:$0x1]  ;;  %57 = vst.msk [vmem:[#allocation2] sm:$0x1] %vm56_vm0, %v3074_v0  ;;  %s3050_s10 = scalar_lea.vmem %s4672_s2, %s3081_s13  ;;  %s3052_s11 = scalar_lea.vmem %s4672_s2, %s3083_s14 }
  0x25   :  { %62 = vst.msk [vmem:[#allocation2 + $0x1] sm:$0x1] %vm56_vm0, %v3076_v1  ;;  %v3078_v2 = vld [vmem:[%s3046_s29 + $0x10] sm:$0x1]  ;;  %s3054_s24 = scalar_lea.vmem %s4672_s2, %s3085_s15  ;;  %s3056_s13 = scalar_lea.vmem %s4672_s2, %s3087_s16  ;;  %3545 = vmatpush3.bf16.msra.mxu0 %v3542_v39 }
  0x26   :  { %v3080_v3 = vld [vmem:[%s3048_s9 + $0x10] sm:$0x1]  ;;  %67 = vst.msk [vmem:[#allocation2 + $0x2] sm:$0x1] %vm56_vm0, %v3078_v2  ;;  %s3058_s28 = scalar_lea.vmem %s4672_s2, %s4036_s17  ;;  %s3060_s8 = scalar_lea.vmem %s4672_s2, %s4038_s18 }
  0x27   :  { %72 = vst.msk [vmem:[#allocation2 + $0x3] sm:$0x1] %vm56_vm0, %v3080_v3  ;;  %v3082_v4 = vld [vmem:[%s3050_s10 + $0x10] sm:$0x1]  ;;  %s3062_s9 = scalar_lea.vmem %s4672_s2, %s4040_s19  ;;  %s3064_s10 = scalar_lea.vmem %s4672_s2, %s4042_s20 }
  0x28   :  { %v3084_v5 = vld [vmem:[%s3052_s11 + $0x10] sm:$0x1]  ;;  %77 = vst.msk [vmem:[#allocation2 + $0x4] sm:$0x1] %vm56_vm0, %v3082_v4  ;;  %s3097_s17 = sld [smem:[#allocation3 + $0xc]]  ;;  %s3099_s18 = sld [smem:[#allocation3 + $0xd]] }
  0x29   :  { %82 = vst.msk [vmem:[#allocation2 + $0x5] sm:$0x1] %vm56_vm0, %v3084_v5  ;;  %v3086_v6 = vld [vmem:[%s3054_s24 + $0x10] sm:$0x1]  ;;  %s3101_s21 = sld [smem:[#allocation3 + $0xe]]  ;;  %s3103_s22 = sld [smem:[#allocation3 + $0xf]] }
  0x2a   :  { %v3088_v7 = vld [vmem:[%s3056_s13 + $0x10] sm:$0x1]  ;;  %87 = vst.msk [vmem:[#allocation2 + $0x6] sm:$0x1] %vm56_vm0, %v3086_v6  ;;  %s3972_s20 = smov 88   ;;  %s3973_s12 = smov 96  }
  0x2b   :  { %92 = vst.msk [vmem:[#allocation2 + $0x7] sm:$0x1] %vm56_vm0, %v3088_v7  ;;  %v3090_v8 = vld [vmem:[%s3058_s28 + $0x10] sm:$0x1]  ;;  %s202_s24 = sld [smem:[#allocation6]]  ;;  %s3105_s25 = sld [smem:[#allocation6 + $0x1]] }
  0x2c   :  { %v3092_v9 = vld [vmem:[%s3060_s8 + $0x10] sm:$0x1]  ;;  %97 = vst.msk [vmem:[#allocation2 + $0x8] sm:$0x1] %vm56_vm0, %v3090_v8  ;;  %s3107_s14 = sld [smem:[#allocation6 + $0x3]]  ;;  %s3108_s28 = sld [smem:[#allocation6 + $0x4]] }
  0x2d   :  { %102 = vst.msk [vmem:[#allocation2 + $0x9] sm:$0x1] %vm56_vm0, %v3092_v9  ;;  %v3094_v10 = vld [vmem:[%s3062_s9 + $0x10] sm:$0x1]  ;;  %s3110_s8 = sld [smem:[#allocation6 + $0x6]]  ;;  %s3111_s16 = sld [smem:[#allocation6 + $0x7]] }
  0x2e   :  { %v3096_v11 = vld [vmem:[%s3064_s10 + $0x10] sm:$0x1]  ;;  %107 = vst.msk [vmem:[#allocation2 + $0xa] sm:$0x1] %vm56_vm0, %v3094_v10  ;;  %s3066_s23 = scalar_lea.vmem %s4672_s2, %s3097_s17  ;;  %s3068_s26 = scalar_lea.vmem %s4672_s2, %s3099_s18 }
  0x2f   :  { %112 = vst.msk [vmem:[#allocation2 + $0xb] sm:$0x1] %vm56_vm0, %v3096_v11  ;;  %v3098_v15 = vld [vmem:[%s3066_s23 + $0x10] sm:$0x1]  ;;  %s3070_s27 = scalar_lea.vmem %s4672_s2, %s3101_s21  ;;  %s3072_s30 = scalar_lea.vmem %s4672_s2, %s3103_s22  ;;  %v175_v11 = vlaneseq }
  0x30   :  { %117 = vst.msk [vmem:[#allocation2 + $0xc] sm:$0x1] %vm56_vm0, %v3098_v15  ;;  %v3100_v16 = vld [vmem:[%s3068_s26 + $0x10] sm:$0x1]  ;;  %s3974_s23 = smov 120   ;;  %s3106_s26 = sld [smem:[#allocation6 + $0x2]] }
  0x31   :  { %v3102_v17 = vld [vmem:[%s3070_s27 + $0x10] sm:$0x1]  ;;  %122 = vst.msk [vmem:[#allocation2 + $0xd] sm:$0x1] %vm56_vm0, %v3100_v16  ;;  %s203_s13 = scvt.s32.f32 %s202_s24  ;;  %s208_s27 = scvt.s32.f32 %s3105_s25 }
  0x32   :  { %v134_v13 = vld [vmem:[#allocation2] sm:$0xff]  ;;  %127 = vst.msk [vmem:[#allocation2 + $0xe] sm:$0x1] %vm56_vm0, %v3102_v17  ;;  %v3104_v19 = vld [vmem:[%s3072_s30 + $0x10] sm:$0x1]  ;;  %s3109_s30 = sld [smem:[#allocation6 + $0x5]]  ;;  %s218_s2 = scvt.s32.f32 %s3107_s14 }
  0x33   :  { %v136_v14 = vadd.f32 %v134_v13, %v133_v12  ;;  %132 = vst.msk [vmem:[#allocation2 + $0xf] sm:$0x1] %vm56_vm0, %v3104_v19  ;;  %v204_v13 = vstv %s203_s13  ;;  %v209_v15 = vstv %s208_s27  ;;  %s223_s15 = scvt.s32.f32 %s3108_s28  ;;  %s3112_s0 = sld [smem:[#allocation6 + $0x8]] }
  0x34   :  { %v219_v19 = vstv %s218_s2  ;;  %s233_s1 = scvt.s32.f32 %s3110_s8  ;;  %s3113_s10 = sld [smem:[#allocation6 + $0x9]] }
  0x35   :  { %v141_v18 = vsel %vm140_vm1, %v136_v14, 0.0  ;;  %s238_s17 = scvt.s32.f32 %s3111_s16  ;;  %s3114_s18 = sld [smem:[#allocation6 + $0xa]] }
  0x36   :  { %142 = vadd.xlane.f32.xlu0 %v141_v18  ;;  %s213_s29 = scvt.s32.f32 %s3106_s26  ;;  %s3115_s22 = sld [smem:[#allocation6 + $0xb]] }
  0x37   :  { %s3116_s19 = sld [smem:[#allocation6 + $0xc]]  ;;  %s3117_s25 = sld [smem:[#allocation6 + $0xd]] }
  0x38   :  { %v214_v17 = vstv %s213_s29  ;;  %s228_s9 = scvt.s32.f32 %s3109_s30  ;;  %s3118_s13 = sld [smem:[#allocation6 + $0xe]] }
  0x39   :  { %s243_s21 = scvt.s32.f32 %s3112_s0  ;;  %s3119_s27 = sld [smem:[#allocation6 + $0xf]] }
  0x3a   :  { %v135_v20 = vld [vmem:[#allocation2 + $0x8] sm:$0xff]  ;;  %s248_s11 = scvt.s32.f32 %s3113_s10  ;;  %s3976_s2 = smov 56  }
  0x3b   :  { %v137_v21 = vadd.f32 %v135_v20, %v133_v12  ;;  %v4197_v12 = vand.u32 127, %v175_v11  ;;  %s253_s24 = scvt.s32.f32 %s3114_s18  ;;  %s3977_s8 = smov 64  }
  0x3c   :  { %s258_s26 = scvt.s32.f32 %s3115_s22  ;;  %s3979_s16 = smov 112  }
  0x3d   :  { %v144_v22 = vsel %vm140_vm1, %v137_v21, 0.0  ;;  %vm201_vm4 = vcmp.eq.s32.totalorder %v4197_v12, 0  ;;  %vm206_vm5 = vcmp.eq.s32.totalorder %v4197_v12, 1  ;;  %vm211_vm6 = vcmp.eq.s32.totalorder %v4197_v12, 2  ;;  %s263_s14 = scvt.s32.f32 %s3116_s19  ;;  %s268_s28 = scvt.s32.f32 %s3117_s25 }
  0x3e   :  { %145 = vadd.xlane.f32.xlu0 %v144_v22  ;;  %vm216_vm7 = vcmp.eq.s32.totalorder %v4197_v12, 3  ;;  %vm221_vm8 = vcmp.eq.s32.totalorder %v4197_v12, 4  ;;  %vm226_vm9 = vcmp.eq.s32.totalorder %v4197_v12, 5  ;;  %vm231_vm10 = vcmp.eq.s32.totalorder %v4197_v12, 6  ;;  %s273_s29 = scvt.s32.f32 %s3118_s13  ;;  %s3981_s0 = smov 104  }
  0x3f   :  { %vm236_vm11 = vcmp.eq.s32.totalorder %v4197_v12, 7  ;;  %vm241_vm12 = vcmp.eq.s32.totalorder %v4197_v12, 8  ;;  %vm246_vm13 = vcmp.eq.s32.totalorder %v4197_v12, 9  ;;  %vm251_vm14 = vcmp.eq.s32.totalorder %v4197_v12, 10  ;;  %s278_s30 = scvt.s32.f32 %s3119_s27  ;;  %s3983_s10 = smov 40  }
  0x40   :  { %v254_v37 = vstv %s253_s24  ;;  %vm256_vm15 = vcmp.eq.s32.totalorder %v4197_v12, 11  ;;  %vm261_vm0 = vcmp.eq.s32.totalorder %v4197_v12, 12  ;;  %s3985_s18 = smov 8   ;;  %s3987_s22 = smov 24  }
  0xc3   :  { %v143_v23 = vpop.xlane.xlu0 %142 }
  0xc4   :  { %v148_v24 = vmul.f32 0.03125, %v143_v23  ;;  %v229_v23 = vstv %s228_s9  ;;  %s3980_s9 = smov 48  }
  0xc6   :  { %v150_v25 = vsub.f32 %v136_v14, %v148_v24  ;;  %v205_v14 = vsel %vm201_vm4, %v204_v13, 0.0  ;;  %vm266_vm4 = vcmp.eq.s32.totalorder %v4197_v12, 13 }
  0xc7   :  { %v210_v16 = vsel %vm206_vm5, %v209_v15, %v205_v14  ;;  %vm271_vm5 = vcmp.eq.s32.totalorder %v4197_v12, 14 }
  0xc8   :  { %v152_v26 = vmul.f32 %v150_v25, %v150_v25  ;;  %v215_v18 = vsel %vm211_vm6, %v214_v17, %v210_v16  ;;  %vm276_vm6 = vcmp.eq.s32.totalorder %v4197_v12, 15 }
  0xc9   :  { %v220_v20 = vsel %vm216_vm7, %v219_v19, %v215_v18  ;;  %vm194_vm7 = vcmp.ge.s32.totalorder %v4197_v12, 8 }
  0xca   :  { %v154_v27 = vsel %vm140_vm1, %v152_v26, 0.0 }
  0xcb   :  { %155 = vadd.xlane.f32.xlu1 %v154_v27  ;;  %v146_v28 = vpop.xlane.xlu0 %145  ;;  %v239_v27 = vstv %s238_s17  ;;  %s3984_s17 = smov 32  }
  0xcc   :  { %v149_v29 = vmul.f32 0.03125, %v146_v28 }
  0xce   :  { %v151_v30 = vsub.f32 %v137_v21, %v149_v29  ;;  %v224_v21 = vstv %s223_s15  ;;  %v244_v29 = vstv %s243_s21  ;;  %s3978_s15 = smov 80   ;;  %s3986_s21 = smov 16  }
  0xcf   :  { %v225_v22 = vsel %vm221_vm8, %v224_v21, %v220_v20  ;;  %vm195_vm8 = vcmp.lt.s32.totalorder %v4197_v12, 16 }
  0xd0   :  { %v153_v31 = vmul.f32 %v151_v30, %v151_v30  ;;  %v230_v24 = vsel %vm226_vm9, %v229_v23, %v225_v22  ;;  %vm196_vm9 = vmand %vm194_vm7, %vm195_vm8 }
  0xd2   :  { %v157_v32 = vsel %vm140_vm1, %v153_v31, 0.0  ;;  %v249_v31 = vstv %s248_s11 }
  0xd3   :  { %158 = vadd.xlane.f32.xlu1 %v157_v32 }
 0x158   :  { %v156_v40 = vpop.xlane.xlu1 %155 }
 0x159   :  { %v160_v41 = vmul.f32 0.03125, %v156_v40  ;;  %v259_v40 = vstv %s258_s26 }
 0x15b   :  { %v162_v42 = vadd.f32 1e-12, %v160_v41 }
 0x15d   :  { %3826 = vrsqrt.f32 %v162_v42  ;;  %v264_v42 = vstv %s263_s14 }
 0x160   :  { %v159_v43 = vpop.xlane.xlu1 %158 }
 0x161   :  { %v161_v44 = vmul.f32 0.03125, %v159_v43 }
 0x163   :  { %v163_v45 = vadd.f32 1e-12, %v161_v44  ;;  %v269_v44 = vstv %s268_s28 }
 0x165   :  { %3828 = vrsqrt.f32 %v163_v45 }
 0x167   :  { %v3827_v46 = vpop.eup %3826 }
 0x168   :  { %v166_v48 = vmul.f32 %v3827_v46, %v150_v25  ;;  %v234_v25 = vstv %s233_s1  ;;  %v274_v46 = vstv %s273_s29  ;;  %s3982_s1 = smov 72  }
 0x169   :  { %v235_v26 = vsel %vm231_vm10, %v234_v25, %v230_v24 }
 0x16a   :  { %v168_v50 = vmul.f32 %v166_v48, %v138_v47  ;;  %v240_v28 = vsel %vm236_vm11, %v239_v27, %v235_v26  ;;  %v279_v48 = vstv %s278_s30  ;;  %vm184_vm11 = vcmp.lt.s32.totalorder %v4197_v12, 8 }
 0x16c   :  { %v4151_v51 = vadd.f32 %v168_v50, %v139_v49  ;;  %v3975_v50 = vmov -1e+30  }
 0x16e   :  { %3330 = vmatprep.mubr.msk.f32.mxu0 %vm140_vm1, %v4151_v51 }
 0x16f   :  { %v3829_v52 = vpop.eup %3828 }
 0x170   :  { %v167_v53 = vmul.f32 %v3829_v52, %v151_v30  ;;  %v245_v30 = vsel %vm241_vm12, %v244_v29, %v240_v28 }
 0x171   :  { %v250_v32 = vsel %vm246_vm13, %v249_v31, %v245_v30 }
 0x172   :  { %v169_v54 = vmul.f32 %v167_v53, %v138_v47  ;;  %v255_v39 = vsel %vm251_vm14, %v254_v37, %v250_v32  ;;  %vm472_vm14 = vcmask 130048  }
 0x173   :  { %v260_v41 = vsel %vm256_vm15, %v259_v40, %v255_v39  ;;  %vm1210_vm15 = vcmask 195584  }
 0x174   :  { %v4155_v55 = vadd.f32 %v169_v54, %v139_v49  ;;  %v265_v43 = vsel %vm261_vm0, %v264_v42, %v260_v41  ;;  %vm1454_vm0 = vcmask 523264  }
 0x175   :  { %v270_v45 = vsel %vm266_vm4, %v269_v44, %v265_v43 }
 0x176   :  { %3331 = vmatmul.mubr.msk.f32.vlgmr.msra.gmra.mrb[0].mxu0 %vm140_vm1, %v4155_v55  ;;  %v275_v47 = vsel %vm271_vm5, %v274_v46, %v270_v45 }
 0x177   :  { %v280_v49 = vsel %vm276_vm6, %v279_v48, %v275_v47 }
 0x178   :  { %vm281_vm10 = vcmp.gt.f32.partialorder %v280_v49, 0.0 }
 0x179   :  { %vm285_vm12 = vmand %vm196_vm9, %vm281_vm10 }
 0x17a   :  { %vm284_vm13 = vmand %vm184_vm11, %vm281_vm10  ;;  %v4218_v52 = vsel %vm285_vm12, 0.0, %v3975_v50 }
 0x17b   :  { %v4220_v53 = vsel %vm284_vm13, 0.0, %v3975_v50 }
 0x249   :  { %v3332_v57 = vpop.f32.mrb[0].mxu0 }
 0x24a   :  { %v375_v58 = vadd.f32 %v3332_v57, %v296_v56  ;;  %v369_v59 = vpop.f32.mrb[1].mxu0 }
 0x24b   :  { %v370_v60 = vadd.f32 %v369_v59, %v296_v56 }
 0x24c   :  { %v4174_v63 = vmul.f32 0.35355338, %v375_v58 }
 0x24d   :  { %v4162_v61 = vpack.i.bf16 %v375_v58, %v370_v60  ;;  %v4164_v62 = vmul.f32 0.35355338, %v370_v60 }
 0x24f   :  { %3732 = vrot.lane.b32.xlu1 %v4162_v61, %s3972_s20  ;;  %3727 = vrot.lane.b32.xlu0 %v4162_v61, %s3973_s12 }
 0x250   :  { %3337 = vmatprep.mubr.msk.f32.mxu1 %vm386_vm2, %v4164_v62 }
 0x253   :  { %582 = vrot.lane.b32.xlu1 %v4164_v62, %s3974_s23 }
 0x257   :  { %584 = vrot.lane.b32.xlu1 %v4174_v63, %s3974_s23 }
 0x2c1   :  { %v3733_v0 = vpop.permute.xlu1 %3732  ;;  %v3728_v1 = vpop.permute.xlu0 %3727 }
 0x2c2   :  { %v3735_v2 = vunpack.i.h.bf16 %v3733_v0  ;;  %v3734_v3 = vunpack.i.l.bf16 %v3733_v0  ;;  %v3730_v4 = vunpack.i.h.bf16 %v3728_v1  ;;  %v3729_v5 = vunpack.i.l.bf16 %v3728_v1 }
 0x2c4   :  { %v3546_v7 = vpack.c.bf16 %v3730_v4, %v3729_v5  ;;  %v3556_v8 = vpack.c.bf16 %v3735_v2, %v3734_v3 }
 0x2c5   :  { %v583_v9 = vpop.permute.xlu1 %582 }
 0x2c6   :  { %3548 = vmatprep.subr.msk.bf16.mxu1 %vm4180_vm3, %v3546_v7 }
 0x2c7   :  { %3551 = vmatpush3.bf16.xpose.msk.msra.mxu1 %vm4180_vm3, %v3546_v7 }
 0x2c8   :  { %3558 = vmatprep.subr.msk.bf16.mxu1 %vm4180_vm3, %v3556_v8 }
 0x2c9   :  { %v585_v10 = vpop.permute.xlu1 %584 }
 0x2ce   :  { %3338 = vmatmul.mubr.msk.f32.vlgmr.msra.gmra.mrb[0].mxu1 %vm386_vm2, %v4174_v63 }
 0x2cf   :  { %3561 = vmatpush3.bf16.xpose.msk.msra.mxu1 %vm4180_vm3, %v3556_v8  ;;  %3351 = vmatprep.mubr.msk.f32.mxu1 %vm386_vm2, %v583_v9 }
 0x2d6   :  { %3352 = vmatmul.mubr.msk.f32.vlgmr.msra.gmra.mrb[2].mxu1 %vm386_vm2, %v585_v10 }
 0x3a1   :  { %v3339_v54 = vpop.f32.mrb[0].mxu1 }
 0x3a2   :  { %v469_v56 = vadd.f32 %v3339_v54, %v4218_v52  ;;  %v463_v57 = vpop.f32.mrb[1].mxu1 }
 0x3a3   :  { %v464_v58 = vadd.f32 %v463_v57, %v4220_v53 }
 0x3a4   :  { %v476_v59 = vsel %vm472_vm14, %v469_v56, -inf }
 0x3a5   :  { %477 = vmax.xlane.f32.xlu1 %v476_v59  ;;  %v473_v60 = vsel %vm472_vm14, %v464_v58, -inf }
 0x3a6   :  { %474 = vmax.xlane.f32.xlu0 %v473_v60 }
 0x3a9   :  { %v3353_v0 = vpop.f32.mrb[2].mxu1 }
 0x3aa   :  { %v664_v1 = vpop.f32.mrb[3].mxu1  ;;  %v670_v3 = vadd.f32 %v3353_v0, %v4218_v52 }
 0x3ab   :  { %v665_v2 = vadd.f32 %v664_v1, %v4220_v53 }
 0x3ac   :  { %v676_v5 = vsel %vm472_vm14, %v670_v3, -inf }
 0x3ad   :  { %v673_v4 = vsel %vm472_vm14, %v665_v2, -inf }
 0x3ae   :  { %674 = vmax.xlane.f32.xlu0 %v673_v4 }
 0x3b2   :  { %677 = vmax.xlane.f32.xlu0 %v676_v5 }
 0x432   :  { %v478_v7 = vpop.xlane.xlu1 %477 }
 0x433   :  { %v480_v8 = vsub.f32 %v469_v56, %v478_v7  ;;  %v475_v9 = vpop.xlane.xlu0 %474 }
 0x434   :  { %v479_v10 = vsub.f32 %v464_v58, %v475_v9 }
 0x435   :  { %v483_v12 = vmul.f32 1.442695, %v480_v8 }
 0x436   :  { %v481_v13 = vmul.f32 1.442695, %v479_v10 }
 0x437   :  { %3830 = vpow2.f32 %v483_v12 }
 0x438   :  { %3832 = vpow2.f32 %v481_v13 }
 0x43b   :  { %v675_v14 = vpop.xlane.xlu0 %674 }
 0x43c   :  { %v679_v15 = vsub.f32 %v665_v2, %v675_v14 }
 0x43e   :  { %v681_v16 = vmul.f32 1.442695, %v679_v15 }
 0x43f   :  { %v678_v17 = vpop.xlane.xlu0 %677 }
 0x440   :  { %3834 = vpow2.f32 %v681_v16  ;;  %v680_v18 = vsub.f32 %v670_v3, %v678_v17 }
 0x441   :  { %v3831_v19 = vpop.eup %3830 }
 0x442   :  { %v3833_v20 = vpop.eup %3832  ;;  %v683_v21 = vmul.f32 1.442695, %v680_v18  ;;  %v488_v22 = vsel %vm472_vm14, %v3831_v19, 0.0 }
 0x443   :  { %489 = vadd.xlane.f32.xlu1 %v488_v22  ;;  %v485_v23 = vsel %vm472_vm14, %v3833_v20, 0.0 }
 0x444   :  { %3836 = vpow2.f32 %v683_v21  ;;  %486 = vadd.xlane.f32.xlu0 %v485_v23 }
 0x44a   :  { %v3835_v24 = vpop.eup %3834 }
 0x44b   :  { %v685_v25 = vsel %vm472_vm14, %v3835_v24, 0.0 }
 0x44c   :  { %686 = vadd.xlane.f32.xlu0 %v685_v25 }
 0x44e   :  { %v3837_v26 = vpop.eup %3836 }
 0x44f   :  { %v688_v27 = vsel %vm472_vm14, %v3837_v26, 0.0 }
 0x450   :  { %689 = vadd.xlane.f32.xlu1 %v688_v27 }
 0x461   :  { %3742 = vrot.lane.b32.xlu1 %v4162_v61, %s3976_s2 }
 0x462   :  { %3737 = vrot.lane.b32.xlu0 %v4162_v61, %s3977_s8 }
 0x465   :  { %3747 = vrot.lane.b32.xlu1 %v4162_v61, %s3978_s15 }
 0x466   :  { %784 = vrot.lane.b32.xlu0 %v4174_v63, %s3979_s16 }
 0x469   :  { %782 = vrot.lane.b32.xlu1 %v4164_v62, %s3979_s16 }
 0x4d0   :  { %v490_v29 = vpop.xlane.xlu1 %489 }
 0x4d1   :  { %v487_v28 = vpop.xlane.xlu0 %486 }
 0x4d2   :  { %3838 = vrcp.f32 %v487_v28 }
 0x4d3   :  { %3840 = vrcp.f32 %v490_v29 }
 0x4d9   :  { %v687_v30 = vpop.xlane.xlu0 %686 }
 0x4da   :  { %3842 = vrcp.f32 %v687_v30 }
 0x4dc   :  { %v3839_v31 = vpop.eup %3838 }
 0x4dd   :  { %v690_v32 = vpop.xlane.xlu1 %689  ;;  %v3738_v37 = vpop.permute.xlu0 %3737  ;;  %v493_v39 = vmul.f32 %v3839_v31, %v3833_v20 }
 0x4de   :  { %3844 = vrcp.f32 %v690_v32  ;;  %v3740_v40 = vunpack.i.h.bf16 %v3738_v37  ;;  %v3739_v41 = vunpack.i.l.bf16 %v3738_v37  ;;  %v3841_v43 = vpop.eup %3840 }
 0x4df   :  { %3344 = vmatprep.mubr.msk.f32.mxu0 %vm472_vm14, %v493_v39  ;;  %v494_v48 = vmul.f32 %v3841_v43, %v3831_v19 }
 0x4e0   :  { %v3552_v42 = vpack.c.bf16 %v3740_v40, %v3739_v41 }
 0x4e1   :  { %v3743_v44 = vpop.permute.xlu1 %3742  ;;  %v785_v1 = vpop.permute.xlu0 %784 }
 0x4e2   :  { %v3745_v45 = vunpack.i.h.bf16 %v3743_v44  ;;  %v3744_v46 = vunpack.i.l.bf16 %v3743_v44  ;;  %3553 = vmatprep.subr.bf16.mxu0 %v3552_v42 }
 0x4e3   :  { %3555 = vmatpush3.bf16.msra.mxu0 %v3552_v42 }
 0x4e4   :  { %v3843_v47 = vpop.eup %3842  ;;  %v3562_v49 = vpack.c.bf16 %v3745_v45, %v3744_v46 }
 0x4e5   :  { %v3748_v50 = vpop.permute.xlu1 %3747  ;;  %v693_v54 = vmul.f32 %v3843_v47, %v3835_v24 }
 0x4e6   :  { %v3750_v56 = vunpack.i.h.bf16 %v3748_v50  ;;  %v3749_v57 = vunpack.i.l.bf16 %v3748_v50  ;;  %3345 = vmatmul.mubr.msk.f32.vlgmr.msra.gmra.mrb[2].mxu0 %vm472_vm14, %v494_v48  ;;  %3563 = vmatprep.subr.bf16.mxu0 %v3562_v49 }
 0x4e7   :  { %3565 = vmatpush3.bf16.msra.mxu0 %v3562_v49  ;;  %3358 = vmatprep.mubr.msk.f32.mxu0 %vm472_vm14, %v693_v54  ;;  %v3771_v54 = vpack.i.bf16 %v4141_v38, %v4132_v35 }
 0x4e8   :  { %v3845_v58 = vpop.eup %3844  ;;  %v3566_v59 = vpack.c.bf16 %v3750_v56, %v3749_v57 }
 0x4e9   :  { %v694_v60 = vmul.f32 %v3845_v58, %v3837_v26  ;;  %v783_v0 = vpop.permute.xlu1 %782 }
 0x4ea   :  { %3568 = vmatprep.subr.msk.bf16.mxu0 %vm4180_vm3, %v3566_v59 }
 0x4eb   :  { %3359 = vmatmul.mubr.msk.f32.vlgmr.msra.gmra.mrb[4].mxu0 %vm472_vm14, %v694_v60 }
 0x4ec   :  { %3365 = vmatprep.mubr.msk.f32.mxu0 %vm386_vm2, %v783_v0 }
 0x4f0   :  { %3571 = vmatpush3.bf16.xpose.msk.msra.mxu0 %vm4180_vm3, %v3566_v59 }
 0x4f7   :  { %3366 = vmatmul.mubr.msk.f32.vlgmr.msra.gmra.mrb[6].mxu0 %vm386_vm2, %v785_v1 }
 0x5b9   :  { %v4254_v2 = vpop.f32.mrb[2].mxu0 }
 0x5ba   :  { %v4256_v3 = vpop.f32.mrb[3].mxu0 }
 0x5be   :  { %v4258_v4 = vpop.f32.mrb[4].mxu0 }
 0x5bf   :  { %v4260_v5 = vpop.f32.mrb[5].mxu0 }
 0x5ca   :  { %v3367_v7 = vpop.f32.mrb[6].mxu0 }
 0x5cb   :  { %v870_v8 = vadd.f32 %v3367_v7, %v4218_v52  ;;  %v864_v9 = vpop.f32.mrb[7].mxu0 }
 0x5cc   :  { %v865_v10 = vadd.f32 %v864_v9, %v4220_v53 }
 0x5cd   :  { %v876_v12 = vsel %vm472_vm14, %v870_v8, -inf }
 0x5ce   :  { %877 = vmax.xlane.f32.xlu0 %v876_v12  ;;  %v873_v13 = vsel %vm472_vm14, %v865_v10, -inf }
 0x5cf   :  { %874 = vmax.xlane.f32.xlu1 %v873_v13 }
 0x5e0   :  { %3752 = vrot.lane.b32.xlu1 %v4162_v61, %s3980_s9 }
 0x5e4   :  { %982 = vrot.lane.b32.xlu1 %v4164_v62, %s3981_s0 }
 0x5e8   :  { %984 = vrot.lane.b32.xlu1 %v4174_v63, %s3981_s0 }
 0x65b   :  { %v878_v14 = vpop.xlane.xlu0 %877 }
 0x65c   :  { %v880_v15 = vsub.f32 %v870_v8, %v878_v14  ;;  %v875_v16 = vpop.xlane.xlu1 %874 }
 0x65d   :  { %v879_v17 = vsub.f32 %v865_v10, %v875_v16 }
 0x65e   :  { %v883_v18 = vmul.f32 1.442695, %v880_v15 }
 0x65f   :  { %v881_v19 = vmul.f32 1.442695, %v879_v17 }
 0x660   :  { %3846 = vpow2.f32 %v883_v18  ;;  %v3753_v20 = vpop.permute.xlu1 %3752 }
 0x661   :  { %v3755_v21 = vunpack.i.h.bf16 %v3753_v20  ;;  %v3754_v22 = vunpack.i.l.bf16 %v3753_v20  ;;  %3848 = vpow2.f32 %v881_v19 }
 0x663   :  { %v3572_v23 = vpack.c.bf16 %v3755_v21, %v3754_v22 }
 0x664   :  { %v983_v41 = vpop.permute.xlu1 %982 }
 0x665   :  { %3573 = vmatprep.subr.bf16.mxu1 %v3572_v23 }
 0x666   :  { %3575 = vmatpush3.bf16.msra.mxu1 %v3572_v23 }
 0x668   :  { %v985_v42 = vpop.permute.xlu1 %984 }
 0x66a   :  { %v3847_v24 = vpop.eup %3846 }
 0x66b   :  { %v888_v62 = vsel %vm472_vm14, %v3847_v24, 0.0  ;;  %v3849_v25 = vpop.eup %3848 }
 0x66c   :  { %889 = vadd.xlane.f32.xlu0 %v888_v62  ;;  %v885_v63 = vsel %vm472_vm14, %v3849_v25, 0.0 }
 0x670   :  { %886 = vadd.xlane.f32.xlu0 %v885_v63 }
 0x686   :  { %3757 = vrot.lane.b32.xlu0 %v4162_v61, %s3982_s1 }
 0x6f9   :  { %v890_v26 = vpop.xlane.xlu0 %889 }
 0x6fa   :  { %3850 = vrcp.f32 %v890_v26 }
 0x6fd   :  { %v887_v27 = vpop.xlane.xlu0 %886 }
 0x6fe   :  { %3852 = vrcp.f32 %v887_v27 }
 0x701   :  { %v3758_v28 = vpop.permute.xlu0 %3757 }
 0x702   :  { %v3760_v29 = vunpack.i.h.bf16 %v3758_v28  ;;  %v3759_v30 = vunpack.i.l.bf16 %v3758_v28 }
 0x704   :  { %v3576_v31 = vpack.c.bf16 %v3760_v29, %v3759_v30  ;;  %v3851_v32 = vpop.eup %3850 }
 0x705   :  { %v894_v40 = vmul.f32 %v3851_v32, %v3847_v24 }
 0x706   :  { %3578 = vmatprep.subr.msk.bf16.mxu1 %vm4180_vm3, %v3576_v31 }
 0x708   :  { %v3853_v37 = vpop.eup %3852 }
 0x709   :  { %v893_v39 = vmul.f32 %v3853_v37, %v3849_v25 }
 0x70b   :  { %3372 = vmatprep.mubr.msk.f32.mxu1 %vm472_vm14, %v893_v39 }
 0x70c   :  { %3373 = vmatmul.mubr.msk.f32.vlgmr.msra.gmra.mrb[4].mxu1 %vm472_vm14, %v894_v40 }
 0x70d   :  { %3581 = vmatpush3.bf16.xpose.msk.msra.mxu1 %vm4180_vm3, %v3576_v31  ;;  %3379 = vmatprep.mubr.msk.f32.mxu1 %vm386_vm2, %v983_v41 }
 0x714   :  { %3380 = vmatmul.mubr.msk.f32.vlgmr.msra.gmra.mrb[6].mxu1 %vm386_vm2, %v985_v42 }
 0x7df   :  { %v3374_v43 = vpop.f32.mrb[4].mxu1 }
 0x7e0   :  { %v973_v44 = vpop.f32.mrb[5].mxu1 }
 0x7e7   :  { %v3381_v45 = vpop.f32.mrb[6].mxu1 }
 0x7e8   :  { %v1070_v46 = vadd.f32 %v3381_v45, %v4218_v52  ;;  %v1064_v47 = vpop.f32.mrb[7].mxu1 }
 0x7e9   :  { %v1065_v48 = vadd.f32 %v1064_v47, %v4220_v53 }
 0x7ea   :  { %v1076_v49 = vsel %vm472_vm14, %v1070_v46, -inf }
 0x7eb   :  { %1077 = vmax.xlane.f32.xlu0 %v1076_v49  ;;  %v1073_v50 = vsel %vm472_vm14, %v1065_v48, -inf }
 0x7ec   :  { %1074 = vmax.xlane.f32.xlu1 %v1073_v50 }
 0x7fd   :  { %3762 = vrot.lane.b32.xlu1 %v4162_v61, %s3983_s10 }
 0x801   :  { %3772 = vrot.lane.b32.xlu1 %v3771_v54, %s3984_s17 }
 0x805   :  { %1184 = vrot.lane.b32.xlu1 %v4260_v5, %s3985_s18 }
 0x809   :  { %1186 = vrot.lane.b32.xlu1 %v4258_v4, %s3985_s18 }
 0x80d   :  { %1194 = vrot.lane.b32.xlu1 %v3374_v43, %s3986_s21 }
 0x878   :  { %v1078_v56 = vpop.xlane.xlu0 %1077 }
 0x879   :  { %v1080_v57 = vsub.f32 %v1070_v46, %v1078_v56  ;;  %v1075_v58 = vpop.xlane.xlu1 %1074 }
 0x87a   :  { %v1079_v61 = vsub.f32 %v1065_v48, %v1075_v58  ;;  %v293_v58 = vld [vmem:[%s4673_s3 + $0x18] sm:$0xff] }
 0x87b   :  { %v1083_v59 = vmul.f32 1.442695, %v1080_v57 }
 0x87c   :  { %v1081_v60 = vmul.f32 1.442695, %v1079_v61 }
 0x87d   :  { %v3763_v35 = vpop.permute.xlu1 %3762 }
 0x87e   :  { %3854 = vpow2.f32 %v1081_v60  ;;  %v3765_v38 = vunpack.i.h.bf16 %v3763_v35  ;;  %v3764_v0 = vunpack.i.l.bf16 %v3763_v35  ;;  %v295_v60 = vld [vmem:[%s4673_s3 + $0x38] sm:$0xff] }
 0x87f   :  { %3856 = vpow2.f32 %v1083_v59  ;;  %v294_v59 = vld [vmem:[%s4673_s3 + $0x28] sm:$0xff] }
 0x880   :  { %v3582_v1 = vpack.c.bf16 %v3765_v38, %v3764_v0  ;;  %v3598_v35 = vpack.c.bf16 %v295_v60, %v294_v59 }
 0x881   :  { %v3773_v16 = vpop.permute.xlu1 %3772 }
 0x882   :  { %3583 = vmatprep.subr.bf16.mxu0 %v3582_v1  ;;  %v3775_v18 = vunpack.i.h.bf16 %v3773_v16  ;;  %v3774_v19 = vunpack.i.l.bf16 %v3773_v16 }
 0x883   :  { %3585 = vmatpush3.bf16.msra.mxu0 %v3582_v1 }
 0x884   :  { %v3590_v34 = vpack.c.bf16 %v3775_v18, %v3774_v19  ;;  %v1445_v19 = vld [vmem:[%s4674_s4] sm:$0xff] }
 0x885   :  { %v1185_v23 = vpop.permute.xlu1 %1184 }
 0x886   :  { %v1206_v63 = vsel %vm386_vm2, %v4256_v3, %v1185_v23  ;;  %v1213_v3 = vld [vmem:[%s4676_s6 + $0x5] ss:$0 sm:$0xff]  ;;  %v1450_v23 = vld [vmem:[%s4674_s4 + $0x28] sm:$0xff] }
 0x888   :  { %v3855_v5 = vpop.eup %3854 }
 0x889   :  { %v1085_v4 = vsel %vm472_vm14, %v3855_v5, 0.0  ;;  %v3857_v7 = vpop.eup %3856  ;;  %v1187_v24 = vpop.permute.xlu1 %1186 }
 0x88a   :  { %1086 = vadd.xlane.f32.xlu0 %v1085_v4  ;;  %v1088_v8 = vsel %vm472_vm14, %v3857_v7, 0.0  ;;  %v1207_v27 = vsel %vm386_vm2, %v4254_v2, %v1187_v24 }
 0x88d   :  { %v1195_v62 = vpop.permute.xlu1 %1194 }
 0x88e   :  { %1089 = vadd.xlane.f32.xlu0 %v1088_v8  ;;  %v1209_v30 = vsel %vm472_vm14, %v1207_v27, %v1195_v62  ;;  %v1451_v62 = vld [vmem:[%s4674_s4 + $0x30] sm:$0xff] }
 0x8a4   :  { %3767 = vrot.lane.b32.xlu0 %v3766_v36, %s3984_s17 }
 0x8a8   :  { %1192 = vrot.lane.b32.xlu0 %v973_v44, %s3986_s21 }
 0x917   :  { %v1087_v9 = vpop.xlane.xlu0 %1086 }
 0x918   :  { %3858 = vrcp.f32 %v1087_v9  ;;  %v1313_v9 = vld [vmem:[%s4676_s6 + $0x6] ss:$0 sm:$0xff] }
 0x91b   :  { %v1090_v10 = vpop.xlane.xlu0 %1089 }
 0x91c   :  { %3860 = vrcp.f32 %v1090_v10 }
 0x91f   :  { %v3768_v12 = vpop.permute.xlu0 %3767 }
 0x920   :  { %v3770_v13 = vunpack.i.h.bf16 %v3768_v12  ;;  %v3769_v14 = vunpack.i.l.bf16 %v3768_v12  ;;  %v1314_v12 = vld [vmem:[%s4676_s6 + $0x7] ss:$0 sm:$0xff] }
 0x922   :  { %v3859_v15 = vpop.eup %3858  ;;  %v3586_v17 = vpack.c.bf16 %v3770_v13, %v3769_v14 }
 0x923   :  { %v1093_v20 = vmul.f32 %v3859_v15, %v3855_v5  ;;  %v1193_v25 = vpop.permute.xlu0 %1192 }
 0x924   :  { %3587 = vmatprep.subr.bf16.mxu0 %v3586_v17  ;;  %v1208_v28 = vsel %vm472_vm14, %v1206_v63, %v1193_v25  ;;  %v1452_v25 = vld [vmem:[%s4674_s4 + $0x38] sm:$0xff] }
 0x925   :  { %3386 = vmatprep.mubr.msk.f32.mxu0 %vm472_vm14, %v1093_v20  ;;  %v1446_v20 = vld [vmem:[%s4674_s4 + $0x8] sm:$0xff]  ;;  %v3614_v63 = vpack.c.bf16 %v1452_v25, %v1451_v62 }
 0x926   :  { %v3861_v33 = vpop.eup %3860 }
 0x927   :  { %v1094_v36 = vmul.f32 %v3861_v33, %v3857_v7  ;;  %v3602_v33 = vpack.c.bf16 %v1446_v20, %v1445_v19 }
 0x929   :  { %3387 = vmatmul.mubr.msk.f32.vlgmr.msra.gmra.mrb[8].mxu0 %vm472_vm14, %v1094_v36  ;;  %v1448_v36 = vld [vmem:[%s4674_s4 + $0x18] sm:$0xff] }
 0x92a   :  { %3589 = vmatpush3.bf16.msra.mxu0 %v3586_v17 }
 0x92b   :  { %3591 = vmatprep.subr.bf16.mxu0 %v3590_v34 }
 0x92e   :  { %3593 = vmatpush3.bf16.msra.mxu0 %v3590_v34  ;;  %v1447_v34 = vld [vmem:[%s4674_s4 + $0x10] sm:$0xff] }
 0x92f   :  { %3603 = vmatprep.subr.bf16.mxu0 %v3602_v33 }
 0x9fc   :  { %v3388_v21 = vpop.f32.mrb[8].mxu0 }
 0x9fd   :  { %1202 = vrot.lane.b32.xlu1 %v3388_v21, %s3987_s22  ;;  %v1173_v22 = vpop.f32.mrb[9].mxu0  ;;  %v3606_v21 = vpack.c.bf16 %v1448_v36, %v1447_v34 }
 0x9fe   :  { %1200 = vrot.lane.b32.xlu0 %v1173_v22, %s3987_s22  ;;  %v1449_v22 = vld [vmem:[%s4674_s4 + $0x20] sm:$0xff] }
 0x9ff   :  { %v3610_v24 = vpack.c.bf16 %v1450_v23, %v1449_v22  ;;  %v1538_v23 = vld [vmem:[%s4676_s6 + $0x12] ss:$0 sm:$0xff] }
 0xa6f   :  { %v1203_v26 = vpop.permute.xlu1 %1202 }
 0xa70   :  { %v1201_v29 = vpop.permute.xlu0 %1200  ;;  %v1212_v32 = vsel %vm1210_vm15, %v1209_v30, %v1203_v26  ;;  %v1345_v26 = vld [vmem:[%s4676_s6 + $0x10] ss:$0 sm:$0xff] }
 0xa71   :  { %v1211_v31 = vsel %vm1210_vm15, %v1208_v28, %v1201_v29 }
 0xa72   :  { %3397 = vmatprep.mubr.msk.f32.mxu0 %vm140_vm1, %v1211_v31 }
 0xa73   :  { %3398 = vmatmul.mubr.msk.f32.vlgmr.msra.gmra.mrb[10].mxu0 %vm140_vm1, %v1212_v32 }
 0xa74   :  { %3605 = vmatpush3.bf16.msra.mxu0 %v3602_v33 }
 0xa75   :  { %3607 = vmatprep.subr.bf16.mxu0 %v3606_v21 }
 0xa78   :  { %3609 = vmatpush3.bf16.msra.mxu0 %v3606_v21 }
 0xa79   :  { %3611 = vmatprep.subr.bf16.mxu0 %v3610_v24 }
 0xa7c   :  { %3613 = vmatpush3.bf16.msra.mxu0 %v3610_v24 }
 0xa7d   :  { %3615 = vmatprep.subr.bf16.mxu0 %v3614_v63 }
 0xa80   :  { %3617 = vmatpush3.bf16.msra.mxu0 %v3614_v63  ;;  %v1539_v63 = vld [vmem:[%s4676_s6 + $0x13] ss:$0 sm:$0xff] }
 0xb46   :  { %v3399_v37 = vpop.f32.mrb[10].mxu0 }
 0xb47   :  { %v1308_v39 = vadd.f32 %v3399_v37, %v1213_v3  ;;  %v1302_v2 = vpop.f32.mrb[11].mxu0 }
 0xb48   :  { %v1303_v40 = vadd.f32 %v1302_v2, %v1213_v3 }
 0xb49   :  { %v1312_v41 = vadd.f32 %v1308_v39, %v4155_v55 }
 0xb4a   :  { %v1311_v42 = vadd.f32 %v1303_v40, %v4151_v51  ;;  %v292_v51 = vld [vmem:[%s4673_s3 + $0x8] sm:$0xff] }
 0xb4b   :  { %v1318_v43 = vsel %vm140_vm1, %v1312_v41, 0.0  ;;  %v3594_v61 = vpack.c.bf16 %v293_v58, %v292_v51 }
 0xb4c   :  { %1319 = vadd.xlane.f32.xlu1 %v1318_v43  ;;  %v1315_v44 = vsel %vm140_vm1, %v1311_v42, 0.0 }
 0xb4d   :  { %1316 = vadd.xlane.f32.xlu0 %v1315_v44  ;;  %3595 = vmatprep.subr.bf16.mxu1 %v3594_v61 }
 0xb4e   :  { %3597 = vmatpush3.bf16.msra.mxu1 %v3594_v61 }
 0xb4f   :  { %3599 = vmatprep.subr.bf16.mxu1 %v3598_v35 }
 0xb52   :  { %3601 = vmatpush3.bf16.msra.mxu1 %v3598_v35 }
 0xbd9   :  { %v1320_v45 = vpop.xlane.xlu1 %1319 }
 0xbda   :  { %v1322_v46 = vmul.f32 0.03125, %v1320_v45  ;;  %v1317_v47 = vpop.xlane.xlu0 %1316 }
 0xbdb   :  { %v1321_v48 = vmul.f32 0.03125, %v1317_v47 }
 0xbdc   :  { %v1324_v49 = vsub.f32 %v1312_v41, %v1322_v46 }
 0xbdd   :  { %v1323_v50 = vsub.f32 %v1311_v42, %v1321_v48 }
 0xbde   :  { %v1326_v57 = vmul.f32 %v1324_v49, %v1324_v49 }
 0xbdf   :  { %v1325_v54 = vmul.f32 %v1323_v50, %v1323_v50 }
 0xbe0   :  { %v1330_v55 = vsel %vm140_vm1, %v1326_v57, 0.0 }
 0xbe1   :  { %v1327_v56 = vsel %vm140_vm1, %v1325_v54, 0.0 }
 0xbe2   :  { %1328 = vadd.xlane.f32.xlu0 %v1327_v56  ;;  %v1453_v56 = vld [vmem:[%s4676_s6 + $0x11] ss:$0 sm:$0xff] }
 0xbe6   :  { %1331 = vadd.xlane.f32.xlu0 %v1330_v55 }
 0xc6f   :  { %v1329_v38 = vpop.xlane.xlu0 %1328 }
 0xc70   :  { %v1333_v0 = vmul.f32 0.03125, %v1329_v38 }
 0xc72   :  { %v1335_v1 = vadd.f32 1e-12, %v1333_v0 }
 0xc73   :  { %v1332_v5 = vpop.xlane.xlu0 %1331 }
 0xc74   :  { %3862 = vrsqrt.f32 %v1335_v1  ;;  %v1334_v4 = vmul.f32 0.03125, %v1332_v5 }
 0xc76   :  { %v1336_v7 = vadd.f32 1e-12, %v1334_v4 }
 0xc78   :  { %3864 = vrsqrt.f32 %v1336_v7 }
 0xc7e   :  { %v3863_v8 = vpop.eup %3862 }
 0xc7f   :  { %v1339_v10 = vmul.f32 %v3863_v8, %v1323_v50 }
 0xc81   :  { %v1341_v13 = vmul.f32 %v1339_v10, %v1313_v9 }
 0xc82   :  { %v3865_v14 = vpop.eup %3864 }
 0xc83   :  { %v1340_v15 = vmul.f32 %v3865_v14, %v1324_v49  ;;  %v1343_v16 = vadd.f32 %v1341_v13, %v1314_v12  ;;  %v4387_v13 = vld [vmem:[%s4673_s3 + $0x40] sm:$0xff]  ;;  %v4392_v14 = vld [vmem:[%s4673_s3 + $0x50] sm:$0xff] }
 0xc85   :  { %v1342_v17 = vmul.f32 %v1340_v15, %v1313_v9  ;;  %3408 = vmatprep.mubr.msk.f32.mxu1 %vm140_vm1, %v1343_v16  ;;  %v3618_v15 = vpack.c.bf16 %v4392_v14, %v4387_v13 }
 0xc87   :  { %v1344_v18 = vadd.f32 %v1342_v17, %v1314_v12  ;;  %v4404_v17 = vld [vmem:[%s4673_s3 + $0x70] sm:$0xff]  ;;  %3619 = vmatprep.subr.bf16.mxu1 %v3618_v15 }
 0xc89   :  { %3409 = vmatmul.mubr.msk.f32.vlgmr.msra.gmra.mrb[8].mxu1 %vm140_vm1, %v1344_v18 }
 0xc8a   :  { %3621 = vmatpush3.bf16.msra.mxu1 %v3618_v15 }
 0xd5c   :  { %v3410_v27 = vpop.f32.mrb[8].mxu1 }
 0xd5d   :  { %v1424_v28 = vadd.f32 %v3410_v27, %v1345_v26  ;;  %v1418_v29 = vpop.f32.mrb[9].mxu1 }
 0xd5e   :  { %v1419_v30 = vadd.f32 %v1418_v29, %v1345_v26 }
 0xd5f   :  { %v1430_v31 = vmul.f32 0.044715, %v1424_v28  ;;  %v1428_v49 = vmul.f32 0.5, %v1424_v28 }
 0xd60   :  { %v1429_v32 = vmul.f32 0.044715, %v1419_v30  ;;  %v1427_v47 = vmul.f32 0.5, %v1419_v30 }
 0xd61   :  { %v1432_v3 = vmul.f32 %v1430_v31, %v1424_v28 }
 0xd62   :  { %v1431_v37 = vmul.f32 %v1429_v32, %v1419_v30 }
 0xd63   :  { %v1434_v39 = vmul.f32 %v1432_v3, %v1424_v28 }
 0xd64   :  { %v1433_v2 = vmul.f32 %v1431_v37, %v1419_v30 }
 0xd65   :  { %v1436_v40 = vadd.f32 %v1434_v39, %v1424_v28 }
 0xd66   :  { %v1435_v41 = vadd.f32 %v1433_v2, %v1419_v30  ;;  %v1579_v30 = vld [vmem:[%s4676_s6 + $0x14] ss:$0 sm:$0xff] }
 0xd67   :  { %v1438_v42 = vmul.f32 0.7978846, %v1436_v40 }
 0xd68   :  { %v1437_v43 = vmul.f32 0.7978846, %v1435_v41 }
 0xd69   :  { %3866 = vtanh.f32 %v1438_v42 }
 0xd6a   :  { %3868 = vtanh.f32 %v1437_v43 }
 0xd73   :  { %v3867_v44 = vpop.eup %3866 }
 0xd74   :  { %v3869_v45 = vpop.eup %3868  ;;  %v1442_v46 = vadd.f32 1.0, %v3867_v44 }
 0xd75   :  { %v1441_v48 = vadd.f32 1.0, %v3869_v45 }
 0xd76   :  { %v1444_v54 = vmul.f32 %v1442_v46, %v1428_v49 }
 0xd77   :  { %v1443_v50 = vmul.f32 %v1441_v48, %v1427_v47 }
 0xd79   :  { %3427 = vmatprep.mubr.msk.f32.mxu0 %vm1454_vm0, %v1443_v50 }
 0xd7a   :  { %3428 = vmatmul.mubr.msk.f32.vlgmr.msra.gmra.mrb[12].mxu0 %vm1454_vm0, %v1444_v54 }
 0xe4d   :  { %v3429_v57 = vpop.f32.mrb[12].mxu0 }
 0xe4e   :  { %v1533_v55 = vadd.f32 %v3429_v57, %v1453_v56  ;;  %v1527_v51 = vpop.f32.mrb[13].mxu0 }
 0xe4f   :  { %v1528_v58 = vadd.f32 %v1527_v51, %v1453_v56 }
 0xe50   :  { %v1537_v61 = vadd.f32 %v1533_v55, %v1344_v18 }
 0xe51   :  { %v1536_v59 = vadd.f32 %v1528_v58, %v1343_v16  ;;  %v4399_v16 = vld [vmem:[%s4673_s3 + $0x60] sm:$0xff] }
 0xe52   :  { %v1543_v60 = vsel %vm140_vm1, %v1537_v61, 0.0  ;;  %v3622_v18 = vpack.c.bf16 %v4404_v17, %v4399_v16  ;;  %v3821_v6 = vpack.i.bf16 %v4404_v17, %v4399_v16 }
 0xe53   :  { %1544 = vadd.xlane.f32.xlu1 %v1543_v60  ;;  %v1540_v35 = vsel %vm140_vm1, %v1536_v59, 0.0 }
 0xe54   :  { %1541 = vadd.xlane.f32.xlu0 %v1540_v35  ;;  %3623 = vmatprep.subr.bf16.mxu1 %v3622_v18 }
 0xe55   :  { %3625 = vmatpush3.bf16.msra.mxu1 %v3622_v18 }
 0xee0   :  { %v1545_v38 = vpop.xlane.xlu1 %1544 }
 0xee1   :  { %v1547_v0 = vmul.f32 0.03125, %v1545_v38  ;;  %v1542_v1 = vpop.xlane.xlu0 %1541 }
 0xee2   :  { %v1546_v5 = vmul.f32 0.03125, %v1542_v1 }
 0xee3   :  { %v1549_v4 = vsub.f32 %v1537_v61, %v1547_v0 }
 0xee4   :  { %v1548_v7 = vsub.f32 %v1536_v59, %v1546_v5 }
 0xee5   :  { %v1551_v8 = vmul.f32 %v1549_v4, %v1549_v4 }
 0xee6   :  { %v1550_v9 = vmul.f32 %v1548_v7, %v1548_v7 }
 0xee7   :  { %v1555_v10 = vsel %vm140_vm1, %v1551_v8, 0.0 }
 0xee8   :  { %1556 = vadd.xlane.f32.xlu1 %v1555_v10  ;;  %v1552_v12 = vsel %vm140_vm1, %v1550_v9, 0.0 }
 0xee9   :  { %1553 = vadd.xlane.f32.xlu0 %v1552_v12 }
 0xf75   :  { %v1557_v19 = vpop.xlane.xlu1 %1556 }
 0xf76   :  { %v1559_v20 = vmul.f32 0.03125, %v1557_v19  ;;  %v1554_v33 = vpop.xlane.xlu0 %1553 }
 0xf77   :  { %v1558_v34 = vmul.f32 0.03125, %v1554_v33 }
 0xf78   :  { %v1561_v36 = vadd.f32 1e-12, %v1559_v20 }
 0xf79   :  { %v1560_v21 = vadd.f32 1e-12, %v1558_v34 }
 0xf7a   :  { %3870 = vrsqrt.f32 %v1561_v36 }
 0xf7b   :  { %3872 = vrsqrt.f32 %v1560_v21 }
 0xf84   :  { %v3871_v22 = vpop.eup %3870 }
 0xf85   :  { %v3873_v24 = vpop.eup %3872  ;;  %v1565_v62 = vmul.f32 %v3871_v22, %v1549_v4 }
 0xf86   :  { %v1564_v25 = vmul.f32 %v3873_v24, %v1548_v7 }
 0xf87   :  { %v1567_v26 = vmul.f32 %v1565_v62, %v1538_v23 }
 0xf88   :  { %v1566_v27 = vmul.f32 %v1564_v25, %v1538_v23 }
 0xf89   :  { %v4416_v29 = vadd.f32 %v1567_v26, %v1539_v63 }
 0xf8a   :  { %v4414_v28 = vadd.f32 %v1566_v27, %v1539_v63 }
 0xf8c   :  { %3438 = vmatprep.mubr.msk.f32.mxu1 %vm140_vm1, %v4414_v28 }
 0xf8d   :  { %3439 = vmatmul.mubr.msk.f32.vlgmr.msra.gmra.mrb[10].mxu1 %vm140_vm1, %v4416_v29 }
0x1060   :  { %v3440_v31 = vpop.f32.mrb[10].mxu1 }
0x1061   :  { %v1658_v32 = vadd.f32 %v3440_v31, %v1579_v30  ;;  %v1652_v3 = vpop.f32.mrb[11].mxu1 }
0x1062   :  { %v1653_v37 = vadd.f32 %v1652_v3, %v1579_v30 }
0x1063   :  { %v4437_v40 = vmul.f32 0.35355338, %v1658_v32 }
0x1064   :  { %v4425_v39 = vpack.i.bf16 %v1658_v32, %v1653_v37  ;;  %v4427_v2 = vmul.f32 0.35355338, %v1653_v37 }
0x1066   :  { %3782 = vrot.lane.b32.xlu1 %v4425_v39, %s3972_s20  ;;  %3777 = vrot.lane.b32.xlu0 %v4425_v39, %s3973_s12 }
0x1067   :  { %3445 = vmatprep.mubr.msk.f32.mxu1 %vm386_vm2, %v4427_v2 }
0x106a   :  { %1863 = vrot.lane.b32.xlu1 %v4427_v2, %s3974_s23 }
0x106e   :  { %1865 = vrot.lane.b32.xlu1 %v4437_v40, %s3974_s23 }
0x10d8   :  { %v3783_v41 = vpop.permute.xlu1 %3782  ;;  %v3778_v42 = vpop.permute.xlu0 %3777 }
0x10d9   :  { %v3785_v43 = vunpack.i.h.bf16 %v3783_v41  ;;  %v3784_v44 = vunpack.i.l.bf16 %v3783_v41  ;;  %v3780_v45 = vunpack.i.h.bf16 %v3778_v42  ;;  %v3779_v46 = vunpack.i.l.bf16 %v3778_v42 }
0x10db   :  { %v3626_v47 = vpack.c.bf16 %v3780_v45, %v3779_v46  ;;  %v3636_v48 = vpack.c.bf16 %v3785_v43, %v3784_v44 }
0x10dc   :  { %v1864_v49 = vpop.permute.xlu1 %1863 }
0x10dd   :  { %3628 = vmatprep.subr.msk.bf16.mxu1 %vm4180_vm3, %v3626_v47 }
0x10de   :  { %3631 = vmatpush3.bf16.xpose.msk.msra.mxu1 %vm4180_vm3, %v3626_v47 }
0x10df   :  { %3638 = vmatprep.subr.msk.bf16.mxu1 %vm4180_vm3, %v3636_v48 }
0x10e0   :  { %v1866_v50 = vpop.permute.xlu1 %1865 }
0x10e5   :  { %3446 = vmatmul.mubr.msk.f32.vlgmr.msra.gmra.mrb[12].mxu1 %vm386_vm2, %v4437_v40 }
0x10e6   :  { %3641 = vmatpush3.bf16.xpose.msk.msra.mxu1 %vm4180_vm3, %v3636_v48  ;;  %3459 = vmatprep.mubr.msk.f32.mxu1 %vm386_vm2, %v1864_v49 }
0x10ed   :  { %3460 = vmatmul.mubr.msk.f32.vlgmr.msra.gmra.mrb[14].mxu1 %vm386_vm2, %v1866_v50 }
0x11b8   :  { %v3447_v54 = vpop.f32.mrb[12].mxu1 }
0x11b9   :  { %v1751_v56 = vadd.f32 %v3447_v54, %v4218_v52  ;;  %v1745_v57 = vpop.f32.mrb[13].mxu1 }
0x11ba   :  { %v1746_v55 = vadd.f32 %v1745_v57, %v4220_v53 }
0x11bb   :  { %v1757_v51 = vsel %vm472_vm14, %v1751_v56, -inf }
0x11bc   :  { %1758 = vmax.xlane.f32.xlu1 %v1757_v51  ;;  %v1754_v58 = vsel %vm472_vm14, %v1746_v55, -inf }
0x11bd   :  { %1755 = vmax.xlane.f32.xlu0 %v1754_v58 }
0x11c0   :  { %v3461_v61 = vpop.f32.mrb[14].mxu1 }
0x11c1   :  { %v1945_v59 = vpop.f32.mrb[15].mxu1  ;;  %v1951_v35 = vadd.f32 %v3461_v61, %v4218_v52 }
0x11c2   :  { %v1946_v60 = vadd.f32 %v1945_v59, %v4220_v53 }
0x11c3   :  { %v1957_v0 = vsel %vm472_vm14, %v1951_v35, -inf }
0x11c4   :  { %v1954_v38 = vsel %vm472_vm14, %v1946_v60, -inf }
0x11c5   :  { %1955 = vmax.xlane.f32.xlu0 %v1954_v38 }
0x11c9   :  { %1958 = vmax.xlane.f32.xlu0 %v1957_v0 }
0x1249   :  { %v1759_v1 = vpop.xlane.xlu1 %1758 }
0x124a   :  { %v1761_v5 = vsub.f32 %v1751_v56, %v1759_v1  ;;  %v1756_v4 = vpop.xlane.xlu0 %1755 }
0x124b   :  { %v1760_v7 = vsub.f32 %v1746_v55, %v1756_v4 }
0x124c   :  { %v1764_v8 = vmul.f32 1.442695, %v1761_v5 }
0x124d   :  { %v1762_v9 = vmul.f32 1.442695, %v1760_v7 }
0x124e   :  { %3874 = vpow2.f32 %v1764_v8 }
0x124f   :  { %3876 = vpow2.f32 %v1762_v9 }
0x1252   :  { %v1956_v10 = vpop.xlane.xlu0 %1955 }
0x1253   :  { %v1960_v12 = vsub.f32 %v1946_v60, %v1956_v10 }
0x1255   :  { %v1962_v15 = vmul.f32 1.442695, %v1960_v12 }
0x1256   :  { %v1959_v18 = vpop.xlane.xlu0 %1958 }
0x1257   :  { %3878 = vpow2.f32 %v1962_v15  ;;  %v1961_v19 = vsub.f32 %v1951_v35, %v1959_v18 }
0x1258   :  { %v3875_v20 = vpop.eup %3874 }
0x1259   :  { %v3877_v33 = vpop.eup %3876  ;;  %v1964_v34 = vmul.f32 1.442695, %v1961_v19  ;;  %v1769_v36 = vsel %vm472_vm14, %v3875_v20, 0.0 }
0x125a   :  { %1770 = vadd.xlane.f32.xlu1 %v1769_v36  ;;  %v1766_v21 = vsel %vm472_vm14, %v3877_v33, 0.0 }
0x125b   :  { %3880 = vpow2.f32 %v1964_v34  ;;  %1767 = vadd.xlane.f32.xlu0 %v1766_v21 }
0x1261   :  { %v3879_v22 = vpop.eup %3878 }
0x1262   :  { %v1966_v23 = vsel %vm472_vm14, %v3879_v22, 0.0 }
0x1263   :  { %1967 = vadd.xlane.f32.xlu0 %v1966_v23 }
0x1265   :  { %v3881_v24 = vpop.eup %3880 }
0x1266   :  { %v1969_v62 = vsel %vm472_vm14, %v3881_v24, 0.0 }
0x1267   :  { %1970 = vadd.xlane.f32.xlu1 %v1969_v62 }
0x1278   :  { %3792 = vrot.lane.b32.xlu1 %v4425_v39, %s3976_s2 }
0x1279   :  { %3787 = vrot.lane.b32.xlu0 %v4425_v39, %s3977_s8 }
0x127c   :  { %3797 = vrot.lane.b32.xlu1 %v4425_v39, %s3978_s15  ;;  %s3989_s15 = smov [#allocation8]  }
0x127d   :  { %2065 = vrot.lane.b32.xlu0 %v4437_v40, %s3979_s16 }
0x1280   :  { %2063 = vrot.lane.b32.xlu1 %v4427_v2, %s3979_s16  ;;  %s3032_s16 = sshll.u32 %s3989_s15, 4  ;;  %s3033_s16 = int_to_ptr.vmem [resolvable:$true] %s3032_s16 }
0x1281   :  { %p3947_p11 = scmp.lt.s32.totalorder %s3033_s16, %s3033_s16 }
0x12e7   :  { %v1771_v63 = vpop.xlane.xlu1 %1770 }
0x12e8   :  { %v1768_v25 = vpop.xlane.xlu0 %1767 }
0x12e9   :  { %3882 = vrcp.f32 %v1768_v25 }
0x12ea   :  { %3884 = vrcp.f32 %v1771_v63 }
0x12f0   :  { %v1968_v26 = vpop.xlane.xlu0 %1967 }
0x12f1   :  { %3886 = vrcp.f32 %v1968_v26 }
0x12f3   :  { %v3883_v27 = vpop.eup %3882 }
0x12f4   :  { %v1971_v30 = vpop.xlane.xlu1 %1970  ;;  %v3788_v31 = vpop.permute.xlu0 %3787  ;;  %v1774_v32 = vmul.f32 %v3883_v27, %v3877_v33 }
0x12f5   :  { %3888 = vrcp.f32 %v1971_v30  ;;  %v3790_v3 = vunpack.i.h.bf16 %v3788_v31  ;;  %v3789_v37 = vunpack.i.l.bf16 %v3788_v31  ;;  %v3885_v42 = vpop.eup %3884 }
0x12f6   :  { %3452 = vmatprep.mubr.msk.f32.mxu0 %vm472_vm14, %v1774_v32  ;;  %v1775_v47 = vmul.f32 %v3885_v42, %v3875_v20 }
0x12f7   :  { %v3632_v41 = vpack.c.bf16 %v3790_v3, %v3789_v37 }
0x12f8   :  { %v3793_v43 = vpop.permute.xlu1 %3792  ;;  %v2066_v61 = vpop.permute.xlu0 %2065 }
0x12f9   :  { %v3795_v44 = vunpack.i.h.bf16 %v3793_v43  ;;  %v3794_v45 = vunpack.i.l.bf16 %v3793_v43  ;;  %3633 = vmatprep.subr.bf16.mxu0 %v3632_v41 }
0x12fa   :  { %3635 = vmatpush3.bf16.msra.mxu0 %v3632_v41 }
0x12fb   :  { %v3887_v46 = vpop.eup %3886  ;;  %v3642_v48 = vpack.c.bf16 %v3795_v44, %v3794_v45 }
0x12fc   :  { %v3798_v49 = vpop.permute.xlu1 %3797  ;;  %v1974_v50 = vmul.f32 %v3887_v46, %v3879_v22 }
0x12fd   :  { %v3800_v54 = vunpack.i.h.bf16 %v3798_v49  ;;  %v3799_v56 = vunpack.i.l.bf16 %v3798_v49  ;;  %3453 = vmatmul.mubr.msk.f32.vlgmr.msra.gmra.mrb[14].mxu0 %vm472_vm14, %v1775_v47  ;;  %3643 = vmatprep.subr.bf16.mxu0 %v3642_v48 }
0x12fe   :  { %3645 = vmatpush3.bf16.msra.mxu0 %v3642_v48  ;;  %3466 = vmatprep.mubr.msk.f32.mxu0 %vm472_vm14, %v1974_v50 }
0x12ff   :  { %v3889_v57 = vpop.eup %3888  ;;  %v3646_v55 = vpack.c.bf16 %v3800_v54, %v3799_v56 }
0x1300   :  { %v1975_v51 = vmul.f32 %v3889_v57, %v3881_v24  ;;  %v2064_v58 = vpop.permute.xlu1 %2063 }
0x1301   :  { %3648 = vmatprep.subr.msk.bf16.mxu0 %vm4180_vm3, %v3646_v55 }
0x1302   :  { %3467 = vmatmul.mubr.msk.f32.vlgmr.msra.gmra.mrb[16].mxu0 %vm472_vm14, %v1975_v51 }
0x1303   :  { %3473 = vmatprep.mubr.msk.f32.mxu0 %vm386_vm2, %v2064_v58 }
0x1307   :  { %3651 = vmatpush3.bf16.xpose.msk.msra.mxu0 %vm4180_vm3, %v3646_v55 }
0x130e   :  { %3474 = vmatmul.mubr.msk.f32.vlgmr.msra.gmra.mrb[18].mxu0 %vm386_vm2, %v2066_v61 }
0x13d0   :  { %v4485_v59 = vpop.f32.mrb[14].mxu0 }
0x13d1   :  { %v4487_v60 = vpop.f32.mrb[15].mxu0 }
0x13d5   :  { %v4489_v35 = vpop.f32.mrb[16].mxu0 }
0x13d6   :  { %v4491_v38 = vpop.f32.mrb[17].mxu0 }
0x13e1   :  { %v3475_v0 = vpop.f32.mrb[18].mxu0 }
0x13e2   :  { %v2151_v1 = vadd.f32 %v3475_v0, %v4218_v52  ;;  %v2145_v5 = vpop.f32.mrb[19].mxu0 }
0x13e3   :  { %v2146_v4 = vadd.f32 %v2145_v5, %v4220_v53 }
0x13e4   :  { %v2157_v7 = vsel %vm472_vm14, %v2151_v1, -inf }
0x13e5   :  { %2158 = vmax.xlane.f32.xlu0 %v2157_v7  ;;  %v2154_v8 = vsel %vm472_vm14, %v2146_v4, -inf }
0x13e6   :  { %2155 = vmax.xlane.f32.xlu1 %v2154_v8 }
0x13f7   :  { %3802 = vrot.lane.b32.xlu1 %v4425_v39, %s3980_s9  ;;  %s3942_s9 = scalar_lea.vmem %s3033_s16, 32 }
0x13f8   :  { %p3943_p10 = scmp.ne.s32.totalorder %s3033_s16, %s3942_s9  ;;  %p3948_p12 = scmp.lt.s32.totalorder %s3942_s9, %s3942_s9 }
0x13fa   :  { %p3949_p13 = por %p3948_p12, %p3947_p11 }
0x13fb   :  { %2263 = vrot.lane.b32.xlu1 %v4427_v2, %s3981_s0 }
0x13fc   :  { %p3950_p0 = pnand %p3949_p13, %p3943_p10 }
0x13ff   :  { %2265 = vrot.lane.b32.xlu1 %v4437_v40, %s3981_s0 }
0x1472   :  { %v2159_v9 = vpop.xlane.xlu0 %2158 }
0x1473   :  { %v2161_v10 = vsub.f32 %v2151_v1, %v2159_v9  ;;  %v2156_v12 = vpop.xlane.xlu1 %2155 }
0x1474   :  { %v2160_v15 = vsub.f32 %v2146_v4, %v2156_v12 }
0x1475   :  { %v2164_v18 = vmul.f32 1.442695, %v2161_v10 }
0x1476   :  { %v2162_v19 = vmul.f32 1.442695, %v2160_v15 }
0x1477   :  { %3890 = vpow2.f32 %v2164_v18  ;;  %v3803_v20 = vpop.permute.xlu1 %3802 }
0x1478   :  { %v3805_v33 = vunpack.i.h.bf16 %v3803_v20  ;;  %v3804_v34 = vunpack.i.l.bf16 %v3803_v20  ;;  %3892 = vpow2.f32 %v2162_v19 }
0x147a   :  { %v3652_v36 = vpack.c.bf16 %v3805_v33, %v3804_v34 }
0x147b   :  { %v2264_v3 = vpop.permute.xlu1 %2263 }
0x147c   :  { %3653 = vmatprep.subr.bf16.mxu1 %v3652_v36 }
0x147d   :  { %3655 = vmatpush3.bf16.msra.mxu1 %v3652_v36 }
0x147f   :  { %v2266_v37 = vpop.permute.xlu1 %2265 }
0x1481   :  { %v3891_v21 = vpop.eup %3890 }
0x1482   :  { %v2169_v2 = vsel %vm472_vm14, %v3891_v21, 0.0  ;;  %v3893_v22 = vpop.eup %3892 }
0x1483   :  { %2170 = vadd.xlane.f32.xlu0 %v2169_v2  ;;  %v2166_v40 = vsel %vm472_vm14, %v3893_v22, 0.0 }
0x1487   :  { %2167 = vadd.xlane.f32.xlu0 %v2166_v40 }
0x149d   :  { %3807 = vrot.lane.b32.xlu0 %v4425_v39, %s3982_s1 }
0x1510   :  { %v2171_v23 = vpop.xlane.xlu0 %2170 }
0x1511   :  { %3894 = vrcp.f32 %v2171_v23 }
0x1514   :  { %v2168_v24 = vpop.xlane.xlu0 %2167 }
0x1515   :  { %3896 = vrcp.f32 %v2168_v24 }
0x1518   :  { %v3808_v62 = vpop.permute.xlu0 %3807 }
0x1519   :  { %v3810_v25 = vunpack.i.h.bf16 %v3808_v62  ;;  %v3809_v63 = vunpack.i.l.bf16 %v3808_v62 }
0x151b   :  { %v3656_v26 = vpack.c.bf16 %v3810_v25, %v3809_v63  ;;  %v3895_v27 = vpop.eup %3894 }
0x151c   :  { %v2175_v32 = vmul.f32 %v3895_v27, %v3891_v21 }
0x151d   :  { %3658 = vmatprep.subr.msk.bf16.mxu1 %vm4180_vm3, %v3656_v26 }
0x151f   :  { %v3897_v30 = vpop.eup %3896 }
0x1520   :  { %v2174_v31 = vmul.f32 %v3897_v30, %v3893_v22 }
0x1522   :  { %3480 = vmatprep.mubr.msk.f32.mxu1 %vm472_vm14, %v2174_v31 }
0x1523   :  { %3481 = vmatmul.mubr.msk.f32.vlgmr.msra.gmra.mrb[16].mxu1 %vm472_vm14, %v2175_v32 }
0x1524   :  { %3661 = vmatpush3.bf16.xpose.msk.msra.mxu1 %vm4180_vm3, %v3656_v26  ;;  %3487 = vmatprep.mubr.msk.f32.mxu1 %vm386_vm2, %v2264_v3 }
0x152b   :  { %3488 = vmatmul.mubr.msk.f32.vlgmr.msra.gmra.mrb[18].mxu1 %vm386_vm2, %v2266_v37 }
0x15f6   :  { %v3482_v41 = vpop.f32.mrb[16].mxu1 }
0x15f7   :  { %v2254_v42 = vpop.f32.mrb[17].mxu1 }
0x15fe   :  { %v3489_v43 = vpop.f32.mrb[18].mxu1 }
0x15ff   :  { %v2351_v44 = vadd.f32 %v3489_v43, %v4218_v52  ;;  %v2345_v45 = vpop.f32.mrb[19].mxu1 }
0x1600   :  { %v2346_v46 = vadd.f32 %v2345_v45, %v4220_v53 }
0x1601   :  { %v2357_v47 = vsel %vm472_vm14, %v2351_v44, -inf }
0x1602   :  { %2358 = vmax.xlane.f32.xlu0 %v2357_v47  ;;  %v2354_v48 = vsel %vm472_vm14, %v2346_v46, -inf }
0x1603   :  { %2355 = vmax.xlane.f32.xlu1 %v2354_v48 }
0x1614   :  { %3812 = vrot.lane.b32.xlu1 %v4425_v39, %s3983_s10 }
0x1618   :  { %3822 = vrot.lane.b32.xlu1 %v3821_v6, %s3984_s17 }
0x161c   :  { %2465 = vrot.lane.b32.xlu1 %v4491_v38, %s3985_s18 }
0x1620   :  { %2467 = vrot.lane.b32.xlu1 %v4489_v35, %s3985_s18  ;;  %v3816_v35 = vpack.i.bf16 %v4392_v14, %v4387_v13 }
0x1624   :  { %2475 = vrot.lane.b32.xlu1 %v3482_v41, %s3986_s21 }
0x168f   :  { %v2359_v52 = vpop.xlane.xlu0 %2358 }
0x1690   :  { %v2361_v53 = vsub.f32 %v2351_v44, %v2359_v52  ;;  %v2356_v49 = vpop.xlane.xlu1 %2355  ;;  %v3157_v52 = vld [vmem:[%s4673_s3 + $0x58] sm:$0xff] }
0x1691   :  { %v2360_v50 = vsub.f32 %v2346_v46, %v2356_v49  ;;  %v3158_v49 = vld [vmem:[%s4673_s3 + $0x68] sm:$0xff] }
0x1692   :  { %v2364_v54 = vmul.f32 1.442695, %v2361_v53 }
0x1693   :  { %v2362_v56 = vmul.f32 1.442695, %v2360_v50  ;;  %v3159_v50 = vld [vmem:[%s4673_s3 + $0x78] sm:$0xff] }
0x1694   :  { %v3813_v39 = vpop.permute.xlu1 %3812 }
0x1695   :  { %3898 = vpow2.f32 %v2362_v56  ;;  %v3815_v57 = vunpack.i.h.bf16 %v3813_v39  ;;  %v3814_v16 = vunpack.i.l.bf16 %v3813_v39 }
0x1696   :  { %3900 = vpow2.f32 %v2364_v54  ;;  %v3678_v54 = vpack.c.bf16 %v3159_v50, %v3158_v49 }
0x1697   :  { %v3662_v17 = vpack.c.bf16 %v3815_v57, %v3814_v16 }
0x1698   :  { %v3823_v8 = vpop.permute.xlu1 %3822 }
0x1699   :  { %3663 = vmatprep.subr.bf16.mxu0 %v3662_v17  ;;  %v3825_v10 = vunpack.i.h.bf16 %v3823_v8  ;;  %v3824_v12 = vunpack.i.l.bf16 %v3823_v8  ;;  %v3190_v8 = vld [vmem:[%s4674_s4 + $0x40] sm:$0xff] }
0x169a   :  { %3665 = vmatpush3.bf16.msra.mxu0 %v3662_v17 }
0x169b   :  { %v3670_v14 = vpack.c.bf16 %v3825_v10, %v3824_v12  ;;  %v3192_v12 = vld [vmem:[%s4674_s4 + $0x50] sm:$0xff] }
0x169c   :  { %v2466_v33 = vpop.permute.xlu1 %2465 }
0x169d   :  { %v2487_v2 = vsel %vm386_vm2, %v4487_v60, %v2466_v33  ;;  %v2493_v60 = vld [vmem:[%s4676_s6 + $0x15] ss:$0 sm:$0xff]  ;;  %v3197_v33 = vld [vmem:[%s4674_s4 + $0x78] sm:$0xff] }
0x169f   :  { %v3899_v55 = vpop.eup %3898 }
0x16a0   :  { %v2366_v51 = vsel %vm472_vm14, %v3899_v55, 0.0  ;;  %v3901_v58 = vpop.eup %3900  ;;  %v2468_v34 = vpop.permute.xlu1 %2467 }
0x16a1   :  { %2367 = vadd.xlane.f32.xlu0 %v2366_v51  ;;  %v2369_v61 = vsel %vm472_vm14, %v3901_v58, 0.0  ;;  %v2488_v40 = vsel %vm386_vm2, %v4485_v59, %v2468_v34  ;;  %vm2876_vm2 = vcmask 1041409  }
0x16a4   :  { %v2476_v36 = vpop.permute.xlu1 %2475 }
0x16a5   :  { %2370 = vadd.xlane.f32.xlu0 %v2369_v61  ;;  %v2490_v62 = vsel %vm472_vm14, %v2488_v40, %v2476_v36  ;;  %v2625_v36 = vld [vmem:[%s4676_s6 + $0x20] ss:$0 sm:$0xff] }
0x16bb   :  { %3817 = vrot.lane.b32.xlu0 %v3816_v35, %s3984_s17  ;;  %v2594_v35 = vld [vmem:[%s4676_s6 + $0x17] ss:$0 sm:$0xff] }
0x16bf   :  { %2473 = vrot.lane.b32.xlu0 %v2254_v42, %s3986_s21 }
0x172e   :  { %v2368_v38 = vpop.xlane.xlu0 %2367 }
0x172f   :  { %3902 = vrcp.f32 %v2368_v38 }
0x1732   :  { %v2371_v0 = vpop.xlane.xlu0 %2370 }
0x1733   :  { %3904 = vrcp.f32 %v2371_v0 }
0x1736   :  { %v3818_v1 = vpop.permute.xlu0 %3817 }
0x1737   :  { %v3820_v5 = vunpack.i.h.bf16 %v3818_v1  ;;  %v3819_v4 = vunpack.i.l.bf16 %v3818_v1 }
0x1739   :  { %v3903_v7 = vpop.eup %3902  ;;  %v3666_v9 = vpack.c.bf16 %v3820_v5, %v3819_v4 }
0x173a   :  { %v2374_v15 = vmul.f32 %v3903_v7, %v3899_v55  ;;  %v2474_v21 = vpop.permute.xlu0 %2473 }
0x173b   :  { %3667 = vmatprep.subr.bf16.mxu0 %v3666_v9  ;;  %v2489_v23 = vsel %vm472_vm14, %v2487_v2, %v2474_v21 }
0x173c   :  { %3494 = vmatprep.mubr.msk.f32.mxu0 %vm472_vm14, %v2374_v15  ;;  %v3193_v15 = vld [vmem:[%s4674_s4 + $0x58] sm:$0xff] }
0x173d   :  { %v3905_v13 = vpop.eup %3904 }
0x173e   :  { %v2375_v18 = vmul.f32 %v3905_v13, %v3901_v58  ;;  %v2593_v58 = vld [vmem:[%s4676_s6 + $0x16] ss:$0 sm:$0xff]  ;;  %v3686_v13 = vpack.c.bf16 %v3193_v15, %v3192_v12 }
0x1740   :  { %3495 = vmatmul.mubr.msk.f32.vlgmr.msra.gmra.mrb[20].mxu0 %vm472_vm14, %v2375_v18  ;;  %v3195_v18 = vld [vmem:[%s4674_s4 + $0x68] sm:$0xff] }
0x1741   :  { %3669 = vmatpush3.bf16.msra.mxu0 %v3666_v9  ;;  %v3191_v9 = vld [vmem:[%s4674_s4 + $0x48] sm:$0xff] }
0x1742   :  { %3671 = vmatprep.subr.bf16.mxu0 %v3670_v14  ;;  %v3682_v10 = vpack.c.bf16 %v3191_v9, %v3190_v8  ;;  %v2856_v9 = vld [vmem:[%s4675_s5 + $0x30] sm:$0xff] }
0x1745   :  { %3673 = vmatpush3.bf16.msra.mxu0 %v3670_v14  ;;  %v3194_v14 = vld [vmem:[%s4674_s4 + $0x60] sm:$0xff] }
0x1746   :  { %3683 = vmatprep.subr.bf16.mxu0 %v3682_v10 }
0x1813   :  { %v3496_v19 = vpop.f32.mrb[20].mxu0 }
0x1814   :  { %2483 = vrot.lane.b32.xlu1 %v3496_v19, %s3987_s22  ;;  %v2454_v20 = vpop.f32.mrb[21].mxu0  ;;  %v3690_v19 = vpack.c.bf16 %v3195_v18, %v3194_v14 }
0x1815   :  { %2481 = vrot.lane.b32.xlu0 %v2454_v20, %s3987_s22  ;;  %v3196_v20 = vld [vmem:[%s4674_s4 + $0x70] sm:$0xff] }
0x1816   :  { %v3694_v34 = vpack.c.bf16 %v3197_v33, %v3196_v20 }
0x1886   :  { %v2484_v22 = vpop.permute.xlu1 %2483 }
0x1887   :  { %v2482_v24 = vpop.permute.xlu0 %2481  ;;  %v2492_v63 = vsel %vm1210_vm15, %v2490_v62, %v2484_v22 }
0x1888   :  { %v2491_v25 = vsel %vm1210_vm15, %v2489_v23, %v2482_v24 }
0x1889   :  { %3505 = vmatprep.mubr.msk.f32.mxu0 %vm140_vm1, %v2491_v25 }
0x188a   :  { %3506 = vmatmul.mubr.msk.f32.vlgmr.msra.gmra.mrb[22].mxu0 %vm140_vm1, %v2492_v63 }
0x188b   :  { %3685 = vmatpush3.bf16.msra.mxu0 %v3682_v10  ;;  %v3988_v10 = vmov 0.0  }
0x188c   :  { %3687 = vmatprep.subr.bf16.mxu0 %v3686_v13 }
0x188f   :  { %3689 = vmatpush3.bf16.msra.mxu0 %v3686_v13 }
0x1890   :  { %3691 = vmatprep.subr.bf16.mxu0 %v3690_v19 }
0x1893   :  { %3693 = vmatpush3.bf16.msra.mxu0 %v3690_v19 }
0x1894   :  { %3695 = vmatprep.subr.bf16.mxu0 %v3694_v34 }
0x1897   :  { %3697 = vmatpush3.bf16.msra.mxu0 %v3694_v34  ;;  %v2818_v34 = vld [vmem:[%s4676_s6 + $0x22] ss:$0 sm:$0xff] }
0x195d   :  { %v3507_v26 = vpop.f32.mrb[22].mxu0 }
0x195e   :  { %v2588_v27 = vadd.f32 %v3507_v26, %v2493_v60  ;;  %v2582_v59 = vpop.f32.mrb[23].mxu0 }
0x195f   :  { %v2583_v30 = vadd.f32 %v2582_v59, %v2493_v60 }
0x1960   :  { %v2592_v31 = vadd.f32 %v2588_v27, %v4416_v29 }
0x1961   :  { %v2591_v32 = vadd.f32 %v2583_v30, %v4414_v28  ;;  %v3156_v28 = vld [vmem:[%s4673_s3 + $0x48] sm:$0xff] }
0x1962   :  { %v2598_v3 = vsel %vm140_vm1, %v2592_v31, 0.0  ;;  %v3674_v53 = vpack.c.bf16 %v3157_v52, %v3156_v28 }
0x1963   :  { %2599 = vadd.xlane.f32.xlu1 %v2598_v3  ;;  %v2595_v37 = vsel %vm140_vm1, %v2591_v32, 0.0 }
0x1964   :  { %2596 = vadd.xlane.f32.xlu0 %v2595_v37  ;;  %3675 = vmatprep.subr.bf16.mxu1 %v3674_v53 }
0x1965   :  { %3677 = vmatpush3.bf16.msra.mxu1 %v3674_v53 }
0x1966   :  { %3679 = vmatprep.subr.bf16.mxu1 %v3678_v54 }
0x1969   :  { %3681 = vmatpush3.bf16.msra.mxu1 %v3678_v54 }
0x19f0   :  { %v2600_v41 = vpop.xlane.xlu1 %2599 }
0x19f1   :  { %v2602_v42 = vmul.f32 0.03125, %v2600_v41  ;;  %v2597_v43 = vpop.xlane.xlu0 %2596 }
0x19f2   :  { %v2601_v44 = vmul.f32 0.03125, %v2597_v43 }
0x19f3   :  { %v2604_v45 = vsub.f32 %v2592_v31, %v2602_v42 }
0x19f4   :  { %v2603_v46 = vsub.f32 %v2591_v32, %v2601_v44 }
0x19f5   :  { %v2606_v6 = vmul.f32 %v2604_v45, %v2604_v45 }
0x19f6   :  { %v2605_v47 = vmul.f32 %v2603_v46, %v2603_v46 }
0x19f7   :  { %v2610_v29 = vsel %vm140_vm1, %v2606_v6, 0.0 }
0x19f8   :  { %v2607_v48 = vsel %vm140_vm1, %v2605_v47, 0.0 }
0x19f9   :  { %2608 = vadd.xlane.f32.xlu0 %v2607_v48 }
0x19fd   :  { %2611 = vadd.xlane.f32.xlu0 %v2610_v29 }
0x1a86   :  { %v2609_v56 = vpop.xlane.xlu0 %2608 }
0x1a87   :  { %v2613_v39 = vmul.f32 0.03125, %v2609_v56 }
0x1a89   :  { %v2615_v57 = vadd.f32 1e-12, %v2613_v39 }
0x1a8a   :  { %v2612_v16 = vpop.xlane.xlu0 %2611 }
0x1a8b   :  { %3906 = vrsqrt.f32 %v2615_v57  ;;  %v2614_v17 = vmul.f32 0.03125, %v2612_v16 }
0x1a8d   :  { %v2616_v55 = vadd.f32 1e-12, %v2614_v17 }
0x1a8f   :  { %3908 = vrsqrt.f32 %v2616_v55 }
0x1a95   :  { %v3907_v51 = vpop.eup %3906 }
0x1a96   :  { %v2619_v61 = vmul.f32 %v3907_v51, %v2603_v46 }
0x1a98   :  { %v2621_v38 = vmul.f32 %v2619_v61, %v2593_v58  ;;  %v2853_v61 = vld [vmem:[%s4675_s5 + $0x18] sm:$0xff] }
0x1a99   :  { %v3909_v0 = vpop.eup %3908 }
0x1a9a   :  { %v2620_v1 = vmul.f32 %v3909_v0, %v2604_v45  ;;  %v2623_v5 = vadd.f32 %v2621_v38, %v2594_v35  ;;  %v2734_v45 = vld [vmem:[%s4676_s6 + $0x21] ss:$0 sm:$0xff]  ;;  %v2852_v0 = vld [vmem:[%s4675_s5 + $0x10] sm:$0xff] }
0x1a9b   :  { %v2850_v38 = vld [vmem:[%s4675_s5] sm:$0xff] }
0x1a9c   :  { %v2622_v4 = vmul.f32 %v2620_v1, %v2593_v58  ;;  %3516 = vmatprep.mubr.msk.f32.mxu1 %vm140_vm1, %v2623_v5  ;;  %v2851_v58 = vld [vmem:[%s4675_s5 + $0x8] sm:$0xff]  ;;  %v3700_v1 = vpack.c.bf16 %v2852_v0, %v2850_v38 }
0x1a9e   :  { %v2624_v7 = vadd.f32 %v2622_v4, %v2594_v35  ;;  %v3698_v35 = vpack.c.bf16 %v2853_v61, %v2851_v58  ;;  %v2857_v4 = vld [vmem:[%s4675_s5 + $0x38] sm:$0xff] }
0x1aa0   :  { %3517 = vmatmul.mubr.msk.f32.vlgmr.msra.gmra.mrb[20].mxu1 %vm140_vm1, %v2624_v7  ;;  %3699 = vmatprep.subr.bf16.mxu1 %v3698_v35 }
0x1aa1   :  { %2944 = vmatprep.mubr.f32.mxu1 %v3988_v10  ;;  %3701 = vmatpush1.bf16.msra.mxu1 %v3700_v1 }
0x1b73   :  { %v3518_v21 = vpop.f32.mrb[20].mxu1 }
0x1b74   :  { %v2704_v2 = vadd.f32 %v3518_v21, %v2625_v36  ;;  %v2698_v22 = vpop.f32.mrb[21].mxu1 }
0x1b75   :  { %v2699_v40 = vadd.f32 %v2698_v22, %v2625_v36  ;;  %v2819_v22 = vld [vmem:[%s4676_s6 + $0x23] ss:$0 sm:$0xff] }
0x1b76   :  { %v2710_v23 = vmul.f32 0.044715, %v2704_v2  ;;  %v2708_v42 = vmul.f32 0.5, %v2704_v2 }
0x1b77   :  { %v2709_v24 = vmul.f32 0.044715, %v2699_v40  ;;  %v2707_v37 = vmul.f32 0.5, %v2699_v40 }
0x1b78   :  { %v2712_v62 = vmul.f32 %v2710_v23, %v2704_v2 }
0x1b79   :  { %v2711_v25 = vmul.f32 %v2709_v24, %v2699_v40 }
0x1b7a   :  { %v2714_v63 = vmul.f32 %v2712_v62, %v2704_v2 }
0x1b7b   :  { %v2713_v60 = vmul.f32 %v2711_v25, %v2699_v40 }
0x1b7c   :  { %v2716_v26 = vadd.f32 %v2714_v63, %v2704_v2 }
0x1b7d   :  { %v2715_v27 = vadd.f32 %v2713_v60, %v2699_v40  ;;  %v2859_v60 = vld [vmem:[%s4675_s5 + $0x48] sm:$0x1f] }
0x1b7e   :  { %v2718_v59 = vmul.f32 0.7978846, %v2716_v26  ;;  %v2858_v26 = vld [vmem:[%s4675_s5 + $0x40] sm:$0x1f] }
0x1b7f   :  { %v2717_v30 = vmul.f32 0.7978846, %v2715_v27  ;;  %v2864_v27 = vshrl.u32 %v175_v11, 7  ;;  %v2953_v11 = vld [vmem:[%s4676_s6 + $0x3] ss:$0 sm:$0xff] }
0x1b80   :  { %3910 = vtanh.f32 %v2718_v59 }
0x1b81   :  { %3912 = vtanh.f32 %v2717_v30  ;;  %v2865_v59 = vsub.s32 0, %v2864_v27  ;;  %v3200_v30 = vld [vmem:[%s4676_s6 + $0x2] ss:$8 sm:$0x3] }
0x1b8a   :  { %v3911_v31 = vpop.eup %3910 }
0x1b8b   :  { %v3913_v32 = vpop.eup %3912  ;;  %v2722_v3 = vadd.f32 1.0, %v3911_v31  ;;  %v2869_v31 = vsub.s32 1, %v2864_v27 }
0x1b8c   :  { %v2721_v41 = vadd.f32 1.0, %v3913_v32  ;;  %v2866_v32 = vrot.slane %v3200_v30, %v2865_v59 }
0x1b8d   :  { %v2724_v44 = vmul.f32 %v2722_v3, %v2708_v42  ;;  %v2870_v3 = vrot.slane %v3200_v30, %v2869_v31 }
0x1b8e   :  { %v2723_v43 = vmul.f32 %v2721_v41, %v2707_v37 }
0x1b90   :  { %3535 = vmatprep.mubr.msk.f32.mxu0 %vm1454_vm0, %v2723_v43 }
0x1b91   :  { %3536 = vmatmul.mubr.msk.f32.vlgmr.msra.gmra.mrb[24].mxu0 %vm1454_vm0, %v2724_v44 }
0x1c64   :  { %v3537_v46 = vpop.f32.mrb[24].mxu0 }
0x1c65   :  { %v2813_v47 = vadd.f32 %v3537_v46, %v2734_v45  ;;  %v2807_v48 = vpop.f32.mrb[25].mxu0 }
0x1c66   :  { %v2808_v6 = vadd.f32 %v2807_v48, %v2734_v45 }
0x1c67   :  { %v2817_v29 = vadd.f32 %v2813_v47, %v2624_v7  ;;  %v2854_v7 = vld [vmem:[%s4675_s5 + $0x20] sm:$0xff] }
0x1c68   :  { %v2816_v28 = vadd.f32 %v2808_v6, %v2623_v5  ;;  %v2855_v5 = vld [vmem:[%s4675_s5 + $0x28] sm:$0xff]  ;;  %v3704_v12 = vpack.c.bf16 %v2856_v9, %v2854_v7 }
0x1c69   :  { %v2823_v52 = vsel %vm140_vm1, %v2817_v29, 0.0  ;;  %v3702_v8 = vpack.c.bf16 %v2857_v4, %v2855_v5 }
0x1c6a   :  { %2824 = vadd.xlane.f32.xlu0 %v2823_v52  ;;  %v2820_v53 = vsel %vm140_vm1, %v2816_v28, 0.0 }
0x1c6b   :  { %2821 = vadd.xlane.f32.xlu1 %v2820_v53  ;;  %3703 = vmatprep.subr.bf16.mxu1 %v3702_v8 }
0x1c6c   :  { %3705 = vmatpush1.bf16.msra.mxu1 %v3704_v12 }
0x1c6d   :  { %2954 = vmatprep.subr.mxu1 %v2859_v60 }
0x1cf7   :  { %v2825_v49 = vpop.xlane.xlu0 %2824 }
0x1cf8   :  { %v2827_v50 = vmul.f32 0.03125, %v2825_v49  ;;  %v2822_v54 = vpop.xlane.xlu1 %2821 }
0x1cf9   :  { %v2826_v56 = vmul.f32 0.03125, %v2822_v54 }
0x1cfa   :  { %v2829_v39 = vsub.f32 %v2817_v29, %v2827_v50 }
0x1cfb   :  { %v2828_v57 = vsub.f32 %v2816_v28, %v2826_v56 }
0x1cfc   :  { %v2831_v16 = vmul.f32 %v2829_v39, %v2829_v39 }
0x1cfd   :  { %v2830_v17 = vmul.f32 %v2828_v57, %v2828_v57 }
0x1cfe   :  { %v2835_v55 = vsel %vm140_vm1, %v2831_v16, 0.0 }
0x1cff   :  { %2836 = vadd.xlane.f32.xlu0 %v2835_v55  ;;  %v2832_v51 = vsel %vm140_vm1, %v2830_v17, 0.0 }
0x1d00   :  { %2833 = vadd.xlane.f32.xlu1 %v2832_v51 }
0x1d8c   :  { %v2837_v15 = vpop.xlane.xlu0 %2836 }
0x1d8d   :  { %v2839_v13 = vmul.f32 0.03125, %v2837_v15  ;;  %v2834_v14 = vpop.xlane.xlu1 %2833 }
0x1d8e   :  { %v2838_v18 = vmul.f32 0.03125, %v2834_v14 }
0x1d8f   :  { %v2841_v19 = vadd.f32 1e-12, %v2839_v13 }
0x1d90   :  { %v2840_v20 = vadd.f32 1e-12, %v2838_v18 }
0x1d91   :  { %3914 = vrsqrt.f32 %v2841_v19 }
0x1d92   :  { %3916 = vrsqrt.f32 %v2840_v20 }
0x1d9b   :  { %v3915_v33 = vpop.eup %3914 }
0x1d9c   :  { %v3917_v36 = vpop.eup %3916  ;;  %v2845_v21 = vmul.f32 %v3915_v33, %v2829_v39 }
0x1d9d   :  { %v2844_v2 = vmul.f32 %v3917_v36, %v2828_v57 }
0x1d9e   :  { %v2847_v40 = vmul.f32 %v2845_v21, %v2818_v34 }
0x1d9f   :  { %v2846_v23 = vmul.f32 %v2844_v2, %v2818_v34 }
0x1da0   :  { %v2849_v24 = vadd.f32 %v2847_v40, %v2819_v22 }
0x1da1   :  { %v2848_v62 = vadd.f32 %v2846_v23, %v2819_v22 }
0x1da2   :  { %v2875_v25 = vrot.slane %v2849_v24, 7 }
0x1da4   :  { %v2877_v63 = vsel %vm2876_vm2, %v2875_v25, %v2848_v62 }
0x1da5   :  { %3201 = vmatmul.mubr.msk.f32.vlgmr.msra.gmra.mrb[22].mxu1 %vm140_vm1, %v2877_v63  ;;  %vm3024_vm1 = vcmask 33792  }
0x1da6   :  { %2955 = vmatpush1.xpose.msra.mxu1 %v2858_v26 }
0x1e78   :  { %v2946_v37 = vpop.f32.mrb[22].mxu1 }
0x1e79   :  { %v2947_v41 = vadd.f32 %v2946_v37, %v2866_v32  ;;  %v2948_v42 = vpop.f32.mrb[23].mxu1 }
0x1e7a   :  { %v2949_v43 = vadd.f32 %v2948_v42, %v2870_v3 }
0x1e7b   :  { %v2951_v45 = vmax.f32 %v2947_v41, 0.0 }
0x1e7c   :  { %v2952_v44 = vmax.f32 %v2949_v43, 0.0 }
0x1e7e   :  { %3018 = vmatprep.mubr.f32.mxu1 %v2952_v44 }
0x1e7f   :  { %3019 = vmatmul.mubr.f32.vlgmr.msra.gmra.mrb[24].mxu1 %v2951_v45 }
0x1f52   :  { %v3020_v46 = vpop.f32.mrb[24].mxu1 }
0x1f53   :  { %v3021_v47 = vadd.f32 %v3020_v46, %v2953_v11  ;;  %v3022_v48 = vpop.f32.mrb[25].mxu1 }
0x1f55   :  { %3025 = vst.msk [vmem:[#allocation8] sm:$0x3] %vm3024_vm1, %v3021_v47 }
0x1f56   :  { %3953 = shalt.err (!%p3950_p0)
}
0x1f57   :  { %s3954_s10 = scalar_lea.hbm %s4677_s7, 32 }
0x1f58   :  { %p3955_p1 = scmp.ne.s32.totalorder %s4677_s7, %s3954_s10  ;;  %p3958_p2 = scmp.lt.u32.totalorder %s3954_s10, %s4677_s7 }
0x1f5a   :  { %p3960_p3 = pnand %p3958_p2, %p3955_p1 }
0x1f5c   :  { %3963 = shalt.err (!%p3960_p3)
}
0x1f5d   :  { %3035 = dma.vmem_to_hbm [thread:$0]  %s3033_s16, 32, %s4677_s7, [#allocation4]  }
0x1f5e   :  { %3968 = dma.done.wait [#allocation4], 32  }
0x1f5f   :  { %3969 = vsyncadd [#allocation4], 4294967264 }
0x1f60   :  { %3039 = vsyncpa [#allocation4], 1 }
0x1f61   :  { %3040 = vsyncpa [#allocation5], 1 }
0x1f62   :  { %3041 = vsyncpa [#allocation7], 1 }

</bundles_post_ra>
